<compile_context>
chip_gen: v7x
topology: tpu7x:2x2x1
jax: 0.10.0
libtpu: 0.0.40
codegen_flags: <defaults>
</compile_context>

<pallas_src>
import functools

import numpy as np
import jax
import jax.numpy as jnp
from jax.experimental import pallas as pl
from jax.experimental.pallas import tpu as pltpu


# ----------------------------------------------------------------------------
# Fused kernel
# ----------------------------------------------------------------------------
def hic_encoder_kernel(x_ref, w1_ref, wr1_ref, wr2_ref, w2_ref, wfc_ref, bfc_ref,
                       eps_ref, out_ref, *, H):
    # x_ref   : (B*H, LANES)            stem input, lanes ordered (w, ci), zero padded
    # w1_ref  : (3*LANES, LANES)        stacked banded stem conv weight  [M(dy=0);M(1);M(2)]
    # wr1/wr2 : (R, 3*LANES, LANES)     stacked banded res-block conv weights
    # w2_ref  : (3*LANES, LANES)        stacked banded final conv weight
    # wfc_ref : (H*LANES, 2L)           fused [fc_mu | fc_sigma] weight, rows in (h, w, c) order
    # bfc_ref : (1, 2L)                 fused bias (f32)
    # eps_ref : (B, L)                  reparam noise (f32)
    # out_ref : (B, 3L)                 lane-packed [z | mu | sigma]
    BH, LANES = x_ref.shape
    B = BH // H
    R = wr1_ref.shape[0]
    L = bfc_ref.shape[-1] // 2
    wdt = w1_ref.dtype                           # matmul operand dtype (bf16 or f32)

    # Hoisted once: zero halo row + image-boundary masks for the dy = -1 / +1 row shifts
    # (batch is stacked along rows, so shifts must not leak across image boundaries).
    zrow = jnp.zeros((1, LANES), jnp.float32)
    row = jax.lax.broadcasted_iota(jnp.int32, (BH, LANES), 0)
    mask_up = (row % H != 0).astype(jnp.float32)         # row y has an "up" neighbor y-1
    mask_dn = (row % H != H - 1).astype(jnp.float32)     # row y has a "down" neighbor y+1

    def conv(h, w_stacked):
        # 3x3 same-padded conv as ONE (B*H, 3*LANES) @ (3*LANES, LANES) matmul.
        # dx taps and W-edge zero padding are folded into the banded weight; the dy taps
        # are realized as sublane shifts of the activation, concatenated along lanes.
        up = jnp.concatenate([zrow, h[:-1, :]], axis=0) * mask_up   # h[y-1] (0 at y=0)
        dn = jnp.concatenate([h[1:, :], zrow], axis=0) * mask_dn    # h[y+1] (0 at y=H-1)
        operand = jnp.concatenate([up, h, dn], axis=-1).astype(wdt)  # (B*H, 3*LANES)
        return jnp.dot(operand, w_stacked, preferred_element_type=jnp.float32)

    # --- stem conv (extra input lanes are zero-padded; matching weight rows are zero) ---
    h = conv(x_ref[...], w1_ref[...])

    # --- residual blocks: x + 0.1 * conv2(relu(conv1(x))) (elementwise kept in f32) ----
    for r in range(R):
        t = jnp.maximum(conv(h, wr1_ref[r]), 0.0)
        h = h + 0.1 * conv(t, wr2_ref[r])

    # --- final conv -----------------------------------------------------------------
    hf = conv(h, w2_ref[...])                    # (B*H, LANES), lane order (w, c)

    # --- flatten (h, w, c) + fused fc_mu / fc_sigma as ONE matmul ---------------------
    # Build (B, H*LANES) with lane-concats of unit-stride row slices (stays in vregs).
    flat = jnp.concatenate(
        [jnp.concatenate([hf[b * H + hh: b * H + hh + 1, :] for hh in range(H)], axis=-1)
         for b in range(B)],
        axis=0)                                   # (B, H*LANES)
    acc = jnp.dot(flat.astype(wdt), wfc_ref[...],
                  preferred_element_type=jnp.float32) + bfc_ref[...]   # (B, 2L)

    mu = acc[:, :L]
    sigma = jnp.exp(acc[:, L:])                  # matches torch.exp(raw_sigma)
    z = mu + sigma * eps_ref[...]
    out_ref[...] = jnp.concatenate([z, mu, sigma], axis=-1)


# ----------------------------------------------------------------------------
# Wrapper
# ----------------------------------------------------------------------------
def hic_encoder_forward(x_nchw, params, eps):
    B, Cin, H, W = x_nchw.shape
    lanes = params["w2"].shape[-1]
    R = params["wr1"].shape[0]
    L = params["bfc"].shape[-1] // 2
    assert W * Cin <= lanes

    # NCHW -> (B*H, W*Cin) lane-dense stem layout, zero padded to `lanes` lanes.
    x_in = jnp.transpose(x_nchw, (0, 2, 3, 1)).reshape(B * H, W * Cin).astype(jnp.float32)
    x_in = jnp.pad(x_in, ((0, 0), (0, lanes - W * Cin)))
    eps2 = eps.astype(jnp.float32)

    kernel = functools.partial(hic_encoder_kernel, H=H)

    out = pl.pallas_call(
        kernel,
        out_shape=jax.ShapeDtypeStruct((B, 3 * L), jnp.float32),
        grid=(1,),
        in_specs=[
            pl.BlockSpec((B * H, lanes), lambda i: (0, 0)),
            pl.BlockSpec((3 * lanes, lanes), lambda i: (0, 0)),
            pl.BlockSpec((R, 3 * lanes, lanes), lambda i: (0, 0, 0)),
            pl.BlockSpec((R, 3 * lanes, lanes), lambda i: (0, 0, 0)),
            pl.BlockSpec((3 * lanes, lanes), lambda i: (0, 0)),
            pl.BlockSpec((H * lanes, 2 * L), lambda i: (0, 0)),
            pl.BlockSpec((1, 2 * L), lambda i: (0, 0)),
            pl.BlockSpec((B, L), lambda i: (0, 0)),
        ],
        out_specs=pl.BlockSpec((B, 3 * L), lambda i: (0, 0)),
        compiler_params=pltpu.CompilerParams(dimension_semantics=("arbitrary",)),
    )(x_in, params["w1"], params["wr1"], params["wr2"], params["w2"],
      params["wfc"], params["bfc"], eps2)

    z, mu, sigma = out[:, :L], out[:, L:2 * L], out[:, 2 * L:]
    return z, mu, sigma


# ----------------------------------------------------------------------------
# Host-side weight packing (PyTorch layouts -> stacked banded / flattened matrices)
# ----------------------------------------------------------------------------
def _banded_conv_stacked(w_oihw, W, lanes):
    # (Cout, Cin, 3, 3) -> (3*lanes, lanes):
    #   block dy has  M[dy][wi*Cin+ci, wo*Cout+co] = w[co, ci, dy, kx]  with kx = wi-wo+1,
    # i.e. the dx taps and the W-edge zero padding are folded into a banded block matrix,
    # and the three dy blocks are stacked along the contraction (K) dimension.
    w = np.transpose(np.asarray(w_oihw, dtype=np.float32), (2, 3, 1, 0))  # (ky,kx,Cin,Cout)
    Cin, Cout = w.shape[2], w.shape[3]
    assert W * Cout == lanes and W * Cin <= lanes
    m = np.zeros((3, lanes, lanes), np.float32)
    for kx in range(3):
        for wo in range(W):
            wi = wo + kx - 1
            if 0 <= wi < W:
                m[:, wi * Cin:(wi + 1) * Cin, wo * Cout:(wo + 1) * Cout] = w[:, kx]
    return m.reshape(3 * lanes, lanes)


def _fc_weight_flat(w_pt, C, H, W):
    # PyTorch Linear weight (L, C*H*W) with (c, h, w) column order -> (H*W*C, L)
    # row-ordered (h, w, c) to match the kernel's flatten order.
    L = w_pt.shape[0]
    w = np.asarray(w_pt, dtype=np.float32).reshape(L, C, H, W)
    return np.transpose(w, (2, 3, 1, 0)).reshape(H * W * C, L)


def pack_params(pt, base_channels, image_size, dtype=jnp.bfloat16):
    C, H, W = base_channels, image_size, image_size
    lanes = W * C
    # Lane-dense layout requirement (see header comment).
    assert lanes % 128 == 0, "W * base_channels must be a multiple of 128 lanes"
    w1 = _banded_conv_stacked(pt["conv1"], W, lanes)
    wr1 = np.stack([_banded_conv_stacked(a, W, lanes) for (a, _) in pt["res"]])
    wr2 = np.stack([_banded_conv_stacked(b, W, lanes) for (_, b) in pt["res"]])
    w2 = _banded_conv_stacked(pt["conv2"], W, lanes)
    wfc = np.concatenate([_fc_weight_flat(pt["w_mu"], C, H, W),
                          _fc_weight_flat(pt["w_sg"], C, H, W)], axis=-1)
    bfc = np.concatenate([np.asarray(pt["b_mu"]), np.asarray(pt["b_sg"])]).reshape(1, -1)
    out = {k: jnp.asarray(v, dtype=dtype) for k, v in
           dict(w1=w1, wr1=wr1, wr2=wr2, w2=w2, wfc=wfc).items()}
    out["bfc"] = jnp.asarray(bfc, dtype=jnp.float32)   # bias added in f32
    return out


def make_pt_params(key, in_channels, base_channels, num_res_blocks, latent_dim, image_size):
    C, H = base_channels, image_size
    F = C * H * H
    keys = iter(jax.random.split(key, 4 + 2 * num_res_blocks))
    conv1 = 0.05 * jax.random.normal(next(keys), (C, in_channels, 3, 3), jnp.float32)
    res = []
    for _ in range(num_res_blocks):
        w1 = 0.05 * jax.random.normal(next(keys), (C, C, 3, 3), jnp.float32)
        w2 = 0.05 * jax.random.normal(next(keys), (C, C, 3, 3), jnp.float32)
        res.append((w1, w2))
    conv2 = 0.05 * jax.random.normal(next(keys), (C, C, 3, 3), jnp.float32)
    w_mu = 0.01 * jax.random.normal(next(keys), (latent_dim, F), jnp.float32)
    w_sg = 0.01 * jax.random.normal(next(keys), (latent_dim, F), jnp.float32)
    b_mu = 0.01 * jnp.arange(latent_dim, dtype=jnp.float32)
    b_sg = -0.01 * jnp.arange(latent_dim, dtype=jnp.float32)
    return dict(conv1=conv1, res=res, conv2=conv2,
                w_mu=w_mu, b_mu=b_mu, w_sg=w_sg, b_sg=b_sg)


# ----------------------------------------------------------------------------
# Pure-JAX reference (PyTorch semantics) for correctness checking
# ----------------------------------------------------------------------------
def reference_forward(x, pt, eps):
    prec = jax.lax.Precision.HIGHEST
    def conv(h, w):
        return jax.lax.conv_general_dilated(
            h, w, window_strides=(1, 1), padding=((1, 1), (1, 1)),
            dimension_numbers=("NCHW", "OIHW", "NCHW"), precision=prec)
    h = conv(x, pt["conv1"])
    for (w1, w2) in pt["res"]:
        t = jnp.maximum(conv(h, w1), 0.0)
        h = h + 0.1 * conv(t, w2)
    h = conv(h, pt["conv2"])
    xf = h.reshape(h.shape[0], -1)
    mu = jnp.dot(xf, pt["w_mu"].T, precision=prec) + pt["b_mu"][None, :]
    sigma = jnp.exp(jnp.dot(xf, pt["w_sg"].T, precision=prec) + pt["b_sg"][None, :])
    return mu + sigma * eps, mu, sigma


if __name__ == "__main__":
    B, IN_C, BASE_C, IMG, N_RES, LATENT = 2, 1, 8, 16, 2, 16   # W*C = 128 lanes

    root = jax.random.PRNGKey(0)
    k_params, k_x, k_eps = jax.random.split(root, 3)

    pt_params = make_pt_params(k_params, IN_C, BASE_C, N_RES, LATENT, IMG)
    x = jax.random.normal(k_x, (B, IN_C, IMG, IMG), jnp.float32)     # NCHW like PyTorch
    eps = jax.random.normal(k_eps, (B, LATENT), jnp.float32)         # reparam noise

    z_r, mu_r, sg_r = reference_forward(x, pt_params, eps)

    # f32-packed weights: tighter check that validates weight packing / index math
    # (tolerance is chosen to be robust to MXU pass-precision differences, while any
    #  packing or layout error would produce O(1) deviations).
    params_f32 = pack_params(pt_params, BASE_C, IMG, dtype=jnp.float32)
    z, mu, sg = hic_encoder_forward(x, params_f32, eps)
    jax.block_until_ready((z, mu, sg))
    for a, b in ((z, z_r), (mu, mu_r), (sg, sg_r)):
        np.testing.assert_allclose(np.asarray(a), np.asarray(b), rtol=2e-2, atol=2e-3)

    # bf16-packed weights (production path: halves weight DMA, single-pass bf16 MXU).
    params_bf16 = pack_params(pt_params, BASE_C, IMG, dtype=jnp.bfloat16)
    z, mu, sg = hic_encoder_forward(x, params_bf16, eps)
    jax.block_until_ready((z, mu, sg))
    for a, b in ((z, z_r), (mu, mu_r), (sg, sg_r)):
        np.testing.assert_allclose(np.asarray(a), np.asarray(b), rtol=6e-2, atol=6e-2)

    assert z.shape == (B, LATENT) and mu.shape == (B, LATENT) and sg.shape == (B, LATENT)
    assert bool(jnp.all(jnp.isfinite(z))) and bool(np.all(np.asarray(sg) > 0.0))
    print("KERNEL_OK")
</pallas_src>

<mosaic_0001>
module attributes {stable_mosaic.version = 11 : i64} {
  func.func @hic_encoder_kernel(%arg0: i32, %arg1: memref<32x128xf32, #tpu.memory_space<vmem>>, %arg2: memref<384x128xf32, #tpu.memory_space<vmem>>, %arg3: memref<2x384x128xf32, #tpu.memory_space<vmem>>, %arg4: memref<2x384x128xf32, #tpu.memory_space<vmem>>, %arg5: memref<384x128xf32, #tpu.memory_space<vmem>>, %arg6: memref<2048x32xf32, #tpu.memory_space<vmem>>, %arg7: memref<1x32xf32, #tpu.memory_space<vmem>>, %arg8: memref<2x16xf32, #tpu.memory_space<vmem>>, %arg9: memref<2x48xf32, #tpu.memory_space<vmem>>) attributes {dimension_semantics = [#tpu.dimension_semantics<arbitrary>], iteration_bounds = array<i64: 1>, scalar_prefetch = 0 : i64, scratch_operands = 0 : i64, tpu.core_type = #tpu.core_type<tc>, window_params = [{pipeline_mode = #tpu.pipeline_mode<synchronous>, transform_indices = @transform_0, window_bounds = array<i64: 32, 128>}, {pipeline_mode = #tpu.pipeline_mode<synchronous>, transform_indices = @transform_1, window_bounds = array<i64: 384, 128>}, {pipeline_mode = #tpu.pipeline_mode<synchronous>, transform_indices = @transform_2, window_bounds = array<i64: 2, 384, 128>}, {pipeline_mode = #tpu.pipeline_mode<synchronous>, transform_indices = @transform_3, window_bounds = array<i64: 2, 384, 128>}, {pipeline_mode = #tpu.pipeline_mode<synchronous>, transform_indices = @transform_4, window_bounds = array<i64: 384, 128>}, {pipeline_mode = #tpu.pipeline_mode<synchronous>, transform_indices = @transform_5, window_bounds = array<i64: 2048, 32>}, {pipeline_mode = #tpu.pipeline_mode<synchronous>, transform_indices = @transform_6, window_bounds = array<i64: 1, 32>}, {pipeline_mode = #tpu.pipeline_mode<synchronous>, transform_indices = @transform_7, window_bounds = array<i64: 2, 16>}, {pipeline_mode = #tpu.pipeline_mode<synchronous>, transform_indices = @transform_8, window_bounds = array<i64: 2, 48>}]} {
    %cst = arith.constant 0.000000e+00 : f32
    %0 = vector.broadcast %cst : f32 to vector<1x128xf32>
    %1 = tpu.iota {dimensions = array<i32: 0>} : vector<32x128xi32>
    %c16_i32 = arith.constant 16 : i32
    %c0_i32 = arith.constant 0 : i32
    %2 = arith.cmpi eq, %c16_i32, %c0_i32 : i32
    %c1_i32 = arith.constant 1 : i32
    %3 = arith.select %2, %c1_i32, %c16_i32 : i32
    %4 = vector.broadcast %3 : i32 to vector<32x128xi32>
    %5 = arith.remsi %1, %4 : vector<32x128xi32>
    %c0_i32_0 = arith.constant 0 : i32
    %6 = vector.broadcast %c0_i32_0 : i32 to vector<32x128xi32>
    %7 = arith.cmpi ne, %5, %6 : vector<32x128xi32>
    %c0_i32_1 = arith.constant 0 : i32
    %8 = vector.broadcast %c0_i32_1 : i32 to vector<32x128xi32>
    %9 = arith.cmpi slt, %5, %8 : vector<32x128xi32>
    %c0_i32_2 = arith.constant 0 : i32
    %10 = arith.cmpi slt, %3, %c0_i32_2 : i32
    %11 = vector.broadcast %10 : i1 to vector<32x128xi1>
    %12 = vector.broadcast %11 : vector<32x128xi1> to vector<32x128xi1>
    %13 = arith.xori %9, %12 : vector<32x128xi1>
    %14 = arith.andi %13, %7 : vector<32x128xi1>
    %15 = vector.broadcast %3 : i32 to vector<32x128xi32>
    %16 = arith.addi %5, %15 : vector<32x128xi32>
    %17 = arith.select %14, %16, %5 : vector<32x128xi1>, vector<32x128xi32>
    %c0_i32_3 = arith.constant 0 : i32
    %18 = vector.broadcast %c0_i32_3 : i32 to vector<32x128xi32>
    %19 = arith.cmpi ne, %17, %18 : vector<32x128xi32>
    %20 = arith.extui %19 : vector<32x128xi1> to vector<32x128xi32>
    %21 = arith.sitofp %20 : vector<32x128xi32> to vector<32x128xf32>
    %c16_i32_4 = arith.constant 16 : i32
    %c0_i32_5 = arith.constant 0 : i32
    %22 = arith.cmpi eq, %c16_i32_4, %c0_i32_5 : i32
    %c1_i32_6 = arith.constant 1 : i32
    %23 = arith.select %22, %c1_i32_6, %c16_i32_4 : i32
    %24 = vector.broadcast %23 : i32 to vector<32x128xi32>
    %25 = arith.remsi %1, %24 : vector<32x128xi32>
    %c0_i32_7 = arith.constant 0 : i32
    %26 = vector.broadcast %c0_i32_7 : i32 to vector<32x128xi32>
    %27 = arith.cmpi ne, %25, %26 : vector<32x128xi32>
    %c0_i32_8 = arith.constant 0 : i32
    %28 = vector.broadcast %c0_i32_8 : i32 to vector<32x128xi32>
    %29 = arith.cmpi slt, %25, %28 : vector<32x128xi32>
    %c0_i32_9 = arith.constant 0 : i32
    %30 = arith.cmpi slt, %23, %c0_i32_9 : i32
    %31 = vector.broadcast %30 : i1 to vector<32x128xi1>
    %32 = vector.broadcast %31 : vector<32x128xi1> to vector<32x128xi1>
    %33 = arith.xori %29, %32 : vector<32x128xi1>
    %34 = arith.andi %33, %27 : vector<32x128xi1>
    %35 = vector.broadcast %23 : i32 to vector<32x128xi32>
    %36 = arith.addi %25, %35 : vector<32x128xi32>
    %37 = arith.select %34, %36, %25 : vector<32x128xi1>, vector<32x128xi32>
    %c15_i32 = arith.constant 15 : i32
    %38 = vector.broadcast %c15_i32 : i32 to vector<32x128xi32>
    %39 = arith.cmpi ne, %37, %38 : vector<32x128xi32>
    %40 = arith.extui %39 : vector<32x128xi1> to vector<32x128xi32>
    %41 = arith.sitofp %40 : vector<32x128xi32> to vector<32x128xf32>
    %c0 = arith.constant 0 : index
    %c0_10 = arith.constant 0 : index
    %42 = vector.load %arg1[%c0, %c0_10] : memref<32x128xf32, #tpu.memory_space<vmem>>, vector<32x128xf32>
    %c0_11 = arith.constant 0 : index
    %c0_12 = arith.constant 0 : index
    %43 = vector.load %arg2[%c0_11, %c0_12] : memref<384x128xf32, #tpu.memory_space<vmem>>, vector<384x128xf32>
    %44 = vector.extract_strided_slice %42 {offsets = [0, 0], sizes = [31, 128], strides = [1, 1]} : vector<32x128xf32> to vector<31x128xf32>
    %45 = tpu.concatenate %0, %44 in 0 : vector<1x128xf32>, vector<31x128xf32> -> vector<32x128xf32>
    %46 = arith.mulf %45, %21 : vector<32x128xf32>
    %47 = vector.extract_strided_slice %42 {offsets = [1, 0], sizes = [31, 128], strides = [1, 1]} : vector<32x128xf32> to vector<31x128xf32>
    %48 = tpu.concatenate %47, %0 in 0 : vector<31x128xf32>, vector<1x128xf32> -> vector<32x128xf32>
    %49 = arith.mulf %48, %41 : vector<32x128xf32>
    %50 = tpu.concatenate %46, %42, %49 in 1 : vector<32x128xf32>, vector<32x128xf32>, vector<32x128xf32> -> vector<32x384xf32>
    %cst_13 = arith.constant dense<0.000000e+00> : vector<32x128xf32>
    %51 = tpu.matmul %50, %43, %cst_13 {dimension_numbers = #tpu.dot_dimension_numbers<[1], [0], [0], [1], [0, 0, 1, 1], [], []>} : vector<32x384xf32>, vector<384x128xf32>, vector<32x128xf32> -> vector<32x128xf32>
    %c0_14 = arith.constant 0 : index
    %c0_15 = arith.constant 0 : index
    %c0_16 = arith.constant 0 : index
    %52 = vector.load %arg3[%c0_14, %c0_15, %c0_16] : memref<2x384x128xf32, #tpu.memory_space<vmem>>, vector<1x384x128xf32>
    %53 = vector.shape_cast %52 : vector<1x384x128xf32> to vector<384x128xf32>
    %54 = vector.extract_strided_slice %51 {offsets = [0, 0], sizes = [31, 128], strides = [1, 1]} : vector<32x128xf32> to vector<31x128xf32>
    %55 = tpu.concatenate %0, %54 in 0 : vector<1x128xf32>, vector<31x128xf32> -> vector<32x128xf32>
    %56 = arith.mulf %55, %21 : vector<32x128xf32>
    %57 = vector.extract_strided_slice %51 {offsets = [1, 0], sizes = [31, 128], strides = [1, 1]} : vector<32x128xf32> to vector<31x128xf32>
    %58 = tpu.concatenate %57, %0 in 0 : vector<31x128xf32>, vector<1x128xf32> -> vector<32x128xf32>
    %59 = arith.mulf %58, %41 : vector<32x128xf32>
    %60 = tpu.concatenate %56, %51, %59 in 1 : vector<32x128xf32>, vector<32x128xf32>, vector<32x128xf32> -> vector<32x384xf32>
    %cst_17 = arith.constant dense<0.000000e+00> : vector<32x128xf32>
    %61 = tpu.matmul %60, %53, %cst_17 {dimension_numbers = #tpu.dot_dimension_numbers<[1], [0], [0], [1], [0, 0, 1, 1], [], []>} : vector<32x384xf32>, vector<384x128xf32>, vector<32x128xf32> -> vector<32x128xf32>
    %cst_18 = arith.constant 0.000000e+00 : f32
    %62 = vector.broadcast %cst_18 : f32 to vector<32x128xf32>
    %63 = arith.maximumf %61, %62 : vector<32x128xf32>
    %c0_19 = arith.constant 0 : index
    %c0_20 = arith.constant 0 : index
    %c0_21 = arith.constant 0 : index
    %64 = vector.load %arg4[%c0_19, %c0_20, %c0_21] : memref<2x384x128xf32, #tpu.memory_space<vmem>>, vector<1x384x128xf32>
    %65 = vector.shape_cast %64 : vector<1x384x128xf32> to vector<384x128xf32>
    %66 = vector.extract_strided_slice %63 {offsets = [0, 0], sizes = [31, 128], strides = [1, 1]} : vector<32x128xf32> to vector<31x128xf32>
    %67 = tpu.concatenate %0, %66 in 0 : vector<1x128xf32>, vector<31x128xf32> -> vector<32x128xf32>
    %68 = arith.mulf %67, %21 : vector<32x128xf32>
    %69 = vector.extract_strided_slice %63 {offsets = [1, 0], sizes = [31, 128], strides = [1, 1]} : vector<32x128xf32> to vector<31x128xf32>
    %70 = tpu.concatenate %69, %0 in 0 : vector<31x128xf32>, vector<1x128xf32> -> vector<32x128xf32>
    %71 = arith.mulf %70, %41 : vector<32x128xf32>
    %72 = tpu.concatenate %68, %63, %71 in 1 : vector<32x128xf32>, vector<32x128xf32>, vector<32x128xf32> -> vector<32x384xf32>
    %cst_22 = arith.constant dense<0.000000e+00> : vector<32x128xf32>
    %73 = tpu.matmul %72, %65, %cst_22 {dimension_numbers = #tpu.dot_dimension_numbers<[1], [0], [0], [1], [0, 0, 1, 1], [], []>} : vector<32x384xf32>, vector<384x128xf32>, vector<32x128xf32> -> vector<32x128xf32>
    %cst_23 = arith.constant 1.000000e-01 : f32
    %74 = vector.broadcast %cst_23 : f32 to vector<32x128xf32>
    %75 = arith.mulf %74, %73 : vector<32x128xf32>
    %76 = arith.addf %51, %75 : vector<32x128xf32>
    %c1 = arith.constant 1 : index
    %c0_24 = arith.constant 0 : index
    %c0_25 = arith.constant 0 : index
    %77 = vector.load %arg3[%c1, %c0_24, %c0_25] : memref<2x384x128xf32, #tpu.memory_space<vmem>>, vector<1x384x128xf32>
    %78 = vector.shape_cast %77 : vector<1x384x128xf32> to vector<384x128xf32>
    %79 = vector.extract_strided_slice %76 {offsets = [0, 0], sizes = [31, 128], strides = [1, 1]} : vector<32x128xf32> to vector<31x128xf32>
    %80 = tpu.concatenate %0, %79 in 0 : vector<1x128xf32>, vector<31x128xf32> -> vector<32x128xf32>
    %81 = arith.mulf %80, %21 : vector<32x128xf32>
    %82 = vector.extract_strided_slice %76 {offsets = [1, 0], sizes = [31, 128], strides = [1, 1]} : vector<32x128xf32> to vector<31x128xf32>
    %83 = tpu.concatenate %82, %0 in 0 : vector<31x128xf32>, vector<1x128xf32> -> vector<32x128xf32>
    %84 = arith.mulf %83, %41 : vector<32x128xf32>
    %85 = tpu.concatenate %81, %76, %84 in 1 : vector<32x128xf32>, vector<32x128xf32>, vector<32x128xf32> -> vector<32x384xf32>
    %cst_26 = arith.constant dense<0.000000e+00> : vector<32x128xf32>
    %86 = tpu.matmul %85, %78, %cst_26 {dimension_numbers = #tpu.dot_dimension_numbers<[1], [0], [0], [1], [0, 0, 1, 1], [], []>} : vector<32x384xf32>, vector<384x128xf32>, vector<32x128xf32> -> vector<32x128xf32>
    %cst_27 = arith.constant 0.000000e+00 : f32
    %87 = vector.broadcast %cst_27 : f32 to vector<32x128xf32>
    %88 = arith.maximumf %86, %87 : vector<32x128xf32>
    %c1_28 = arith.constant 1 : index
    %c0_29 = arith.constant 0 : index
    %c0_30 = arith.constant 0 : index
    %89 = vector.load %arg4[%c1_28, %c0_29, %c0_30] : memref<2x384x128xf32, #tpu.memory_space<vmem>>, vector<1x384x128xf32>
    %90 = vector.shape_cast %89 : vector<1x384x128xf32> to vector<384x128xf32>
    %91 = vector.extract_strided_slice %88 {offsets = [0, 0], sizes = [31, 128], strides = [1, 1]} : vector<32x128xf32> to vector<31x128xf32>
    %92 = tpu.concatenate %0, %91 in 0 : vector<1x128xf32>, vector<31x128xf32> -> vector<32x128xf32>
    %93 = arith.mulf %92, %21 : vector<32x128xf32>
    %94 = vector.extract_strided_slice %88 {offsets = [1, 0], sizes = [31, 128], strides = [1, 1]} : vector<32x128xf32> to vector<31x128xf32>
    %95 = tpu.concatenate %94, %0 in 0 : vector<31x128xf32>, vector<1x128xf32> -> vector<32x128xf32>
    %96 = arith.mulf %95, %41 : vector<32x128xf32>
    %97 = tpu.concatenate %93, %88, %96 in 1 : vector<32x128xf32>, vector<32x128xf32>, vector<32x128xf32> -> vector<32x384xf32>
    %cst_31 = arith.constant dense<0.000000e+00> : vector<32x128xf32>
    %98 = tpu.matmul %97, %90, %cst_31 {dimension_numbers = #tpu.dot_dimension_numbers<[1], [0], [0], [1], [0, 0, 1, 1], [], []>} : vector<32x384xf32>, vector<384x128xf32>, vector<32x128xf32> -> vector<32x128xf32>
    %cst_32 = arith.constant 1.000000e-01 : f32
    %99 = vector.broadcast %cst_32 : f32 to vector<32x128xf32>
    %100 = arith.mulf %99, %98 : vector<32x128xf32>
    %101 = arith.addf %76, %100 : vector<32x128xf32>
    %c0_33 = arith.constant 0 : index
    %c0_34 = arith.constant 0 : index
    %102 = vector.load %arg5[%c0_33, %c0_34] : memref<384x128xf32, #tpu.memory_space<vmem>>, vector<384x128xf32>
    %103 = vector.extract_strided_slice %101 {offsets = [0, 0], sizes = [31, 128], strides = [1, 1]} : vector<32x128xf32> to vector<31x128xf32>
    %104 = tpu.concatenate %0, %103 in 0 : vector<1x128xf32>, vector<31x128xf32> -> vector<32x128xf32>
    %105 = arith.mulf %104, %21 : vector<32x128xf32>
    %106 = vector.extract_strided_slice %101 {offsets = [1, 0], sizes = [31, 128], strides = [1, 1]} : vector<32x128xf32> to vector<31x128xf32>
    %107 = tpu.concatenate %106, %0 in 0 : vector<31x128xf32>, vector<1x128xf32> -> vector<32x128xf32>
    %108 = arith.mulf %107, %41 : vector<32x128xf32>
    %109 = tpu.concatenate %105, %101, %108 in 1 : vector<32x128xf32>, vector<32x128xf32>, vector<32x128xf32> -> vector<32x384xf32>
    %cst_35 = arith.constant dense<0.000000e+00> : vector<32x128xf32>
    %110 = tpu.matmul %109, %102, %cst_35 {dimension_numbers = #tpu.dot_dimension_numbers<[1], [0], [0], [1], [0, 0, 1, 1], [], []>} : vector<32x384xf32>, vector<384x128xf32>, vector<32x128xf32> -> vector<32x128xf32>
    %111 = vector.extract_strided_slice %110 {offsets = [0, 0], sizes = [1, 128], strides = [1, 1]} : vector<32x128xf32> to vector<1x128xf32>
    %112 = vector.extract_strided_slice %110 {offsets = [1, 0], sizes = [1, 128], strides = [1, 1]} : vector<32x128xf32> to vector<1x128xf32>
    %113 = vector.extract_strided_slice %110 {offsets = [2, 0], sizes = [1, 128], strides = [1, 1]} : vector<32x128xf32> to vector<1x128xf32>
    %114 = vector.extract_strided_slice %110 {offsets = [3, 0], sizes = [1, 128], strides = [1, 1]} : vector<32x128xf32> to vector<1x128xf32>
    %115 = vector.extract_strided_slice %110 {offsets = [4, 0], sizes = [1, 128], strides = [1, 1]} : vector<32x128xf32> to vector<1x128xf32>
    %116 = vector.extract_strided_slice %110 {offsets = [5, 0], sizes = [1, 128], strides = [1, 1]} : vector<32x128xf32> to vector<1x128xf32>
    %117 = vector.extract_strided_slice %110 {offsets = [6, 0], sizes = [1, 128], strides = [1, 1]} : vector<32x128xf32> to vector<1x128xf32>
    %118 = vector.extract_strided_slice %110 {offsets = [7, 0], sizes = [1, 128], strides = [1, 1]} : vector<32x128xf32> to vector<1x128xf32>
    %119 = vector.extract_strided_slice %110 {offsets = [8, 0], sizes = [1, 128], strides = [1, 1]} : vector<32x128xf32> to vector<1x128xf32>
    %120 = vector.extract_strided_slice %110 {offsets = [9, 0], sizes = [1, 128], strides = [1, 1]} : vector<32x128xf32> to vector<1x128xf32>
    %121 = vector.extract_strided_slice %110 {offsets = [10, 0], sizes = [1, 128], strides = [1, 1]} : vector<32x128xf32> to vector<1x128xf32>
    %122 = vector.extract_strided_slice %110 {offsets = [11, 0], sizes = [1, 128], strides = [1, 1]} : vector<32x128xf32> to vector<1x128xf32>
    %123 = vector.extract_strided_slice %110 {offsets = [12, 0], sizes = [1, 128], strides = [1, 1]} : vector<32x128xf32> to vector<1x128xf32>
    %124 = vector.extract_strided_slice %110 {offsets = [13, 0], sizes = [1, 128], strides = [1, 1]} : vector<32x128xf32> to vector<1x128xf32>
    %125 = vector.extract_strided_slice %110 {offsets = [14, 0], sizes = [1, 128], strides = [1, 1]} : vector<32x128xf32> to vector<1x128xf32>
    %126 = vector.extract_strided_slice %110 {offsets = [15, 0], sizes = [1, 128], strides = [1, 1]} : vector<32x128xf32> to vector<1x128xf32>
    %127 = tpu.concatenate %111, %112, %113, %114, %115, %116, %117, %118, %119, %120, %121, %122, %123, %124, %125, %126 in 1 : vector<1x128xf32>, vector<1x128xf32>, vector<1x128xf32>, vector<1x128xf32>, vector<1x128xf32>, vector<1x128xf32>, vector<1x128xf32>, vector<1x128xf32>, vector<1x128xf32>, vector<1x128xf32>, vector<1x128xf32>, vector<1x128xf32>, vector<1x128xf32>, vector<1x128xf32>, vector<1x128xf32>, vector<1x128xf32> -> vector<1x2048xf32>
    %128 = vector.extract_strided_slice %110 {offsets = [16, 0], sizes = [1, 128], strides = [1, 1]} : vector<32x128xf32> to vector<1x128xf32>
    %129 = vector.extract_strided_slice %110 {offsets = [17, 0], sizes = [1, 128], strides = [1, 1]} : vector<32x128xf32> to vector<1x128xf32>
    %130 = vector.extract_strided_slice %110 {offsets = [18, 0], sizes = [1, 128], strides = [1, 1]} : vector<32x128xf32> to vector<1x128xf32>
    %131 = vector.extract_strided_slice %110 {offsets = [19, 0], sizes = [1, 128], strides = [1, 1]} : vector<32x128xf32> to vector<1x128xf32>
    %132 = vector.extract_strided_slice %110 {offsets = [20, 0], sizes = [1, 128], strides = [1, 1]} : vector<32x128xf32> to vector<1x128xf32>
    %133 = vector.extract_strided_slice %110 {offsets = [21, 0], sizes = [1, 128], strides = [1, 1]} : vector<32x128xf32> to vector<1x128xf32>
    %134 = vector.extract_strided_slice %110 {offsets = [22, 0], sizes = [1, 128], strides = [1, 1]} : vector<32x128xf32> to vector<1x128xf32>
    %135 = vector.extract_strided_slice %110 {offsets = [23, 0], sizes = [1, 128], strides = [1, 1]} : vector<32x128xf32> to vector<1x128xf32>
    %136 = vector.extract_strided_slice %110 {offsets = [24, 0], sizes = [1, 128], strides = [1, 1]} : vector<32x128xf32> to vector<1x128xf32>
    %137 = vector.extract_strided_slice %110 {offsets = [25, 0], sizes = [1, 128], strides = [1, 1]} : vector<32x128xf32> to vector<1x128xf32>
    %138 = vector.extract_strided_slice %110 {offsets = [26, 0], sizes = [1, 128], strides = [1, 1]} : vector<32x128xf32> to vector<1x128xf32>
    %139 = vector.extract_strided_slice %110 {offsets = [27, 0], sizes = [1, 128], strides = [1, 1]} : vector<32x128xf32> to vector<1x128xf32>
    %140 = vector.extract_strided_slice %110 {offsets = [28, 0], sizes = [1, 128], strides = [1, 1]} : vector<32x128xf32> to vector<1x128xf32>
    %141 = vector.extract_strided_slice %110 {offsets = [29, 0], sizes = [1, 128], strides = [1, 1]} : vector<32x128xf32> to vector<1x128xf32>
    %142 = vector.extract_strided_slice %110 {offsets = [30, 0], sizes = [1, 128], strides = [1, 1]} : vector<32x128xf32> to vector<1x128xf32>
    %143 = vector.extract_strided_slice %110 {offsets = [31, 0], sizes = [1, 128], strides = [1, 1]} : vector<32x128xf32> to vector<1x128xf32>
    %144 = tpu.concatenate %128, %129, %130, %131, %132, %133, %134, %135, %136, %137, %138, %139, %140, %141, %142, %143 in 1 : vector<1x128xf32>, vector<1x128xf32>, vector<1x128xf32>, vector<1x128xf32>, vector<1x128xf32>, vector<1x128xf32>, vector<1x128xf32>, vector<1x128xf32>, vector<1x128xf32>, vector<1x128xf32>, vector<1x128xf32>, vector<1x128xf32>, vector<1x128xf32>, vector<1x128xf32>, vector<1x128xf32>, vector<1x128xf32> -> vector<1x2048xf32>
    %145 = tpu.concatenate %127, %144 in 0 : vector<1x2048xf32>, vector<1x2048xf32> -> vector<2x2048xf32>
    %c0_36 = arith.constant 0 : index
    %c0_37 = arith.constant 0 : index
    %146 = vector.load %arg6[%c0_36, %c0_37] : memref<2048x32xf32, #tpu.memory_space<vmem>>, vector<2048x32xf32>
    %cst_38 = arith.constant dense<0.000000e+00> : vector<2x32xf32>
    %147 = tpu.matmul %145, %146, %cst_38 {dimension_numbers = #tpu.dot_dimension_numbers<[1], [0], [0], [1], [0, 0, 1, 1], [], []>} : vector<2x2048xf32>, vector<2048x32xf32>, vector<2x32xf32> -> vector<2x32xf32>
    %c0_39 = arith.constant 0 : index
    %c0_40 = arith.constant 0 : index
    %148 = vector.load %arg7[%c0_39, %c0_40] : memref<1x32xf32, #tpu.memory_space<vmem>>, vector<1x32xf32>
    %149 = vector.broadcast %148 : vector<1x32xf32> to vector<2x32xf32>
    %150 = arith.addf %147, %149 : vector<2x32xf32>
    %151 = vector.extract_strided_slice %150 {offsets = [0, 0], sizes = [2, 16], strides = [1, 1]} : vector<2x32xf32> to vector<2x16xf32>
    %152 = vector.extract_strided_slice %150 {offsets = [0, 16], sizes = [2, 16], strides = [1, 1]} : vector<2x32xf32> to vector<2x16xf32>
    %153 = math.exp %152 : vector<2x16xf32>
    %c0_41 = arith.constant 0 : index
    %c0_42 = arith.constant 0 : index
    %154 = vector.load %arg8[%c0_41, %c0_42] : memref<2x16xf32, #tpu.memory_space<vmem>>, vector<2x16xf32>
    %155 = arith.mulf %153, %154 : vector<2x16xf32>
    %156 = arith.addf %151, %155 : vector<2x16xf32>
    %157 = tpu.concatenate %156, %151, %153 in 1 : vector<2x16xf32>, vector<2x16xf32>, vector<2x16xf32> -> vector<2x48xf32>
    %c0_43 = arith.constant 0 : index
    %c0_44 = arith.constant 0 : index
    %158 = vector.load %arg9[%c0_43, %c0_44] : memref<2x48xf32, #tpu.memory_space<vmem>>, vector<2x48xf32>
    tpu.vector_store %arg9[%c0_43, %c0_44], %157 {strides = array<i32>} : memref<2x48xf32, #tpu.memory_space<vmem>>, vector<2x48xf32>,
    return
  }
  func.func @transform_0(%arg0: i32) -> (i32, i32) {
    %c0_i32 = arith.constant 0 : i32
    %c0_i32_0 = arith.constant 0 : i32
    %c0_i32_1 = arith.constant 0 : i32
    return %c0_i32, %c0_i32_0 : i32, i32
  }
  func.func @transform_1(%arg0: i32) -> (i32, i32) {
    %c0_i32 = arith.constant 0 : i32
    %c0_i32_0 = arith.constant 0 : i32
    %c0_i32_1 = arith.constant 0 : i32
    return %c0_i32, %c0_i32_0 : i32, i32
  }
  func.func @transform_2(%arg0: i32) -> (i32, i32, i32) {
    %c0_i32 = arith.constant 0 : i32
    %c0_i32_0 = arith.constant 0 : i32
    %c0_i32_1 = arith.constant 0 : i32
    %c0_i32_2 = arith.constant 0 : i32
    return %c0_i32, %c0_i32_0, %c0_i32_1 : i32, i32, i32
  }
  func.func @transform_3(%arg0: i32) -> (i32, i32, i32) {
    %c0_i32 = arith.constant 0 : i32
    %c0_i32_0 = arith.constant 0 : i32
    %c0_i32_1 = arith.constant 0 : i32
    %c0_i32_2 = arith.constant 0 : i32
    return %c0_i32, %c0_i32_0, %c0_i32_1 : i32, i32, i32
  }
  func.func @transform_4(%arg0: i32) -> (i32, i32) {
    %c0_i32 = arith.constant 0 : i32
    %c0_i32_0 = arith.constant 0 : i32
    %c0_i32_1 = arith.constant 0 : i32
    return %c0_i32, %c0_i32_0 : i32, i32
  }
  func.func @transform_5(%arg0: i32) -> (i32, i32) {
    %c0_i32 = arith.constant 0 : i32
    %c0_i32_0 = arith.constant 0 : i32
    %c0_i32_1 = arith.constant 0 : i32
    return %c0_i32, %c0_i32_0 : i32, i32
  }
  func.func @transform_6(%arg0: i32) -> (i32, i32) {
    %c0_i32 = arith.constant 0 : i32
    %c0_i32_0 = arith.constant 0 : i32
    %c0_i32_1 = arith.constant 0 : i32
    return %c0_i32, %c0_i32_0 : i32, i32
  }
  func.func @transform_7(%arg0: i32) -> (i32, i32) {
    %c0_i32 = arith.constant 0 : i32
    %c0_i32_0 = arith.constant 0 : i32
    %c0_i32_1 = arith.constant 0 : i32
    return %c0_i32, %c0_i32_0 : i32, i32
  }
  func.func @transform_8(%arg0: i32) -> (i32, i32) {
    %c0_i32 = arith.constant 0 : i32
    %c0_i32_0 = arith.constant 0 : i32
    %c0_i32_1 = arith.constant 0 : i32
    return %c0_i32, %c0_i32_0 : i32, i32
  }
}

</mosaic_0001>

<bundles_post_ra>
// kernel: tpu_custom_call.1
= control target key start
LH: loop header
LB: loop body
LE: loop exit
PB: predicated region body
PF: predicated region fallthrough
CT: control target
= control target key end

     0   :  { %v30_v37 = vlaneseq  ;;  %vm180_vm0 = vcmask 1046528   ;;  %vm163_vm2 = vcmask 1040384   ;;  %s6304_s0 = inlined_call_operand.vmem [shape: f32[32,128], index: 0, kind: input, shape index: {}]   ;;  %s6305_s1 = inlined_call_operand.vmem [shape: f32[384,128], index: 1, kind: input, shape index: {}]   ;;  %s6306_s2 = inlined_call_operand.vmem [shape: f32[2,384,128], index: 2, kind: input, shape index: {}]   ;;  %s6307_s3 = inlined_call_operand.vmem [shape: f32[2,384,128], index: 3, kind: input, shape index: {}]   ;;  %s6308_s4 = inlined_call_operand.vmem [shape: f32[384,128], index: 4, kind: input, shape index: {}]   ;;  %s6309_s5 = inlined_call_operand.vmem [shape: f32[2048,32], index: 5, kind: input, shape index: {}]   ;;  %s6310_s6 = inlined_call_operand.vmem [shape: f32[1,32], index: 6, kind: input, shape index: {}]   ;;  %s6311_s7 = inlined_call_operand.vmem [shape: f32[2,16], index: 7, kind: input, shape index: {}]   ;;  %s6312_s8 = inlined_call_operand.hbm [shape: f32[2,48], index: 8, kind: output, shape index: {}]  }
   0x1   :  { %v127_v0 = vld [vmem:[%s6305_s1 + $0x80] sm:$0xff]  ;;  %v128_v1 = vld [vmem:[%s6305_s1 + $0x88] sm:$0xff]  ;;  %v129_v9 = vld [vmem:[%s6305_s1 + $0x90] sm:$0xff] }
   0x2   :  { %v111_v2 = vld [vmem:[%s6305_s1] sm:$0xff]  ;;  %v3624_v3 = vpack.c.bf16 %v128_v1, %v127_v0  ;;  %v112_v4 = vld [vmem:[%s6305_s1 + $0x8] sm:$0xff]  ;;  %v130_v10 = vld [vmem:[%s6305_s1 + $0x98] sm:$0xff]  ;;  %v31_v47 = vshrl.u32 %v30_v37, 7 }
   0x3   :  { %v143_v5 = vld [vmem:[%s6305_s1 + $0x100] sm:$0xff]  ;;  %v144_v6 = vld [vmem:[%s6305_s1 + $0x108] sm:$0xff]  ;;  %v3626_v7 = vpack.c.bf16 %v112_v4, %v111_v2  ;;  %v113_v11 = vld [vmem:[%s6305_s1 + $0x10] sm:$0xff]  ;;  %v3628_v12 = vpack.c.bf16 %v130_v10, %v129_v9 }
   0x4   :  { %v3656_v8 = vpack.c.bf16 %v144_v6, %v143_v5  ;;  %3625 = vmatprep.subr.bf16.mxu0 %v3624_v3  ;;  %v114_v13 = vld [vmem:[%s6305_s1 + $0x18] sm:$0xff]  ;;  %v145_v14 = vld [vmem:[%s6305_s1 + $0x110] sm:$0xff]  ;;  %v131_v18 = vld [vmem:[%s6305_s1 + $0xa0] sm:$0xff]  ;;  %v32_v61 = vadd.s32 8, %v31_v47  ;;  %v39_v5 = vand.u32 15, %v31_v47 }
   0x5   :  { %v146_v15 = vld [vmem:[%s6305_s1 + $0x118] sm:$0xff]  ;;  %3627 = vmatpush3.bf16.msra.mxu0 %v3626_v7  ;;  %v3630_v16 = vpack.c.bf16 %v114_v13, %v113_v11  ;;  %v132_v19 = vld [vmem:[%s6305_s1 + $0xa8] sm:$0xff]  ;;  %v115_v20 = vld [vmem:[%s6305_s1 + $0x20] sm:$0xff]  ;;  %v34_v11 = vadd.s32 24, %v31_v47 }
   0x6   :  { %3657 = vmatprep.subr.bf16.mxu1 %v3656_v8  ;;  %v3660_v17 = vpack.c.bf16 %v146_v15, %v145_v14  ;;  %3629 = vmatprep.subr.bf16.mxu0 %v3628_v12  ;;  %v3632_v21 = vpack.c.bf16 %v132_v19, %v131_v18  ;;  %v116_v22 = vld [vmem:[%s6305_s1 + $0x28] sm:$0xff]  ;;  %v147_v23 = vld [vmem:[%s6305_s1 + $0x120] sm:$0xff]  ;;  %v133_v26 = vld [vmem:[%s6305_s1 + $0xb0] sm:$0xff]  ;;  %v46_v9 = vand.u32 15, %v32_v61  ;;  %vm83_vm1 = vcmp.ne.s32.totalorder %v39_v5, 0 }
   0x7   :  { %3659 = vmatpush3.bf16.msra.mxu1 %v3656_v8  ;;  %v148_v24 = vld [vmem:[%s6305_s1 + $0x128] sm:$0xff]  ;;  %v134_v27 = vld [vmem:[%s6305_s1 + $0xb8] sm:$0xff]  ;;  %v149_v28 = vld [vmem:[%s6305_s1 + $0x130] sm:$0xff]  ;;  %v3634_v30 = vpack.c.bf16 %v116_v22, %v115_v20 }
   0x8   :  { %3661 = vmatprep.subr.bf16.mxu1 %v3660_v17  ;;  %v3664_v25 = vpack.c.bf16 %v148_v24, %v147_v23  ;;  %v150_v29 = vld [vmem:[%s6305_s1 + $0x138] sm:$0xff]  ;;  %v3636_v31 = vpack.c.bf16 %v134_v27, %v133_v26  ;;  %v117_v32 = vld [vmem:[%s6305_s1 + $0x30] sm:$0xff]  ;;  %v135_v35 = vld [vmem:[%s6305_s1 + $0xc0] sm:$0xff]  ;;  %vm4508_vm3 = vcmp.ne.s32.totalorder %v46_v9, 15  ;;  %v60_v24 = vand.u32 15, %v34_v11 }
   0x9   :  { %3631 = vmatpush3.bf16.msra.mxu0 %v3630_v16  ;;  %v118_v33 = vld [vmem:[%s6305_s1 + $0x38] sm:$0xff]  ;;  %v3668_v34 = vpack.c.bf16 %v150_v29, %v149_v28  ;;  %v136_v36 = vld [vmem:[%s6305_s1 + $0xc8] sm:$0xff]  ;;  %v151_v38 = vld [vmem:[%s6305_s1 + $0x140] sm:$0xff]  ;;  %v33_v16 = vadd.s32 16, %v31_v47 }
   0xa   :  { %3633 = vmatprep.subr.bf16.mxu0 %v3632_v21  ;;  %v152_v39 = vld [vmem:[%s6305_s1 + $0x148] sm:$0xff]  ;;  %v3638_v40 = vpack.c.bf16 %v118_v33, %v117_v32  ;;  %v3640_v41 = vpack.c.bf16 %v136_v36, %v135_v35  ;;  %v119_v42 = vld [vmem:[%s6305_s1 + $0x40] sm:$0xff]  ;;  %v137_v45 = vld [vmem:[%s6305_s1 + $0xd0] sm:$0xff] }
   0xb   :  { %3663 = vmatpush3.bf16.msra.mxu1 %v3660_v17  ;;  %v120_v43 = vld [vmem:[%s6305_s1 + $0x48] sm:$0xff]  ;;  %v3672_v44 = vpack.c.bf16 %v152_v39, %v151_v38  ;;  %v138_v46 = vld [vmem:[%s6305_s1 + $0xd8] sm:$0xff]  ;;  %v153_v48 = vld [vmem:[%s6305_s1 + $0x150] sm:$0xff]  ;;  %v53_v33 = vand.u32 15, %v33_v16 }
   0xc   :  { %3665 = vmatprep.subr.bf16.mxu1 %v3664_v25  ;;  %v154_v49 = vld [vmem:[%s6305_s1 + $0x158] sm:$0xff]  ;;  %v3642_v50 = vpack.c.bf16 %v120_v43, %v119_v42  ;;  %v4448_v51 = vld [vmem:[%s6304_s0] sm:$0xff]  ;;  %v4453_v52 = vld [vmem:[%s6304_s0 + $0x8] sm:$0xff]  ;;  %v3644_v53 = vpack.c.bf16 %v138_v46, %v137_v45 }
   0xd   :  { %3635 = vmatpush3.bf16.msra.mxu0 %v3634_v30  ;;  %v121_v54 = vld [vmem:[%s6305_s1 + $0x50] sm:$0xff]  ;;  %v122_v55 = vld [vmem:[%s6305_s1 + $0x58] sm:$0xff]  ;;  %v181_v56 = vrot.slane %v4448_v51, 1  ;;  %v182_v57 = vrot.slane %v4453_v52, 1  ;;  %v3676_v58 = vpack.c.bf16 %v154_v49, %v153_v48  ;;  %v139_v59 = vld [vmem:[%s6305_s1 + $0xe0] sm:$0xff]  ;;  %261 = vmatprep.mubr.f32.mxu0 %v4448_v51  ;;  %v164_v15 = vrot.slane %v4448_v51, 7 }
   0xe   :  { %3637 = vmatprep.subr.bf16.mxu0 %v3636_v31  ;;  %v140_v60 = vld [vmem:[%s6305_s1 + $0xe8] sm:$0xff]  ;;  %v155_v62 = vld [vmem:[%s6305_s1 + $0x160] sm:$0xff]  ;;  %v3646_v1 = vpack.c.bf16 %v122_v55, %v121_v54  ;;  %v141_v7 = vld [vmem:[%s6305_s1 + $0xf0] sm:$0xff]  ;;  %v4294_v30 = vmov 0.0  }
   0xf   :  { %3667 = vmatpush3.bf16.msra.mxu1 %v3664_v25  ;;  %v156_v63 = vld [vmem:[%s6305_s1 + $0x168] sm:$0xff]  ;;  %v183_v0 = vsel %vm180_vm0, %v181_v56, %v182_v57  ;;  %v3648_v2 = vpack.c.bf16 %v140_v60, %v139_v59  ;;  %v123_v3 = vld [vmem:[%s6305_s1 + $0x60] sm:$0xff]  ;;  %v142_v8 = vld [vmem:[%s6305_s1 + $0xf8] sm:$0xff]  ;;  %v4529_v31 = vsel %vm83_vm1, 1.0, %v4294_v30  ;;  %v175_v32 = vsel %vm163_vm2, 0.0, %v164_v15 }
  0x10   :  { %3669 = vmatprep.subr.bf16.mxu1 %v3668_v34  ;;  %3428 = vmatprep.mubr.f32.mxu1 %v183_v0  ;;  %v124_v4 = vld [vmem:[%s6305_s1 + $0x68] sm:$0xff]  ;;  %v3680_v6 = vpack.c.bf16 %v156_v63, %v155_v62  ;;  %v4492_v10 = vld [vmem:[%s6304_s0 + $0x10] sm:$0xff]  ;;  %v158_v13 = vld [vmem:[%s6305_s1 + $0x178] sm:$0xff]  ;;  %v3652_v17 = vpack.c.bf16 %v142_v8, %v141_v7 }
  0x11   :  { %3639 = vmatpush3.bf16.msra.mxu0 %v3638_v40  ;;  %v157_v12 = vld [vmem:[%s6305_s1 + $0x170] sm:$0xff]  ;;  %v3650_v14 = vpack.c.bf16 %v124_v4, %v123_v3  ;;  %v126_v19 = vld [vmem:[%s6305_s1 + $0x78] sm:$0xff]  ;;  %v184_v20 = vrot.slane %v4492_v10, 1  ;;  %v383_v25 = vld [vmem:[%s6306_s2 + $0x80] sm:$0xff] }
  0x12   :  { %3641 = vmatprep.subr.bf16.mxu0 %v3640_v41  ;;  %v125_v18 = vld [vmem:[%s6305_s1 + $0x70] sm:$0xff]  ;;  %v3684_v21 = vpack.c.bf16 %v158_v13, %v157_v12  ;;  %v4515_v23 = vld [vmem:[%s6304_s0 + $0x18] sm:$0xff]  ;;  %v384_v26 = vld [vmem:[%s6306_s2 + $0x88] sm:$0xff] }
  0x13   :  { %3671 = vmatpush3.bf16.msra.mxu1 %v3668_v34  ;;  %v399_v27 = vld [vmem:[%s6306_s2 + $0x100] sm:$0xff]  ;;  %v400_v28 = vld [vmem:[%s6306_s2 + $0x108] sm:$0xff]  ;;  %v3654_v29 = vpack.c.bf16 %v126_v19, %v125_v18 }
  0x14   :  { %3673 = vmatprep.subr.bf16.mxu1 %v3672_v44 }
  0x15   :  { %3643 = vmatpush3.bf16.msra.mxu0 %v3642_v50 }
  0x16   :  { %3645 = vmatprep.subr.bf16.mxu0 %v3644_v53 }
  0x17   :  { %3675 = vmatpush3.bf16.msra.mxu1 %v3672_v44 }
  0x18   :  { %3677 = vmatprep.subr.bf16.mxu1 %v3676_v58 }
  0x19   :  { %3647 = vmatpush3.bf16.msra.mxu0 %v3646_v1 }
  0x1a   :  { %3649 = vmatprep.subr.bf16.mxu0 %v3648_v2 }
  0x1b   :  { %3679 = vmatpush3.bf16.msra.mxu1 %v3676_v58 }
  0x1c   :  { %3681 = vmatprep.subr.bf16.mxu1 %v3680_v6 }
  0x1d   :  { %3651 = vmatpush3.bf16.msra.mxu0 %v3650_v14 }
  0x1e   :  { %13 = vsyncpa [#allocation3], 0  ;;  %3653 = vmatprep.subr.bf16.mxu0 %v3652_v17  ;;  %v4536_v34 = vsel %vm4508_vm3, 1.0, %v4294_v30  ;;  %v185_v35 = vsel %vm180_vm0, %v182_v57, %v184_v20  ;;  %v186_v36 = vrot.slane %v4515_v23, 1  ;;  %v3688_v37 = vpack.c.bf16 %v384_v26, %v383_v25  ;;  %v367_v38 = vld [vmem:[%s6306_s2] sm:$0xff]  ;;  %v368_v39 = vld [vmem:[%s6306_s2 + $0x8] sm:$0xff] }
  0x1f   :  { %3683 = vmatpush3.bf16.msra.mxu1 %v3680_v6  ;;  %vm98_vm4 = vcmp.ne.s32.totalorder %v60_v24, 15  ;;  %v3720_v40 = vpack.c.bf16 %v400_v28, %v399_v27  ;;  %v176_v41 = vmul.f32 %v4529_v31, %v175_v32  ;;  %v385_v42 = vld [vmem:[%s6306_s2 + $0x90] sm:$0xff]  ;;  %v386_v43 = vld [vmem:[%s6306_s2 + $0x98] sm:$0xff]  ;;  %v194_v44 = vmul.f32 %v4536_v34, %v185_v35  ;;  %v387_v59 = vld [vmem:[%s6306_s2 + $0xa0] sm:$0xff]  ;;  %s4295_s26 = smov 16  }
  0x20   :  { %3685 = vmatprep.subr.bf16.mxu1 %v3684_v21  ;;  %v165_v45 = vrot.slane %v4453_v52, 7  ;;  %v167_v46 = vrot.slane %v4492_v10, 7  ;;  %v401_v47 = vld [vmem:[%s6306_s2 + $0x110] sm:$0xff]  ;;  %v402_v48 = vld [vmem:[%s6306_s2 + $0x118] sm:$0xff]  ;;  %vm4562_vm5 = vcmp.ne.s32.totalorder %v53_v33, 0  ;;  %v4566_v50 = vsel %vm98_vm4, 1.0, %v4294_v30 }
  0x21   :  { %3655 = vmatpush3.bf16.msra.mxu0 %v3654_v29  ;;  %v192_v53 = vsel %vm180_vm0, %v186_v36, 0.0  ;;  %v3690_v54 = vpack.c.bf16 %v368_v39, %v367_v38  ;;  %v187_v55 = vsel %vm180_vm0, %v184_v20, %v186_v36  ;;  %v3692_v56 = vpack.c.bf16 %v386_v43, %v385_v42  ;;  %v369_v57 = vld [vmem:[%s6306_s2 + $0x10] sm:$0xff]  ;;  %v370_v58 = vld [vmem:[%s6306_s2 + $0x18] sm:$0xff]  ;;  %v388_v60 = vld [vmem:[%s6306_s2 + $0xa8] sm:$0xff] }
  0x22   :  { %3689 = vmatprep.subr.bf16.mxu0 %v3688_v37  ;;  %v3724_v61 = vpack.c.bf16 %v402_v48, %v401_v47  ;;  %v166_v62 = vsel %vm163_vm2, %v164_v15, %v165_v45  ;;  %v4588_v63 = vsel %vm4562_vm5, 1.0, %v4294_v30  ;;  %v168_v0 = vsel %vm163_vm2, %v165_v45, %v167_v46  ;;  %v403_v2 = vld [vmem:[%s6306_s2 + $0x120] sm:$0xff]  ;;  %v372_v5 = vld [vmem:[%s6306_s2 + $0x28] sm:$0xff]  ;;  %v389_v7 = vld [vmem:[%s6306_s2 + $0xb0] sm:$0xff] }
  0x23   :  { %3687 = vmatpush3.bf16.msra.mxu1 %v3684_v21  ;;  %v196_v1 = vmul.f32 %v4566_v50, %v192_v53  ;;  %v3694_v51 = vpack.c.bf16 %v370_v58, %v369_v57  ;;  %v3696_v3 = vpack.c.bf16 %v388_v60, %v387_v59  ;;  %v371_v4 = vld [vmem:[%s6306_s2 + $0x20] sm:$0xff]  ;;  %v178_v6 = vmul.f32 %v4588_v63, %v168_v0  ;;  %v390_v8 = vld [vmem:[%s6306_s2 + $0xb8] sm:$0xff]  ;;  %v405_v12 = vld [vmem:[%s6306_s2 + $0x130] sm:$0xff] }
  0x24   :  { %3721 = vmatprep.subr.bf16.mxu1 %v3720_v40  ;;  %262 = vmatmul.mubr.f32.vlgmr.msra.gmra.mrb[0].mxu0 %v176_v41  ;;  %v169_v11 = vrot.slane %v4515_v23, 7  ;;  %v406_v13 = vld [vmem:[%s6306_s2 + $0x138] sm:$0xff]  ;;  %v3698_v14 = vpack.c.bf16 %v372_v5, %v371_v4  ;;  %v3700_v15 = vpack.c.bf16 %v390_v8, %v389_v7  ;;  %v373_v16 = vld [vmem:[%s6306_s2 + $0x30] sm:$0xff]  ;;  %v391_v17 = vld [vmem:[%s6306_s2 + $0xc0] sm:$0xff]  ;;  %vm2599_vm6 = vcmask 130048  }
  0x25   :  { %266 = vmatprep.mubr.f32.mxu0 %v4453_v52  ;;  %v404_v52 = vld [vmem:[%s6306_s2 + $0x128] sm:$0xff]  ;;  %3691 = vmatpush3.bf16.msra.mxu0 %v3690_v54  ;;  %v3732_v19 = vpack.c.bf16 %v406_v13, %v405_v12  ;;  %v375_v24 = vld [vmem:[%s6306_s2 + $0x40] sm:$0xff]  ;;  %v394_v26 = vld [vmem:[%s6306_s2 + $0xd8] sm:$0xff]  ;;  %vm2601_vm7 = vcmask 261120   ;;  %vm2603_vm8 = vcmask 386048  }
  0x26   :  { %3429 = vmatmul.mubr.f32.vlgmr.msra.gmra.mrb[0].mxu1 %v194_v44  ;;  %3693 = vmatprep.subr.bf16.mxu0 %v3692_v56  ;;  %v3728_v9 = vpack.c.bf16 %v404_v52, %v403_v2  ;;  %v392_v18 = vld [vmem:[%s6306_s2 + $0xc8] sm:$0xff]  ;;  %v170_v20 = vsel %vm163_vm2, %v167_v46, %v169_v11  ;;  %v377_v29 = vld [vmem:[%s6306_s2 + $0x50] sm:$0xff]  ;;  %v378_v30 = vld [vmem:[%s6306_s2 + $0x58] sm:$0xff] }
  0x27   :  { %3431 = vmatprep.mubr.f32.mxu1 %v187_v55  ;;  %3723 = vmatpush3.bf16.msra.mxu1 %v3720_v40  ;;  %v3704_v22 = vpack.c.bf16 %v392_v18, %v391_v17  ;;  %v376_v25 = vld [vmem:[%s6306_s2 + $0x48] sm:$0xff]  ;;  %v3710_v32 = vpack.c.bf16 %v378_v30, %v377_v29  ;;  %v395_v33 = vld [vmem:[%s6306_s2 + $0xe0] sm:$0xff]  ;;  %v397_v43 = vld [vmem:[%s6306_s2 + $0xf0] sm:$0xff] }
  0x28   :  { %267 = vmatmul.mubr.f32.gmra.mrb[2].mxu0 %v166_v62  ;;  %3725 = vmatprep.subr.bf16.mxu1 %v3724_v61  ;;  %v3706_v27 = vpack.c.bf16 %v376_v25, %v375_v24  ;;  %v396_v35 = vld [vmem:[%s6306_s2 + $0xe8] sm:$0xff]  ;;  %v407_v36 = vld [vmem:[%s6306_s2 + $0x140] sm:$0xff]  ;;  %v398_v44 = vld [vmem:[%s6306_s2 + $0xf8] sm:$0xff] }
  0x29   :  { %271 = vmatprep.mubr.f32.mxu0 %v4492_v10  ;;  %3695 = vmatpush3.bf16.msra.mxu0 %v3694_v51  ;;  %v374_v10 = vld [vmem:[%s6306_s2 + $0x38] sm:$0xff]  ;;  %v3712_v37 = vpack.c.bf16 %v396_v35, %v395_v33  ;;  %v408_v38 = vld [vmem:[%s6306_s2 + $0x148] sm:$0xff]  ;;  %v379_v39 = vld [vmem:[%s6306_s2 + $0x60] sm:$0xff]  ;;  %v3716_v46 = vpack.c.bf16 %v398_v44, %v397_v43 }
  0x2a   :  { %3432 = vmatmul.mubr.f32.gmra.mrb[2].mxu1 %v196_v1  ;;  %3697 = vmatprep.subr.bf16.mxu0 %v3696_v3  ;;  %v3702_v21 = vpack.c.bf16 %v374_v10, %v373_v16  ;;  %v380_v40 = vld [vmem:[%s6306_s2 + $0x68] sm:$0xff]  ;;  %v3736_v41 = vpack.c.bf16 %v408_v38, %v407_v36  ;;  %v409_v45 = vld [vmem:[%s6306_s2 + $0x150] sm:$0xff]  ;;  %v410_v47 = vld [vmem:[%s6306_s2 + $0x158] sm:$0xff] }
  0x2b   :  { %3727 = vmatpush3.bf16.msra.mxu1 %v3724_v61  ;;  %v3714_v42 = vpack.c.bf16 %v380_v40, %v379_v39  ;;  %v381_v48 = vld [vmem:[%s6306_s2 + $0x70] sm:$0xff]  ;;  %v382_v49 = vld [vmem:[%s6306_s2 + $0x78] sm:$0xff]  ;;  %v3740_v53 = vpack.c.bf16 %v410_v47, %v409_v45  ;;  %v411_v55 = vld [vmem:[%s6306_s2 + $0x160] sm:$0xff] }
  0x2c   :  { %272 = vmatmul.mubr.f32.gmra.mrb[4].mxu0 %v178_v6  ;;  %3729 = vmatprep.subr.bf16.mxu1 %v3728_v9  ;;  %v3718_v54 = vpack.c.bf16 %v382_v49, %v381_v48  ;;  %v412_v56 = vld [vmem:[%s6306_s2 + $0x168] sm:$0xff]  ;;  %v413_v58 = vld [vmem:[%s6306_s2 + $0x170] sm:$0xff]  ;;  %v414_v59 = vld [vmem:[%s6306_s2 + $0x178] sm:$0xff] }
  0x2d   :  { %276 = vmatprep.mubr.f32.mxu0 %v4515_v23  ;;  %3699 = vmatpush3.bf16.msra.mxu0 %v3698_v14  ;;  %v393_v23 = vld [vmem:[%s6306_s2 + $0xd0] sm:$0xff]  ;;  %v3744_v57 = vpack.c.bf16 %v412_v56, %v411_v55  ;;  %v3748_v60 = vpack.c.bf16 %v414_v59, %v413_v58  ;;  %v641_v61 = vld [vmem:[%s6307_s3 + $0x80] sm:$0xff]  ;;  %v642_v62 = vld [vmem:[%s6307_s3 + $0x88] sm:$0xff] }
  0x2e   :  { %3701 = vmatprep.subr.bf16.mxu0 %v3700_v15  ;;  %v3708_v28 = vpack.c.bf16 %v394_v26, %v393_v23  ;;  %v3752_v0 = vpack.c.bf16 %v642_v62, %v641_v61  ;;  %v657_v1 = vld [vmem:[%s6307_s3 + $0x100] sm:$0xff]  ;;  %v658_v2 = vld [vmem:[%s6307_s3 + $0x108] sm:$0xff]  ;;  %v643_v10 = vld [vmem:[%s6307_s3 + $0x90] sm:$0xff] }
  0x2f   :  { %3731 = vmatpush3.bf16.msra.mxu1 %v3728_v9  ;;  %v4711_v52 = vpack.c.bf16 %v658_v2, %v657_v1  ;;  %v625_v12 = vld [vmem:[%s6307_s3] sm:$0xff]  ;;  %v626_v13 = vld [vmem:[%s6307_s3 + $0x8] sm:$0xff]  ;;  %v644_v17 = vld [vmem:[%s6307_s3 + $0x98] sm:$0xff] }
  0x30   :  { %277 = vmatmul.mubr.f32.gmra.mrb[6].mxu0 %v170_v20  ;;  %3733 = vmatprep.subr.bf16.mxu1 %v3732_v19  ;;  %v3756_v25 = vpack.c.bf16 %v644_v17, %v643_v10  ;;  %v627_v23 = vld [vmem:[%s6307_s3 + $0x10] sm:$0xff]  ;;  %v628_v26 = vld [vmem:[%s6307_s3 + $0x18] sm:$0xff]  ;;  %v646_v33 = vld [vmem:[%s6307_s3 + $0xa8] sm:$0xff] }
  0x31   :  { %3703 = vmatpush3.bf16.msra.mxu0 %v3702_v21  ;;  %v3754_v21 = vpack.c.bf16 %v626_v13, %v625_v12  ;;  %v3758_v38 = vpack.c.bf16 %v628_v26, %v627_v23  ;;  %v659_v45 = vld [vmem:[%s6307_s3 + $0x110] sm:$0xff]  ;;  %v629_v47 = vld [vmem:[%s6307_s3 + $0x20] sm:$0xff]  ;;  %v630_v48 = vld [vmem:[%s6307_s3 + $0x28] sm:$0xff] }
  0x32   :  { %3705 = vmatprep.subr.bf16.mxu0 %v3704_v22  ;;  %v647_v58 = vld [vmem:[%s6307_s3 + $0xb0] sm:$0xff]  ;;  %v648_v59 = vld [vmem:[%s6307_s3 + $0xb8] sm:$0xff]  ;;  %v3762_v62 = vpack.c.bf16 %v630_v48, %v629_v47  ;;  %v662_v1 = vld [vmem:[%s6307_s3 + $0x128] sm:$0xff] }
  0x33   :  { %3735 = vmatpush3.bf16.msra.mxu1 %v3732_v19  ;;  %v650_v12 = vld [vmem:[%s6307_s3 + $0xc8] sm:$0xff]  ;;  %v663_v13 = vld [vmem:[%s6307_s3 + $0x130] sm:$0xff]  ;;  %v636_v26 = vld [vmem:[%s6307_s3 + $0x58] sm:$0xff] }
  0x34   :  { %3737 = vmatprep.subr.bf16.mxu1 %v3736_v41  ;;  %v634_v10 = vld [vmem:[%s6307_s3 + $0x48] sm:$0xff]  ;;  %v635_v23 = vld [vmem:[%s6307_s3 + $0x50] sm:$0xff]  ;;  %v640_v47 = vld [vmem:[%s6307_s3 + $0x78] sm:$0xff] }
  0x35   :  { %3707 = vmatpush3.bf16.msra.mxu0 %v3706_v27 }
  0x36   :  { %3709 = vmatprep.subr.bf16.mxu0 %v3708_v28 }
  0x37   :  { %3739 = vmatpush3.bf16.msra.mxu1 %v3736_v41 }
  0x38   :  { %3741 = vmatprep.subr.bf16.mxu1 %v3740_v53 }
  0x39   :  { %3711 = vmatpush3.bf16.msra.mxu0 %v3710_v32  ;;  %v645_v32 = vld [vmem:[%s6307_s3 + $0xa0] sm:$0xff] }
  0x3a   :  { %3713 = vmatprep.subr.bf16.mxu0 %v3712_v37  ;;  %v3760_v40 = vpack.c.bf16 %v646_v33, %v645_v32  ;;  %v667_v32 = vld [vmem:[%s6307_s3 + $0x150] sm:$0xff] }
  0x3b   :  { %3743 = vmatpush3.bf16.msra.mxu1 %v3740_v53 }
  0x3c   :  { %3745 = vmatprep.subr.bf16.mxu1 %v3744_v57 }
  0x3d   :  { %3715 = vmatpush3.bf16.msra.mxu0 %v3714_v42 }
  0x3e   :  { %3717 = vmatprep.subr.bf16.mxu0 %v3716_v46  ;;  %v660_v46 = vld [vmem:[%s6307_s3 + $0x118] sm:$0xff] }
  0x3f   :  { %3747 = vmatpush3.bf16.msra.mxu1 %v3744_v57  ;;  %v3788_v57 = vpack.c.bf16 %v660_v46, %v659_v45  ;;  %v670_v45 = vld [vmem:[%s6307_s3 + $0x168] sm:$0xff]  ;;  %v639_v46 = vld [vmem:[%s6307_s3 + $0x70] sm:$0xff] }
  0x40   :  { %3749 = vmatprep.subr.bf16.mxu1 %v3748_v60 }
  0x41   :  { %3719 = vmatpush3.bf16.msra.mxu0 %v3718_v54 }
  0x42   :  { %3753 = vmatprep.subr.bf16.mxu0 %v3752_v0  ;;  %v661_v0 = vld [vmem:[%s6307_s3 + $0x120] sm:$0xff] }
  0x43   :  { %3751 = vmatpush3.bf16.msra.mxu1 %v3748_v60 }
  0x44   :  { %3785 = vmatprep.subr.bf16.mxu1 %v4711_v52 }
  0xf7   :  { %v2764_v51 = vpop.f32.mrb[0].mxu0 }
  0xf8   :  { %v2765_v3 = vpop.f32.mrb[1].mxu0 }
  0xf9   :  { %v3430_v4 = vpop.f32.mrb[0].mxu1  ;;  %v2766_v5 = vadd.f32 %v2765_v3, %v2764_v51  ;;  %v3764_v3 = vpack.c.bf16 %v648_v59, %v647_v58  ;;  %v2640_v58 = vld [vmem:[%s6306_s2 + $0x208] sm:$0xff] }
  0xfa   :  { %v348_v6 = vpop.f32.mrb[1].mxu1 }
  0xfb   :  { %v4714_v7 = vadd.f32 %v2766_v5, %v348_v6  ;;  %v2767_v8 = vpop.f32.mrb[2].mxu0  ;;  %v3792_v5 = vpack.c.bf16 %v662_v1, %v661_v0 }
  0xfc   :  { %v2768_v9 = vpop.f32.mrb[3].mxu0 }
  0xfd   :  { %v3433_v11 = vpop.f32.mrb[2].mxu1  ;;  %v419_v14 = vrot.slane %v4714_v7, 7  ;;  %v2769_v15 = vadd.f32 %v2768_v9, %v2767_v8  ;;  %515 = vmatprep.mubr.f32.mxu0 %v4714_v7  ;;  %v435_v28 = vrot.slane %v4714_v7, 1  ;;  %v631_v8 = vld [vmem:[%s6307_s3 + $0x30] sm:$0xff] }
  0xfe   :  { %v358_v16 = vpop.f32.mrb[3].mxu1 }
  0xff   :  { %v430_v18 = vsel %vm163_vm2, 0.0, %v419_v14  ;;  %v4731_v19 = vadd.f32 %v3430_v4, %v2769_v15  ;;  %v2770_v20 = vpop.f32.mrb[4].mxu0  ;;  %v664_v15 = vld [vmem:[%s6307_s3 + $0x138] sm:$0xff] }
 0x100   :  { %v431_v22 = vmul.f32 %v4529_v31, %v430_v18  ;;  %v2771_v24 = vpop.f32.mrb[5].mxu0  ;;  %v3796_v17 = vpack.c.bf16 %v664_v15, %v663_v13 }
 0x101   :  { %v2772_v27 = vadd.f32 %v2771_v24, %v2770_v20  ;;  %v436_v29 = vrot.slane %v4731_v19, 1  ;;  %v420_v30 = vrot.slane %v4731_v19, 7  ;;  %v651_v20 = vld [vmem:[%s6307_s3 + $0xd0] sm:$0xff] }
 0x102   :  { %516 = vmatmul.mubr.f32.vlgmr.msra.gmra.mrb[8].mxu0 %v431_v22  ;;  %v665_v22 = vld [vmem:[%s6307_s3 + $0x140] sm:$0xff] }
 0x103   :  { %v4749_v35 = vadd.f32 %v2772_v27, %v358_v16  ;;  %v2773_v36 = vpop.f32.mrb[6].mxu0  ;;  %520 = vmatprep.mubr.f32.mxu0 %v4731_v19  ;;  %v437_v37 = vsel %vm180_vm0, %v435_v28, %v436_v29  ;;  %3755 = vmatpush3.bf16.msra.mxu0 %v3754_v21  ;;  %v421_v44 = vsel %vm163_vm2, %v419_v14, %v420_v30  ;;  %v633_v16 = vld [vmem:[%s6307_s3 + $0x40] sm:$0xff]  ;;  %v652_v21 = vld [vmem:[%s6307_s3 + $0xd8] sm:$0xff] }
 0x104   :  { %v2774_v39 = vpop.f32.mrb[7].mxu0  ;;  %3466 = vmatprep.mubr.f32.mxu1 %v437_v37  ;;  %3757 = vmatprep.subr.bf16.mxu0 %v3756_v25  ;;  %v3770_v18 = vpack.c.bf16 %v634_v10, %v633_v16  ;;  %v3772_v24 = vpack.c.bf16 %v652_v21, %v651_v20  ;;  %v666_v25 = vld [vmem:[%s6307_s3 + $0x148] sm:$0xff]  ;;  %v3774_v28 = vpack.c.bf16 %v636_v26, %v635_v23  ;;  %v637_v37 = vld [vmem:[%s6307_s3 + $0x60] sm:$0xff] }
 0x105   :  { %v422_v41 = vrot.slane %v4749_v35, 7  ;;  %v438_v42 = vrot.slane %v4749_v35, 1  ;;  %v2775_v43 = vadd.f32 %v2774_v39, %v2773_v36  ;;  %v3800_v27 = vpack.c.bf16 %v666_v25, %v665_v22  ;;  %v668_v36 = vld [vmem:[%s6307_s3 + $0x158] sm:$0xff]  ;;  %v2623_v10 = vld [vmem:[%s6306_s2 + $0x180] sm:$0xff] }
 0x106   :  { %521 = vmatmul.mubr.f32.gmra.mrb[10].mxu0 %v421_v44  ;;  %v3804_v39 = vpack.c.bf16 %v668_v36, %v667_v32 }
 0x107   :  { %v4768_v49 = vadd.f32 %v3433_v11, %v2775_v43  ;;  %v439_v53 = vsel %vm180_vm0, %v436_v29, %v438_v42  ;;  %525 = vmatprep.mubr.f32.mxu0 %v4749_v35  ;;  %v423_v54 = vsel %vm163_vm2, %v420_v30, %v422_v41  ;;  %3759 = vmatpush3.bf16.msra.mxu0 %v3758_v38  ;;  %v649_v11 = vld [vmem:[%s6307_s3 + $0xc0] sm:$0xff]  ;;  %v654_v30 = vld [vmem:[%s6307_s3 + $0xe8] sm:$0xff] }
 0x108   :  { %v448_v55 = vmul.f32 %v4536_v34, %v439_v53  ;;  %v433_v56 = vmul.f32 %v4588_v63, %v423_v54  ;;  %3761 = vmatprep.subr.bf16.mxu0 %v3760_v40  ;;  %v3768_v14 = vpack.c.bf16 %v650_v12, %v649_v11  ;;  %v653_v29 = vld [vmem:[%s6307_s3 + $0xe0] sm:$0xff]  ;;  %v638_v38 = vld [vmem:[%s6307_s3 + $0x68] sm:$0xff]  ;;  %v3782_v53 = vpack.c.bf16 %v640_v47, %v639_v46  ;;  %v671_v54 = vld [vmem:[%s6307_s3 + $0x170] sm:$0xff] }
 0x109   :  { %v440_v60 = vrot.slane %v4768_v49, 1  ;;  %v424_v61 = vrot.slane %v4768_v49, 7  ;;  %v3776_v33 = vpack.c.bf16 %v654_v30, %v653_v29  ;;  %v3778_v40 = vpack.c.bf16 %v638_v38, %v637_v37  ;;  %v669_v43 = vld [vmem:[%s6307_s3 + $0x160] sm:$0xff]  ;;  %v2644_v46 = vld [vmem:[%s6306_s2 + $0x228] sm:$0xff]  ;;  %v2657_v47 = vld [vmem:[%s6306_s2 + $0x290] sm:$0xff] }
 0x10a   :  { %526 = vmatmul.mubr.f32.gmra.mrb[12].mxu0 %v433_v56  ;;  %3467 = vmatmul.mubr.f32.vlgmr.msra.gmra.mrb[4].mxu1 %v448_v55  ;;  %v3808_v48 = vpack.c.bf16 %v670_v45, %v669_v43  ;;  %v672_v55 = vld [vmem:[%s6307_s3 + $0x178] sm:$0xff]  ;;  %v2643_v45 = vld [vmem:[%s6306_s2 + $0x220] sm:$0xff] }
 0x10b   :  { %530 = vmatprep.mubr.f32.mxu0 %v4768_v49  ;;  %v441_v2 = vsel %vm180_vm0, %v438_v42, %v440_v60  ;;  %v446_v51 = vsel %vm180_vm0, %v440_v60, 0.0  ;;  %3787 = vmatpush3.bf16.msra.mxu1 %v4711_v52  ;;  %v425_v6 = vsel %vm163_vm2, %v422_v41, %v424_v61  ;;  %v632_v52 = vld [vmem:[%s6307_s3 + $0x38] sm:$0xff]  ;;  %v655_v41 = vld [vmem:[%s6307_s3 + $0xf0] sm:$0xff]  ;;  %v3812_v56 = vpack.c.bf16 %v672_v55, %v671_v54  ;;  %v2655_v60 = vld [vmem:[%s6306_s2 + $0x280] sm:$0xff] }
 0x10c   :  { %3469 = vmatprep.mubr.f32.mxu1 %v441_v2  ;;  %v450_v4 = vmul.f32 %v4566_v50, %v446_v51  ;;  %3789 = vmatprep.subr.bf16.mxu1 %v3788_v57  ;;  %v3766_v9 = vpack.c.bf16 %v632_v52, %v631_v8  ;;  %v656_v42 = vld [vmem:[%s6307_s3 + $0xf8] sm:$0xff]  ;;  %v2656_v61 = vld [vmem:[%s6306_s2 + $0x288] sm:$0xff] }
 0x10d   :  { %3763 = vmatpush3.bf16.msra.mxu0 %v3762_v62  ;;  %v3780_v44 = vpack.c.bf16 %v656_v42, %v655_v41  ;;  %v4891_v62 = vpack.c.bf16 %v2656_v61, %v2655_v60 }
 0x10e   :  { %531 = vmatmul.mubr.f32.gmra.mrb[14].mxu0 %v425_v6  ;;  %3470 = vmatmul.mubr.f32.gmra.mrb[6].mxu1 %v450_v4 }
 0x10f   :  { %3791 = vmatpush3.bf16.msra.mxu1 %v3788_v57  ;;  %3765 = vmatprep.subr.bf16.mxu0 %v3764_v3  ;;  %v2639_v57 = vld [vmem:[%s6306_s2 + $0x200] sm:$0xff] }
 0x110   :  { %3793 = vmatprep.subr.bf16.mxu1 %v3792_v5  ;;  %v3816_v59 = vpack.c.bf16 %v2640_v58, %v2639_v57 }
 0x111   :  { %3767 = vmatpush3.bf16.msra.mxu0 %v3766_v9 }
 0x112   :  { %3769 = vmatprep.subr.bf16.mxu0 %v3768_v14 }
 0x113   :  { %3795 = vmatpush3.bf16.msra.mxu1 %v3792_v5 }
 0x114   :  { %3797 = vmatprep.subr.bf16.mxu1 %v3796_v17 }
 0x115   :  { %3771 = vmatpush3.bf16.msra.mxu0 %v3770_v18 }
 0x116   :  { %3773 = vmatprep.subr.bf16.mxu0 %v3772_v24 }
 0x117   :  { %3799 = vmatpush3.bf16.msra.mxu1 %v3796_v17  ;;  %v2624_v17 = vld [vmem:[%s6306_s2 + $0x188] sm:$0xff] }
 0x118   :  { %3801 = vmatprep.subr.bf16.mxu1 %v3800_v27  ;;  %v3818_v29 = vpack.c.bf16 %v2624_v17, %v2623_v10  ;;  %v2631_v17 = vld [vmem:[%s6306_s2 + $0x1c0] sm:$0xff] }
 0x119   :  { %3775 = vmatpush3.bf16.msra.mxu0 %v3774_v28  ;;  %v2642_v28 = vld [vmem:[%s6306_s2 + $0x218] sm:$0xff] }
 0x11a   :  { %3777 = vmatprep.subr.bf16.mxu0 %v3776_v33 }
 0x11b   :  { %3803 = vmatpush3.bf16.msra.mxu1 %v3800_v27  ;;  %v2641_v27 = vld [vmem:[%s6306_s2 + $0x210] sm:$0xff] }
 0x11c   :  { %3805 = vmatprep.subr.bf16.mxu1 %v3804_v39 }
 0x11d   :  { %3779 = vmatpush3.bf16.msra.mxu0 %v3778_v40  ;;  %v2625_v40 = vld [vmem:[%s6306_s2 + $0x190] sm:$0xff] }
 0x11e   :  { %3781 = vmatprep.subr.bf16.mxu0 %v3780_v44  ;;  %v2626_v44 = vld [vmem:[%s6306_s2 + $0x198] sm:$0xff] }
 0x11f   :  { %3807 = vmatpush3.bf16.msra.mxu1 %v3804_v39  ;;  %v3820_v39 = vpack.c.bf16 %v2642_v28, %v2641_v27  ;;  %v3822_v58 = vpack.c.bf16 %v2626_v44, %v2625_v40  ;;  %v2633_v27 = vld [vmem:[%s6306_s2 + $0x1d0] sm:$0xff]  ;;  %v2634_v28 = vld [vmem:[%s6306_s2 + $0x1d8] sm:$0xff]  ;;  %v2636_v40 = vld [vmem:[%s6306_s2 + $0x1e8] sm:$0xff] }
 0x120   :  { %3809 = vmatprep.subr.bf16.mxu1 %v3808_v48 }
 0x121   :  { %3783 = vmatpush3.bf16.msra.mxu0 %v3782_v53 }
 0x122   :  { %3817 = vmatprep.subr.bf16.mxu0 %v3816_v59  ;;  %v3824_v59 = vpack.c.bf16 %v2644_v46, %v2643_v45  ;;  %v2653_v45 = vld [vmem:[%s6306_s2 + $0x270] sm:$0xff]  ;;  %v2654_v46 = vld [vmem:[%s6306_s2 + $0x278] sm:$0xff] }
 0x123   :  { %3811 = vmatpush3.bf16.msra.mxu1 %v3808_v48  ;;  %v2658_v48 = vld [vmem:[%s6306_s2 + $0x298] sm:$0xff] }
 0x124   :  { %3813 = vmatprep.subr.bf16.mxu1 %v3812_v56 }
 0x127   :  { %3815 = vmatpush3.bf16.msra.mxu1 %v3812_v56 }
 0x128   :  { %3849 = vmatprep.subr.bf16.mxu1 %v4891_v62 }
 0x1d5   :  { %v2828_v0 = vpop.f32.mrb[8].mxu0 }
 0x1d6   :  { %v2829_v1 = vpop.f32.mrb[9].mxu0 }
 0x1d7   :  { %v2830_v2 = vadd.f32 %v2829_v1, %v2828_v0  ;;  %v2627_v1 = vld [vmem:[%s6306_s2 + $0x1a0] sm:$0xff] }
 0x1d9   :  { %v2831_v51 = vpop.f32.mrb[10].mxu0 }
 0x1da   :  { %v2832_v3 = vpop.f32.mrb[11].mxu0 }
 0x1db   :  { %v2833_v4 = vadd.f32 %v2832_v3, %v2831_v51  ;;  %v3852_v51 = vpack.c.bf16 %v2658_v48, %v2657_v47  ;;  %v2645_v3 = vld [vmem:[%s6306_s2 + $0x230] sm:$0xff]  ;;  %v3844_v47 = vpack.c.bf16 %v2654_v46, %v2653_v45  ;;  %v2691_v46 = vld [vmem:[%s6307_s3 + $0x220] sm:$0xff] }
 0x1dc   :  { %v2637_v48 = vld [vmem:[%s6306_s2 + $0x1f0] sm:$0xff] }
 0x1dd   :  { %v2834_v5 = vpop.f32.mrb[12].mxu0  ;;  %v3468_v6 = vpop.f32.mrb[4].mxu1 }
 0x1de   :  { %v608_v8 = vadd.f32 %v3468_v6, %v2833_v4  ;;  %v2835_v52 = vpop.f32.mrb[13].mxu0  ;;  %v602_v9 = vpop.f32.mrb[5].mxu1  ;;  %v2646_v4 = vld [vmem:[%s6306_s2 + $0x238] sm:$0xff]  ;;  %v2660_v6 = vld [vmem:[%s6306_s2 + $0x2a8] sm:$0xff] }
 0x1df   :  { %v2836_v11 = vadd.f32 %v2835_v52, %v2834_v5  ;;  %v603_v12 = vadd.f32 %v2830_v2, %v602_v9  ;;  %v2628_v2 = vld [vmem:[%s6306_s2 + $0x1a8] sm:$0xff]  ;;  %v2659_v5 = vld [vmem:[%s6306_s2 + $0x2a0] sm:$0xff] }
 0x1e0   :  { %v622_v13 = vmax.f32 %v608_v8, 0.0  ;;  %v3826_v9 = vpack.c.bf16 %v2628_v2, %v2627_v1  ;;  %v2703_v2 = vld [vmem:[%s6307_s3 + $0x280] sm:$0xff] }
 0x1e1   :  { %v621_v14 = vmax.f32 %v603_v12, 0.0  ;;  %v2837_v15 = vpop.f32.mrb[14].mxu0  ;;  %v3471_v16 = vpop.f32.mrb[6].mxu1  ;;  %v2629_v12 = vld [vmem:[%s6306_s2 + $0x1b0] sm:$0xff] }
 0x1e2   :  { %v678_v18 = vrot.slane %v622_v13, 7  ;;  %v694_v20 = vrot.slane %v622_v13, 1  ;;  %v2838_v21 = vpop.f32.mrb[15].mxu0  ;;  %v612_v22 = vpop.f32.mrb[7].mxu1 }
 0x1e3   :  { %v677_v24 = vrot.slane %v621_v14, 7  ;;  %v693_v25 = vrot.slane %v621_v14, 1  ;;  %v2839_v23 = vadd.f32 %v2838_v21, %v2837_v15  ;;  %v613_v26 = vadd.f32 %v2836_v11, %v612_v22  ;;  %773 = vmatprep.mubr.f32.mxu0 %v621_v14  ;;  %v2661_v21 = vld [vmem:[%s6306_s2 + $0x2b0] sm:$0xff]  ;;  %v2662_v22 = vld [vmem:[%s6306_s2 + $0x2b8] sm:$0xff] }
 0x1e4   :  { %v3828_v11 = vpack.c.bf16 %v2646_v4, %v2645_v3  ;;  %v3856_v14 = vpack.c.bf16 %v2660_v6, %v2659_v5 }
 0x1e5   :  { %v688_v30 = vsel %vm163_vm2, 0.0, %v677_v24  ;;  %v618_v32 = vadd.f32 %v3471_v16, %v2839_v23  ;;  %v623_v33 = vmax.f32 %v613_v26, 0.0  ;;  %v695_v36 = vsel %vm180_vm0, %v693_v25, %v694_v20  ;;  %v2648_v16 = vld [vmem:[%s6306_s2 + $0x248] sm:$0xff]  ;;  %v2649_v25 = vld [vmem:[%s6306_s2 + $0x250] sm:$0xff]  ;;  %v2650_v23 = vld [vmem:[%s6306_s2 + $0x258] sm:$0xff] }
 0x1e6   :  { %v689_v37 = vmul.f32 %v4529_v31, %v688_v30  ;;  %3504 = vmatprep.mubr.f32.mxu1 %v695_v36  ;;  %v679_v38 = vsel %vm163_vm2, %v677_v24, %v678_v18  ;;  %v3860_v24 = vpack.c.bf16 %v2662_v22, %v2661_v21  ;;  %v3836_v26 = vpack.c.bf16 %v2650_v23, %v2649_v25  ;;  %v2663_v30 = vld [vmem:[%s6306_s2 + $0x2c0] sm:$0xff] }
 0x1e7   :  { %v624_v41 = vmax.f32 %v618_v32, 0.0  ;;  %v680_v42 = vrot.slane %v623_v33, 7  ;;  %v696_v43 = vrot.slane %v623_v33, 1  ;;  %v2664_v32 = vld [vmem:[%s6306_s2 + $0x2c8] sm:$0xff]  ;;  %v2651_v36 = vld [vmem:[%s6306_s2 + $0x260] sm:$0xff] }
 0x1e8   :  { %774 = vmatmul.mubr.f32.vlgmr.msra.gmra.mrb[16].mxu0 %v689_v37  ;;  %v2652_v37 = vld [vmem:[%s6306_s2 + $0x268] sm:$0xff]  ;;  %v2671_v22 = vld [vmem:[%s6307_s3 + $0x180] sm:$0xff] }
 0x1e9   :  { %v697_v53 = vsel %vm180_vm0, %v694_v20, %v696_v43  ;;  %778 = vmatprep.mubr.f32.mxu0 %v622_v13  ;;  %v698_v54 = vrot.slane %v624_v41, 1  ;;  %v681_v55 = vsel %vm163_vm2, %v678_v18, %v680_v42  ;;  %v682_v56 = vrot.slane %v624_v41, 7  ;;  %3819 = vmatpush3.bf16.msra.mxu0 %v3818_v29  ;;  %v2630_v13 = vld [vmem:[%s6306_s2 + $0x1b8] sm:$0xff]  ;;  %v2632_v18 = vld [vmem:[%s6306_s2 + $0x1c8] sm:$0xff] }
 0x1ea   :  { %v706_v57 = vmul.f32 %v4536_v34, %v697_v53  ;;  %3821 = vmatprep.subr.bf16.mxu0 %v3820_v39  ;;  %v691_v8 = vmul.f32 %v4588_v63, %v681_v55  ;;  %v3830_v15 = vpack.c.bf16 %v2630_v13, %v2629_v12  ;;  %v3834_v20 = vpack.c.bf16 %v2632_v18, %v2631_v17  ;;  %v2635_v39 = vld [vmem:[%s6306_s2 + $0x1e0] sm:$0xff]  ;;  %v2638_v53 = vld [vmem:[%s6306_s2 + $0x1f8] sm:$0xff] }
 0x1eb   :  { %v699_v60 = vsel %vm180_vm0, %v696_v43, %v698_v54  ;;  %v704_v61 = vsel %vm180_vm0, %v698_v54, 0.0  ;;  %v683_v0 = vsel %vm163_vm2, %v680_v42, %v682_v56  ;;  %v3838_v29 = vpack.c.bf16 %v2634_v28, %v2633_v27  ;;  %v2665_v42 = vld [vmem:[%s6306_s2 + $0x2d0] sm:$0xff]  ;;  %v2666_v43 = vld [vmem:[%s6306_s2 + $0x2d8] sm:$0xff]  ;;  %v2667_v55 = vld [vmem:[%s6306_s2 + $0x2e0] sm:$0xff] }
 0x1ec   :  { %779 = vmatmul.mubr.f32.gmra.mrb[18].mxu0 %v679_v38  ;;  %3505 = vmatmul.mubr.f32.vlgmr.msra.gmra.mrb[8].mxu1 %v706_v57  ;;  %v708_v52 = vmul.f32 %v4566_v50, %v704_v61  ;;  %v3840_v38 = vpack.c.bf16 %v2652_v37, %v2651_v36  ;;  %v3868_v44 = vpack.c.bf16 %v2666_v43, %v2665_v42  ;;  %v2668_v56 = vld [vmem:[%s6306_s2 + $0x2e8] sm:$0xff]  ;;  %v2687_v61 = vld [vmem:[%s6307_s3 + $0x200] sm:$0xff]  ;;  %v2690_v28 = vld [vmem:[%s6307_s3 + $0x218] sm:$0xff] }
 0x1ed   :  { %783 = vmatprep.mubr.f32.mxu0 %v623_v33  ;;  %3507 = vmatprep.mubr.f32.mxu1 %v699_v60  ;;  %v3864_v33 = vpack.c.bf16 %v2664_v32, %v2663_v30  ;;  %v3846_v54 = vpack.c.bf16 %v2638_v53, %v2637_v48  ;;  %v3872_v57 = vpack.c.bf16 %v2668_v56, %v2667_v55  ;;  %v2705_v56 = vld [vmem:[%s6307_s3 + $0x290] sm:$0xff] }
 0x1ee   :  { %3823 = vmatpush3.bf16.msra.mxu0 %v3822_v58  ;;  %3851 = vmatpush3.bf16.msra.mxu1 %v4891_v62  ;;  %v2647_v62 = vld [vmem:[%s6306_s2 + $0x240] sm:$0xff]  ;;  %v2669_v58 = vld [vmem:[%s6306_s2 + $0x2f0] sm:$0xff] }
 0x1ef   :  { %3825 = vmatprep.subr.bf16.mxu0 %v3824_v59  ;;  %3853 = vmatprep.subr.bf16.mxu1 %v3852_v51  ;;  %v3832_v10 = vpack.c.bf16 %v2648_v16, %v2647_v62  ;;  %v2670_v59 = vld [vmem:[%s6306_s2 + $0x2f8] sm:$0xff] }
 0x1f0   :  { %784 = vmatmul.mubr.f32.gmra.mrb[20].mxu0 %v691_v8  ;;  %3508 = vmatmul.mubr.f32.gmra.mrb[10].mxu1 %v708_v52  ;;  %v3876_v60 = vpack.c.bf16 %v2670_v59, %v2669_v58 }
 0x1f1   :  { %788 = vmatprep.mubr.f32.mxu0 %v624_v41  ;;  %v3842_v41 = vpack.c.bf16 %v2636_v40, %v2635_v39  ;;  %v2673_v40 = vld [vmem:[%s6307_s3 + $0x190] sm:$0xff] }
 0x1f2   :  { %3827 = vmatpush3.bf16.msra.mxu0 %v3826_v9  ;;  %3855 = vmatpush3.bf16.msra.mxu1 %v3852_v51  ;;  %v2704_v51 = vld [vmem:[%s6307_s3 + $0x288] sm:$0xff] }
 0x1f3   :  { %3829 = vmatprep.subr.bf16.mxu0 %v3828_v11  ;;  %3857 = vmatprep.subr.bf16.mxu1 %v3856_v14  ;;  %v5051_v3 = vpack.c.bf16 %v2704_v51, %v2703_v2  ;;  %v2694_v51 = vld [vmem:[%s6307_s3 + $0x238] sm:$0xff] }
 0x1f4   :  { %789 = vmatmul.mubr.f32.gmra.mrb[22].mxu0 %v683_v0  ;;  %v2688_v0 = vld [vmem:[%s6307_s3 + $0x208] sm:$0xff] }
 0x1f5   :  { %v3880_v1 = vpack.c.bf16 %v2688_v0, %v2687_v61  ;;  %v2675_v0 = vld [vmem:[%s6307_s3 + $0x1a0] sm:$0xff] }
 0x1f6   :  { %3831 = vmatpush3.bf16.msra.mxu0 %v3830_v15  ;;  %3859 = vmatpush3.bf16.msra.mxu1 %v3856_v14 }
 0x1f7   :  { %3833 = vmatprep.subr.bf16.mxu0 %v3832_v10  ;;  %3861 = vmatprep.subr.bf16.mxu1 %v3860_v24 }
 0x1fa   :  { %3835 = vmatpush3.bf16.msra.mxu0 %v3834_v20  ;;  %3863 = vmatpush3.bf16.msra.mxu1 %v3860_v24  ;;  %v2672_v24 = vld [vmem:[%s6307_s3 + $0x188] sm:$0xff] }
 0x1fb   :  { %3837 = vmatprep.subr.bf16.mxu0 %v3836_v26  ;;  %3865 = vmatprep.subr.bf16.mxu1 %v3864_v33  ;;  %v3882_v32 = vpack.c.bf16 %v2672_v24, %v2671_v22  ;;  %v2709_v22 = vld [vmem:[%s6307_s3 + $0x2b0] sm:$0xff] }
 0x1fe   :  { %3839 = vmatpush3.bf16.msra.mxu0 %v3838_v29  ;;  %3867 = vmatpush3.bf16.msra.mxu1 %v3864_v33 }
 0x1ff   :  { %3841 = vmatprep.subr.bf16.mxu0 %v3840_v38  ;;  %3869 = vmatprep.subr.bf16.mxu1 %v3868_v44 }
 0x202   :  { %3843 = vmatpush3.bf16.msra.mxu0 %v3842_v41  ;;  %3871 = vmatpush3.bf16.msra.mxu1 %v3868_v44  ;;  %v2674_v41 = vld [vmem:[%s6307_s3 + $0x198] sm:$0xff] }
 0x203   :  { %3845 = vmatprep.subr.bf16.mxu0 %v3844_v47  ;;  %3873 = vmatprep.subr.bf16.mxu1 %v3872_v57  ;;  %v2692_v47 = vld [vmem:[%s6307_s3 + $0x228] sm:$0xff] }
 0x204   :  { %v3888_v55 = vpack.c.bf16 %v2692_v47, %v2691_v46  ;;  %v2683_v46 = vld [vmem:[%s6307_s3 + $0x1e0] sm:$0xff]  ;;  %v2684_v47 = vld [vmem:[%s6307_s3 + $0x1e8] sm:$0xff] }
 0x206   :  { %3847 = vmatpush3.bf16.msra.mxu0 %v3846_v54  ;;  %3875 = vmatpush3.bf16.msra.mxu1 %v3872_v57  ;;  %v3886_v54 = vpack.c.bf16 %v2674_v41, %v2673_v40  ;;  %v2706_v57 = vld [vmem:[%s6307_s3 + $0x298] sm:$0xff]  ;;  %v2699_v40 = vld [vmem:[%s6307_s3 + $0x260] sm:$0xff]  ;;  %v2700_v41 = vld [vmem:[%s6307_s3 + $0x268] sm:$0xff] }
 0x207   :  { %3877 = vmatprep.subr.bf16.mxu1 %v3876_v60  ;;  %3881 = vmatprep.subr.bf16.mxu0 %v3880_v1  ;;  %v2676_v1 = vld [vmem:[%s6307_s3 + $0x1a8] sm:$0xff] }
 0x20a   :  { %3879 = vmatpush3.bf16.msra.mxu1 %v3876_v60 }
 0x20b   :  { %3913 = vmatprep.subr.bf16.mxu1 %v5051_v3 }
 0x2bb   :  { %v2892_v4 = vpop.f32.mrb[16].mxu0 }
 0x2bc   :  { %v2893_v5 = vpop.f32.mrb[17].mxu0 }
 0x2bd   :  { %v2894_v6 = vadd.f32 %v2893_v5, %v2892_v4  ;;  %v3916_v5 = vpack.c.bf16 %v2706_v57, %v2705_v56  ;;  %v2716_v57 = vld [vmem:[%s6307_s3 + $0x2e8] sm:$0xff] }
 0x2bf   :  { %v2895_v8 = vpop.f32.mrb[18].mxu0  ;;  %v3506_v52 = vpop.f32.mrb[8].mxu1 }
 0x2c0   :  { %v2896_v9 = vpop.f32.mrb[19].mxu0  ;;  %v860_v11 = vpop.f32.mrb[9].mxu1 }
 0x2c1   :  { %v2897_v12 = vadd.f32 %v2896_v9, %v2895_v8  ;;  %v861_v13 = vadd.f32 %v2894_v6, %v860_v11  ;;  %v2707_v6 = vld [vmem:[%s6307_s3 + $0x2a0] sm:$0xff]  ;;  %v2708_v8 = vld [vmem:[%s6307_s3 + $0x2a8] sm:$0xff]  ;;  %v3890_v9 = vpack.c.bf16 %v2676_v1, %v2675_v0  ;;  %v2717_v1 = vld [vmem:[%s6307_s3 + $0x2f0] sm:$0xff] }
 0x2c3   :  { %v866_v14 = vadd.f32 %v3506_v52, %v2897_v12  ;;  %v879_v15 = vmul.f32 0.1, %v861_v13  ;;  %v2898_v62 = vpop.f32.mrb[20].mxu0  ;;  %v3509_v16 = vpop.f32.mrb[10].mxu1 }
 0x2c4   :  { %v2899_v10 = vpop.f32.mrb[21].mxu0  ;;  %v870_v17 = vpop.f32.mrb[11].mxu1 }
 0x2c5   :  { %v880_v18 = vmul.f32 0.1, %v866_v14  ;;  %v5055_v20 = vadd.f32 %v879_v15, %v4714_v7  ;;  %v2900_v21 = vadd.f32 %v2899_v10, %v2898_v62  ;;  %v2689_v7 = vld [vmem:[%s6307_s3 + $0x210] sm:$0xff]  ;;  %v2678_v62 = vld [vmem:[%s6307_s3 + $0x1b8] sm:$0xff]  ;;  %v3920_v10 = vpack.c.bf16 %v2708_v8, %v2707_v6  ;;  %v1441_v6 = vld [vmem:[%s6308_s4 + $0x100] sm:$0xff] }
 0x2c6   :  { %v3884_v39 = vpack.c.bf16 %v2690_v28, %v2689_v7  ;;  %v2677_v15 = vld [vmem:[%s6307_s3 + $0x1b0] sm:$0xff]  ;;  %v1442_v8 = vld [vmem:[%s6308_s4 + $0x108] sm:$0xff] }
 0x2c7   :  { %v5064_v25 = vadd.f32 %v880_v18, %v4731_v19  ;;  %v940_v23 = vrot.slane %v5055_v20, 7  ;;  %v871_v26 = vadd.f32 %v2900_v21, %v870_v17  ;;  %v2901_v27 = vpop.f32.mrb[22].mxu0  ;;  %1036 = vmatprep.mubr.f32.mxu0 %v5055_v20  ;;  %v956_v30 = vrot.slane %v5055_v20, 1  ;;  %v2695_v18 = vld [vmem:[%s6307_s3 + $0x240] sm:$0xff]  ;;  %v2696_v21 = vld [vmem:[%s6307_s3 + $0x248] sm:$0xff] }
 0x2c8   :  { %v2902_v29 = vpop.f32.mrb[23].mxu0  ;;  %v3896_v24 = vpack.c.bf16 %v2696_v21, %v2695_v18 }
 0x2c9   :  { %v881_v19 = vmul.f32 0.1, %v871_v26  ;;  %v2903_v33 = vadd.f32 %v2902_v29, %v2901_v27  ;;  %v951_v36 = vsel %vm163_vm2, 0.0, %v940_v23  ;;  %v957_v37 = vrot.slane %v5064_v25, 1  ;;  %v2679_v26 = vld [vmem:[%s6307_s3 + $0x1c0] sm:$0xff]  ;;  %v2680_v27 = vld [vmem:[%s6307_s3 + $0x1c8] sm:$0xff] }
 0x2ca   :  { %v952_v38 = vmul.f32 %v4529_v31, %v951_v36  ;;  %v941_v45 = vrot.slane %v5064_v25, 7  ;;  %v3898_v28 = vpack.c.bf16 %v2680_v27, %v2679_v26  ;;  %v2697_v29 = vld [vmem:[%s6307_s3 + $0x250] sm:$0xff]  ;;  %v1409_v26 = vld [vmem:[%s6308_s4] sm:$0xff]  ;;  %v1410_v27 = vld [vmem:[%s6308_s4 + $0x8] sm:$0xff] }
 0x2cb   :  { %v5085_v42 = vadd.f32 %v881_v19, %v4749_v35  ;;  %v876_v43 = vadd.f32 %v3509_v16, %v2903_v33  ;;  %v958_v44 = vsel %vm180_vm0, %v956_v30, %v957_v37  ;;  %v2698_v30 = vld [vmem:[%s6307_s3 + $0x258] sm:$0xff]  ;;  %v2712_v33 = vld [vmem:[%s6307_s3 + $0x2c8] sm:$0xff]  ;;  %v2681_v36 = vld [vmem:[%s6307_s3 + $0x1d0] sm:$0xff] }
 0x2cc   :  { %1037 = vmatmul.mubr.f32.vlgmr.msra.gmra.mrb[24].mxu0 %v952_v38  ;;  %3542 = vmatprep.mubr.f32.mxu1 %v958_v44  ;;  %v942_v60 = vsel %vm163_vm2, %v940_v23, %v941_v45  ;;  %v2710_v23 = vld [vmem:[%s6307_s3 + $0x2b8] sm:$0xff]  ;;  %v3900_v19 = vpack.c.bf16 %v2698_v30, %v2697_v29  ;;  %v3904_v44 = vpack.c.bf16 %v2700_v41, %v2699_v40 }
 0x2cd   :  { %v959_v48 = vrot.slane %v5085_v42, 1  ;;  %v882_v53 = vmul.f32 0.1, %v876_v43  ;;  %1041 = vmatprep.mubr.f32.mxu0 %v5064_v25  ;;  %v943_v35 = vrot.slane %v5085_v42, 7  ;;  %3883 = vmatpush3.bf16.msra.mxu0 %v3882_v32  ;;  %v3924_v7 = vpack.c.bf16 %v2710_v23, %v2709_v22  ;;  %v2711_v32 = vld [vmem:[%s6307_s3 + $0x2c0] sm:$0xff]  ;;  %v2713_v43 = vld [vmem:[%s6307_s3 + $0x2d0] sm:$0xff] }
 0x2ce   :  { %3885 = vmatprep.subr.bf16.mxu0 %v3884_v39  ;;  %v3928_v38 = vpack.c.bf16 %v2712_v33, %v2711_v32 }
 0x2cf   :  { %v5105_v58 = vadd.f32 %v882_v53, %v4768_v49  ;;  %v960_v59 = vsel %vm180_vm0, %v957_v37, %v959_v48  ;;  %v944_v61 = vsel %vm163_vm2, %v941_v45, %v943_v35  ;;  %v2693_v49 = vld [vmem:[%s6307_s3 + $0x230] sm:$0xff]  ;;  %v2682_v37 = vld [vmem:[%s6307_s3 + $0x1d8] sm:$0xff]  ;;  %v3906_v53 = vpack.c.bf16 %v2684_v47, %v2683_v46 }
 0x2d0   :  { %v969_v2 = vmul.f32 %v4536_v34, %v960_v59  ;;  %1042 = vmatmul.mubr.f32.gmra.mrb[26].mxu0 %v942_v60  ;;  %v954_v52 = vmul.f32 %v4588_v63, %v944_v61  ;;  %v3892_v14 = vpack.c.bf16 %v2694_v51, %v2693_v49  ;;  %v3902_v39 = vpack.c.bf16 %v2682_v37, %v2681_v36  ;;  %v2714_v45 = vld [vmem:[%s6307_s3 + $0x2d8] sm:$0xff]  ;;  %v2685_v59 = vld [vmem:[%s6307_s3 + $0x1f0] sm:$0xff]  ;;  %v1425_v51 = vld [vmem:[%s6308_s4 + $0x80] sm:$0xff] }
 0x2d1   :  { %1046 = vmatprep.mubr.f32.mxu0 %v5085_v42  ;;  %v961_v4 = vrot.slane %v5105_v58, 1  ;;  %3887 = vmatpush3.bf16.msra.mxu0 %v3886_v54  ;;  %v945_v13 = vrot.slane %v5105_v58, 7  ;;  %v2702_v54 = vld [vmem:[%s6307_s3 + $0x278] sm:$0xff] }
 0x2d2   :  { %3543 = vmatmul.mubr.f32.vlgmr.msra.gmra.mrb[12].mxu1 %v969_v2  ;;  %3889 = vmatprep.subr.bf16.mxu0 %v3888_v55  ;;  %v2715_v55 = vld [vmem:[%s6307_s3 + $0x2e0] sm:$0xff]  ;;  %v2686_v60 = vld [vmem:[%s6307_s3 + $0x1f8] sm:$0xff] }
 0x2d3   :  { %v962_v11 = vsel %vm180_vm0, %v959_v48, %v961_v4  ;;  %v967_v12 = vsel %vm180_vm0, %v961_v4, 0.0  ;;  %3915 = vmatpush3.bf16.msra.mxu1 %v5051_v3  ;;  %v3894_v3 = vpack.c.bf16 %v2678_v62, %v2677_v15  ;;  %v946_v17 = vsel %vm163_vm2, %v943_v35, %v945_v13  ;;  %v2701_v35 = vld [vmem:[%s6307_s3 + $0x270] sm:$0xff]  ;;  %v2718_v2 = vld [vmem:[%s6307_s3 + $0x2f8] sm:$0xff]  ;;  %v1426_v4 = vld [vmem:[%s6308_s4 + $0x88] sm:$0xff] }
 0x2d4   :  { %1047 = vmatmul.mubr.f32.gmra.mrb[28].mxu0 %v954_v52  ;;  %3545 = vmatprep.mubr.f32.mxu1 %v962_v11  ;;  %v971_v16 = vmul.f32 %v4566_v50, %v967_v12  ;;  %v3932_v48 = vpack.c.bf16 %v2714_v45, %v2713_v43  ;;  %v3908_v56 = vpack.c.bf16 %v2702_v54, %v2701_v35  ;;  %v1428_v36 = vld [vmem:[%s6308_s4 + $0x98] sm:$0xff] }
 0x2d5   :  { %1051 = vmatprep.mubr.f32.mxu0 %v5105_v58  ;;  %3917 = vmatprep.subr.bf16.mxu1 %v3916_v5  ;;  %v3936_v61 = vpack.c.bf16 %v2716_v57, %v2715_v55  ;;  %v3910_v0 = vpack.c.bf16 %v2686_v60, %v2685_v59  ;;  %v3940_v49 = vpack.c.bf16 %v2718_v2, %v2717_v1  ;;  %v1412_v35 = vld [vmem:[%s6308_s4 + $0x18] sm:$0xff]  ;;  %v1430_v57 = vld [vmem:[%s6308_s4 + $0xa8] sm:$0xff]  ;;  %v1443_v60 = vld [vmem:[%s6308_s4 + $0x110] sm:$0xff] }
 0x2d6   :  { %3546 = vmatmul.mubr.f32.gmra.mrb[14].mxu1 %v971_v16  ;;  %3891 = vmatpush3.bf16.msra.mxu0 %v3890_v9  ;;  %v5235_v52 = vpack.c.bf16 %v1442_v8, %v1441_v6  ;;  %v1413_v6 = vld [vmem:[%s6308_s4 + $0x20] sm:$0xff]  ;;  %v1414_v8 = vld [vmem:[%s6308_s4 + $0x28] sm:$0xff] }
 0x2d7   :  { %3919 = vmatpush3.bf16.msra.mxu1 %v3916_v5  ;;  %3893 = vmatprep.subr.bf16.mxu0 %v3892_v14  ;;  %v3944_v5 = vpack.c.bf16 %v1426_v4, %v1425_v51 }
 0x2d8   :  { %1052 = vmatmul.mubr.f32.gmra.mrb[30].mxu0 %v946_v17  ;;  %3921 = vmatprep.subr.bf16.mxu1 %v3920_v10 }
 0x2da   :  { %3895 = vmatpush3.bf16.msra.mxu0 %v3894_v3 }
 0x2db   :  { %3923 = vmatpush3.bf16.msra.mxu1 %v3920_v10  ;;  %3897 = vmatprep.subr.bf16.mxu0 %v3896_v24 }
 0x2dc   :  { %3925 = vmatprep.subr.bf16.mxu1 %v3924_v7 }
 0x2de   :  { %3899 = vmatpush3.bf16.msra.mxu0 %v3898_v28  ;;  %v1427_v28 = vld [vmem:[%s6308_s4 + $0x90] sm:$0xff] }
 0x2df   :  { %3927 = vmatpush3.bf16.msra.mxu1 %v3924_v7  ;;  %3901 = vmatprep.subr.bf16.mxu0 %v3900_v19  ;;  %v3948_v47 = vpack.c.bf16 %v1428_v36, %v1427_v28  ;;  %v1418_v28 = vld [vmem:[%s6308_s4 + $0x48] sm:$0xff]  ;;  %v1436_v36 = vld [vmem:[%s6308_s4 + $0xd8] sm:$0xff] }
 0x2e0   :  { %3929 = vmatprep.subr.bf16.mxu1 %v3928_v38 }
 0x2e2   :  { %3903 = vmatpush3.bf16.msra.mxu0 %v3902_v39  ;;  %v3946_v39 = vpack.c.bf16 %v1410_v27, %v1409_v26  ;;  %v1434_v26 = vld [vmem:[%s6308_s4 + $0xc8] sm:$0xff] }
 0x2e3   :  { %3931 = vmatpush3.bf16.msra.mxu1 %v3928_v38  ;;  %3905 = vmatprep.subr.bf16.mxu0 %v3904_v44 }
 0x2e4   :  { %3933 = vmatprep.subr.bf16.mxu1 %v3932_v48 }
 0x2e6   :  { %3907 = vmatpush3.bf16.msra.mxu0 %v3906_v53  ;;  %v1411_v53 = vld [vmem:[%s6308_s4 + $0x10] sm:$0xff] }
 0x2e7   :  { %3935 = vmatpush3.bf16.msra.mxu1 %v3932_v48  ;;  %3909 = vmatprep.subr.bf16.mxu0 %v3908_v56  ;;  %v1429_v56 = vld [vmem:[%s6308_s4 + $0xa0] sm:$0xff]  ;;  %v3950_v2 = vpack.c.bf16 %v1412_v35, %v1411_v53  ;;  %v1422_v53 = vld [vmem:[%s6308_s4 + $0x68] sm:$0xff] }
 0x2e8   :  { %3937 = vmatprep.subr.bf16.mxu1 %v3936_v61 }
 0x2ea   :  { %3911 = vmatpush3.bf16.msra.mxu0 %v3910_v0 }
 0x2eb   :  { %3939 = vmatpush3.bf16.msra.mxu1 %v3936_v61  ;;  %3945 = vmatprep.subr.bf16.mxu0 %v3944_v5  ;;  %v1444_v61 = vld [vmem:[%s6308_s4 + $0x118] sm:$0xff]  ;;  %v3952_v5 = vpack.c.bf16 %v1430_v57, %v1429_v56  ;;  %v1439_v57 = vld [vmem:[%s6308_s4 + $0xf0] sm:$0xff] }
 0x2ec   :  { %3941 = vmatprep.subr.bf16.mxu1 %v3940_v49 }
 0x2ef   :  { %3943 = vmatpush3.bf16.msra.mxu1 %v3940_v49 }
 0x2f0   :  { %3977 = vmatprep.subr.bf16.mxu1 %v5235_v52 }
 0x39f   :  { %v2956_v9 = vpop.f32.mrb[24].mxu0 }
 0x3a0   :  { %v2957_v11 = vpop.f32.mrb[25].mxu0 }
 0x3a1   :  { %v2958_v12 = vadd.f32 %v2957_v11, %v2956_v9  ;;  %v3980_v9 = vpack.c.bf16 %v1444_v61, %v1443_v60  ;;  %v1431_v11 = vld [vmem:[%s6308_s4 + $0xb0] sm:$0xff] }
 0x3a2   :  { %v1423_v61 = vld [vmem:[%s6308_s4 + $0x70] sm:$0xff] }
 0x3a3   :  { %v2959_v13 = vpop.f32.mrb[26].mxu0 }
 0x3a4   :  { %v2960_v14 = vpop.f32.mrb[27].mxu0 }
 0x3a5   :  { %v2961_v15 = vadd.f32 %v2960_v14, %v2959_v13  ;;  %v3544_v62 = vpop.f32.mrb[12].mxu1 }
 0x3a6   :  { %v1123_v16 = vpop.f32.mrb[13].mxu1 }
 0x3a7   :  { %v1129_v10 = vadd.f32 %v3544_v62, %v2961_v15  ;;  %v1124_v3 = vadd.f32 %v2958_v12, %v1123_v16  ;;  %v2962_v17 = vpop.f32.mrb[28].mxu0  ;;  %v1432_v12 = vld [vmem:[%s6308_s4 + $0xb8] sm:$0xff]  ;;  %v1445_v62 = vld [vmem:[%s6308_s4 + $0x120] sm:$0xff]  ;;  %v1446_v16 = vld [vmem:[%s6308_s4 + $0x128] sm:$0xff] }
 0x3a8   :  { %v2963_v18 = vpop.f32.mrb[29].mxu0 }
 0x3a9   :  { %v1143_v21 = vmax.f32 %v1129_v10, 0.0  ;;  %v1142_v22 = vmax.f32 %v1124_v3, 0.0  ;;  %v2964_v24 = vadd.f32 %v2963_v18, %v2962_v17  ;;  %v3547_v23 = vpop.f32.mrb[14].mxu1  ;;  %v3954_v17 = vpack.c.bf16 %v1414_v8, %v1413_v6  ;;  %v1771_v8 = vld [vmem:[%s6309_s5 + $0x80] sm:$0xff] }
 0x3aa   :  { %v1133_v7 = vpop.f32.mrb[15].mxu1  ;;  %v3956_v18 = vpack.c.bf16 %v1432_v12, %v1431_v11  ;;  %v1803_v12 = vld [vmem:[%s6309_s5 + $0x180] sm:$0xff] }
 0x3ab   :  { %v1200_v29 = vrot.slane %v1143_v21, 7  ;;  %v1216_v30 = vrot.slane %v1143_v21, 1  ;;  %v1199_v32 = vrot.slane %v1142_v22, 7  ;;  %v1215_v19 = vrot.slane %v1142_v22, 1  ;;  %v2965_v33 = vpop.f32.mrb[30].mxu0  ;;  %1295 = vmatprep.mubr.f32.mxu0 %v1142_v22  ;;  %v1416_v22 = vld [vmem:[%s6308_s4 + $0x38] sm:$0xff] }
 0x3ac   :  { %v1134_v37 = vadd.f32 %v2964_v24, %v1133_v7  ;;  %v2966_v38 = vpop.f32.mrb[31].mxu0  ;;  %v3984_v24 = vpack.c.bf16 %v1446_v16, %v1445_v62  ;;  %v1417_v7 = vld [vmem:[%s6308_s4 + $0x40] sm:$0xff] }
 0x3ad   :  { %v1210_v40 = vsel %vm163_vm2, 0.0, %v1199_v32  ;;  %v2967_v41 = vadd.f32 %v2966_v38, %v2965_v33  ;;  %v1217_v43 = vsel %vm180_vm0, %v1215_v19, %v1216_v30  ;;  %v1201_v44 = vsel %vm163_vm2, %v1199_v32, %v1200_v29  ;;  %v1448_v32 = vld [vmem:[%s6308_s4 + $0x138] sm:$0xff]  ;;  %v1435_v33 = vld [vmem:[%s6308_s4 + $0xd0] sm:$0xff] }
 0x3ae   :  { %v1211_v45 = vmul.f32 %v4529_v31, %v1210_v40  ;;  %v1144_v46 = vmax.f32 %v1134_v37, 0.0  ;;  %3580 = vmatprep.mubr.f32.mxu1 %v1217_v43  ;;  %v3964_v37 = vpack.c.bf16 %v1436_v36, %v1435_v33  ;;  %v1419_v38 = vld [vmem:[%s6308_s4 + $0x50] sm:$0xff]  ;;  %v1450_v43 = vld [vmem:[%s6308_s4 + $0x148] sm:$0xff] }
 0x3af   :  { %v1139_v48 = vadd.f32 %v3547_v23, %v2967_v41  ;;  %v1449_v41 = vld [vmem:[%s6308_s4 + $0x140] sm:$0xff] }
 0x3b0   :  { %v1202_v54 = vrot.slane %v1144_v46, 7  ;;  %v1218_v55 = vrot.slane %v1144_v46, 1  ;;  %1296 = vmatmul.mubr.f32.vlgmr.msra.gmra.mrb[32].mxu0 %v1211_v45  ;;  %v1437_v45 = vld [vmem:[%s6308_s4 + $0xe0] sm:$0xff] }
 0x3b1   :  { %v1145_v59 = vmax.f32 %v1139_v48, 0.0  ;;  %1300 = vmatprep.mubr.f32.mxu0 %v1143_v21  ;;  %3947 = vmatpush3.bf16.msra.mxu0 %v3946_v39  ;;  %v1415_v21 = vld [vmem:[%s6308_s4 + $0x30] sm:$0xff]  ;;  %v1420_v39 = vld [vmem:[%s6308_s4 + $0x58] sm:$0xff]  ;;  %v1421_v48 = vld [vmem:[%s6308_s4 + $0x60] sm:$0xff] }
 0x3b2   :  { %v1219_v0 = vsel %vm180_vm0, %v1216_v30, %v1218_v55  ;;  %v1203_v1 = vsel %vm163_vm2, %v1200_v29, %v1202_v54  ;;  %3949 = vmatprep.subr.bf16.mxu0 %v3948_v47  ;;  %v3958_v23 = vpack.c.bf16 %v1416_v22, %v1415_v21  ;;  %v3962_v29 = vpack.c.bf16 %v1418_v28, %v1417_v7  ;;  %v1447_v30 = vld [vmem:[%s6308_s4 + $0x130] sm:$0xff] }
 0x3b3   :  { %v1228_v49 = vmul.f32 %v4536_v34, %v1219_v0  ;;  %v1220_v51 = vrot.slane %v1145_v59, 1  ;;  %v1204_v4 = vrot.slane %v1145_v59, 7  ;;  %v1213_v10 = vmul.f32 %v4588_v63, %v1203_v1  ;;  %v1424_v0 = vld [vmem:[%s6308_s4 + $0x78] sm:$0xff] }
 0x3b4   :  { %1301 = vmatmul.mubr.f32.gmra.mrb[34].mxu0 %v1201_v44  ;;  %v3988_v19 = vpack.c.bf16 %v1448_v32, %v1447_v30  ;;  %v3966_v40 = vpack.c.bf16 %v1420_v39, %v1419_v38  ;;  %v3992_v44 = vpack.c.bf16 %v1450_v43, %v1449_v41  ;;  %v3970_v35 = vpack.c.bf16 %v1422_v53, %v1421_v48  ;;  %v1755_v32 = vld [vmem:[%s6309_s5] sm:$0xff]  ;;  %v1773_v38 = vld [vmem:[%s6309_s5 + $0x90] sm:$0xff] }
 0x3b5   :  { %3581 = vmatmul.mubr.f32.vlgmr.msra.gmra.mrb[16].mxu1 %v1228_v49  ;;  %1305 = vmatprep.mubr.f32.mxu0 %v1144_v46  ;;  %v1221_v13 = vsel %vm180_vm0, %v1218_v55, %v1220_v51  ;;  %v1226_v14 = vsel %vm180_vm0, %v1220_v51, 0.0  ;;  %v1205_v15 = vsel %vm163_vm2, %v1202_v54, %v1204_v4  ;;  %v1438_v46 = vld [vmem:[%s6308_s4 + $0xe8] sm:$0xff]  ;;  %v1451_v54 = vld [vmem:[%s6308_s4 + $0x150] sm:$0xff]  ;;  %v1452_v55 = vld [vmem:[%s6308_s4 + $0x158] sm:$0xff]  ;;  %v3974_v1 = vpack.c.bf16 %v1424_v0, %v1423_v61 }
 0x3b6   :  { %3583 = vmatprep.mubr.f32.mxu1 %v1221_v13  ;;  %v1230_v3 = vmul.f32 %v4566_v50, %v1226_v14  ;;  %3951 = vmatpush3.bf16.msra.mxu0 %v3950_v2  ;;  %v3968_v47 = vpack.c.bf16 %v1438_v46, %v1437_v45  ;;  %v3996_v56 = vpack.c.bf16 %v1452_v55, %v1451_v54  ;;  %v1453_v2 = vld [vmem:[%s6308_s4 + $0x160] sm:$0xff]  ;;  %v1454_v49 = vld [vmem:[%s6308_s4 + $0x168] sm:$0xff]  ;;  %v1455_v4 = vld [vmem:[%s6308_s4 + $0x170] sm:$0xff] }
 0x3b7   :  { %3979 = vmatpush3.bf16.msra.mxu1 %v5235_v52  ;;  %3953 = vmatprep.subr.bf16.mxu0 %v3952_v5  ;;  %v1433_v52 = vld [vmem:[%s6308_s4 + $0xc0] sm:$0xff]  ;;  %v4000_v51 = vpack.c.bf16 %v1454_v49, %v1453_v2  ;;  %v1456_v5 = vld [vmem:[%s6308_s4 + $0x178] sm:$0xff]  ;;  %v1804_v13 = vld [vmem:[%s6309_s5 + $0x188] sm:$0xff] }
 0x3b8   :  { %1306 = vmatmul.mubr.f32.gmra.mrb[36].mxu0 %v1213_v10  ;;  %3981 = vmatprep.subr.bf16.mxu1 %v3980_v9  ;;  %v3960_v27 = vpack.c.bf16 %v1434_v26, %v1433_v52  ;;  %v4004_v6 = vpack.c.bf16 %v1456_v5, %v1455_v4  ;;  %v4040_v14 = vpack.c.bf16 %v1804_v13, %v1803_v12  ;;  %v1806_v2 = vld [vmem:[%s6309_s5 + $0x198] sm:$0xff]  ;;  %v1775_v4 = vld [vmem:[%s6309_s5 + $0xa0] sm:$0xff]  ;;  %v1776_v5 = vld [vmem:[%s6309_s5 + $0xa8] sm:$0xff] }
 0x3b9   :  { %3584 = vmatmul.mubr.f32.gmra.mrb[18].mxu1 %v1230_v3  ;;  %1310 = vmatprep.mubr.f32.mxu0 %v1145_v59  ;;  %v1440_v59 = vld [vmem:[%s6308_s4 + $0xf8] sm:$0xff]  ;;  %v1759_v13 = vld [vmem:[%s6309_s5 + $0x20] sm:$0xff] }
 0x3ba   :  { %3955 = vmatpush3.bf16.msra.mxu0 %v3954_v17  ;;  %v3972_v60 = vpack.c.bf16 %v1440_v59, %v1439_v57  ;;  %v1788_v57 = vld [vmem:[%s6309_s5 + $0x108] sm:$0xff]  ;;  %v1790_v12 = vld [vmem:[%s6309_s5 + $0x118] sm:$0xff] }
 0x3bb   :  { %3983 = vmatpush3.bf16.msra.mxu1 %v3980_v9  ;;  %3957 = vmatprep.subr.bf16.mxu0 %v3956_v18  ;;  %v1772_v9 = vld [vmem:[%s6309_s5 + $0x88] sm:$0xff] }
 0x3bc   :  { %1311 = vmatmul.mubr.f32.gmra.mrb[38].mxu0 %v1205_v15  ;;  %3985 = vmatprep.subr.bf16.mxu1 %v3984_v24  ;;  %v4008_v11 = vpack.c.bf16 %v1772_v9, %v1771_v8 }
 0x3be   :  { %3959 = vmatpush3.bf16.msra.mxu0 %v3958_v23 }
 0x3bf   :  { %3987 = vmatpush3.bf16.msra.mxu1 %v3984_v24  ;;  %3961 = vmatprep.subr.bf16.mxu0 %v3960_v27 }
 0x3c0   :  { %3989 = vmatprep.subr.bf16.mxu1 %v3988_v19 }
 0x3c2   :  { %3963 = vmatpush3.bf16.msra.mxu0 %v3962_v29 }
 0x3c3   :  { %3991 = vmatpush3.bf16.msra.mxu1 %v3988_v19  ;;  %3965 = vmatprep.subr.bf16.mxu0 %v3964_v37  ;;  %v1756_v37 = vld [vmem:[%s6309_s5 + $0x8] sm:$0xff] }
 0x3c4   :  { %3993 = vmatprep.subr.bf16.mxu1 %v3992_v44 }
 0x3c6   :  { %3967 = vmatpush3.bf16.msra.mxu0 %v3966_v40 }
 0x3c7   :  { %3995 = vmatpush3.bf16.msra.mxu1 %v3992_v44  ;;  %3969 = vmatprep.subr.bf16.mxu0 %v3968_v47  ;;  %v4010_v47 = vpack.c.bf16 %v1756_v37, %v1755_v32  ;;  %v1762_v32 = vld [vmem:[%s6309_s5 + $0x38] sm:$0xff] }
 0x3c8   :  { %3997 = vmatprep.subr.bf16.mxu1 %v3996_v56 }
 0x3ca   :  { %3971 = vmatpush3.bf16.msra.mxu0 %v3970_v35 }
 0x3cb   :  { %3999 = vmatpush3.bf16.msra.mxu1 %v3996_v56  ;;  %3973 = vmatprep.subr.bf16.mxu0 %v3972_v60  ;;  %v1787_v56 = vld [vmem:[%s6309_s5 + $0x100] sm:$0xff] }
 0x3cc   :  { %4001 = vmatprep.subr.bf16.mxu1 %v4000_v51  ;;  %v4042_v49 = vpack.c.bf16 %v1788_v57, %v1787_v56  ;;  %v1782_v56 = vld [vmem:[%s6309_s5 + $0xd8] sm:$0xff] }
 0x3ce   :  { %3975 = vmatpush3.bf16.msra.mxu0 %v3974_v1  ;;  %v1805_v1 = vld [vmem:[%s6309_s5 + $0x190] sm:$0xff] }
 0x3cf   :  { %4003 = vmatpush3.bf16.msra.mxu1 %v4000_v51  ;;  %4009 = vmatprep.subr.bf16.mxu0 %v4008_v11  ;;  %v1789_v51 = vld [vmem:[%s6309_s5 + $0x110] sm:$0xff] }
 0x3d0   :  { %4005 = vmatprep.subr.bf16.mxu1 %v4004_v6 }
 0x3d3   :  { %4007 = vmatpush3.bf16.msra.mxu1 %v4004_v6 }
 0x3d4   :  { %4041 = vmatprep.subr.bf16.mxu1 %v4040_v14  ;;  %v1760_v14 = vld [vmem:[%s6309_s5 + $0x28] sm:$0xff] }
 0x483   :  { %v3020_v15 = vpop.f32.mrb[32].mxu0 }
 0x484   :  { %v3021_v62 = vpop.f32.mrb[33].mxu0 }
 0x485   :  { %v3022_v16 = vadd.f32 %v3021_v62, %v3020_v15  ;;  %v4044_v15 = vpack.c.bf16 %v1806_v2, %v1805_v1  ;;  %v1807_v62 = vld [vmem:[%s6309_s5 + $0x1a0] sm:$0xff]  ;;  %v1798_v1 = vld [vmem:[%s6309_s5 + $0x158] sm:$0xff] }
 0x487   :  { %v3023_v10 = vpop.f32.mrb[34].mxu0 }
 0x488   :  { %v3582_v3 = vpop.f32.mrb[16].mxu1  ;;  %v3024_v17 = vpop.f32.mrb[35].mxu0 }
 0x489   :  { %v3025_v18 = vadd.f32 %v3024_v17, %v3023_v10  ;;  %v1382_v21 = vpop.f32.mrb[17].mxu1  ;;  %v1808_v17 = vld [vmem:[%s6309_s5 + $0x1a8] sm:$0xff] }
 0x48a   :  { %v1383_v22 = vadd.f32 %v3022_v16, %v1382_v21  ;;  %v4046_v21 = vpack.c.bf16 %v1790_v12, %v1789_v51  ;;  %v1783_v51 = vld [vmem:[%s6309_s5 + $0xe0] sm:$0xff]  ;;  %v1816_v12 = vld [vmem:[%s6309_s5 + $0x1e8] sm:$0xff] }
 0x48b   :  { %v1388_v24 = vadd.f32 %v3582_v3, %v3025_v18  ;;  %v3026_v23 = vpop.f32.mrb[36].mxu0  ;;  %v4016_v3 = vpack.c.bf16 %v1776_v5, %v1775_v4  ;;  %v1777_v18 = vld [vmem:[%s6309_s5 + $0xb0] sm:$0xff]  ;;  %v1784_v4 = vld [vmem:[%s6309_s5 + $0xe8] sm:$0xff] }
 0x48c   :  { %v1401_v52 = vmul.f32 0.1, %v1383_v22  ;;  %v3585_v26 = vpop.f32.mrb[18].mxu1  ;;  %v3027_v27 = vpop.f32.mrb[37].mxu0  ;;  %v4018_v22 = vpack.c.bf16 %v1760_v14, %v1759_v13  ;;  %v4032_v5 = vpack.c.bf16 %v1784_v4, %v1783_v51  ;;  %v1799_v13 = vld [vmem:[%s6309_s5 + $0x160] sm:$0xff]  ;;  %v1800_v14 = vld [vmem:[%s6309_s5 + $0x168] sm:$0xff] }
 0x48d   :  { %v1402_v7 = vmul.f32 0.1, %v1388_v24  ;;  %v3028_v28 = vadd.f32 %v3027_v27, %v3026_v23  ;;  %v1392_v29 = vpop.f32.mrb[19].mxu1  ;;  %v1791_v27 = vld [vmem:[%s6309_s5 + $0x120] sm:$0xff] }
 0x48e   :  { %v1405_v30 = vadd.f32 %v1401_v52, %v5055_v20  ;;  %v1774_v20 = vld [vmem:[%s6309_s5 + $0x98] sm:$0xff] }
 0x48f   :  { %v1406_v19 = vadd.f32 %v1402_v7, %v5064_v25  ;;  %v1393_v33 = vadd.f32 %v3028_v28, %v1392_v29  ;;  %v3029_v36 = vpop.f32.mrb[38].mxu0  ;;  %v4012_v48 = vpack.c.bf16 %v1774_v20, %v1773_v38  ;;  %v4048_v28 = vpack.c.bf16 %v1808_v17, %v1807_v62  ;;  %v1793_v38 = vld [vmem:[%s6309_s5 + $0x130] sm:$0xff]  ;;  %v1794_v20 = vld [vmem:[%s6309_s5 + $0x138] sm:$0xff] }
 0x490   :  { %v1461_v39 = vrot.slane %v1405_v30, 7  ;;  %1557 = vmatprep.mubr.f32.mxu0 %v1405_v30  ;;  %v3030_v40 = vpop.f32.mrb[39].mxu0  ;;  %v1477_v41 = vrot.slane %v1405_v30, 1  ;;  %v1761_v30 = vld [vmem:[%s6309_s5 + $0x30] sm:$0xff]  ;;  %v1770_v17 = vld [vmem:[%s6309_s5 + $0x78] sm:$0xff] }
 0x491   :  { %v1403_v43 = vmul.f32 0.1, %v1393_v33  ;;  %v3031_v25 = vadd.f32 %v3030_v40, %v3029_v36  ;;  %v1478_v44 = vrot.slane %v1406_v19, 1  ;;  %v1462_v45 = vrot.slane %v1406_v19, 7  ;;  %v1779_v40 = vld [vmem:[%s6309_s5 + $0xc0] sm:$0xff]  ;;  %v1785_v62 = vld [vmem:[%s6309_s5 + $0xf0] sm:$0xff] }
 0x492   :  { %v1472_v46 = vsel %vm163_vm2, 0.0, %v1461_v39  ;;  %v4022_v36 = vpack.c.bf16 %v1762_v32, %v1761_v30 }
 0x493   :  { %v1473_v53 = vmul.f32 %v4529_v31, %v1472_v46  ;;  %v1407_v35 = vadd.f32 %v1403_v43, %v5085_v42  ;;  %v1398_v54 = vadd.f32 %v3585_v26, %v3031_v25  ;;  %v1479_v55 = vsel %vm180_vm0, %v1477_v41, %v1478_v44  ;;  %v1757_v31 = vld [vmem:[%s6309_s5 + $0x10] sm:$0xff]  ;;  %v1758_v42 = vld [vmem:[%s6309_s5 + $0x18] sm:$0xff]  ;;  %v1780_v41 = vld [vmem:[%s6309_s5 + $0xc8] sm:$0xff] }
 0x494   :  { %3618 = vmatprep.mubr.f32.mxu1 %v1479_v55  ;;  %v1463_v59 = vsel %vm163_vm2, %v1461_v39, %v1462_v45  ;;  %v4014_v11 = vpack.c.bf16 %v1758_v42, %v1757_v31  ;;  %v4054_v39 = vpack.c.bf16 %v1794_v20, %v1793_v38  ;;  %v4024_v43 = vpack.c.bf16 %v1780_v41, %v1779_v40  ;;  %v1763_v25 = vld [vmem:[%s6309_s5 + $0x40] sm:$0xff]  ;;  %v1781_v55 = vld [vmem:[%s6309_s5 + $0xd0] sm:$0xff]  ;;  %v1766_v31 = vld [vmem:[%s6309_s5 + $0x58] sm:$0xff] }
 0x495   :  { %v1464_v60 = vrot.slane %v1407_v35, 7  ;;  %v1480_v61 = vrot.slane %v1407_v35, 1  ;;  %v1404_v0 = vmul.f32 0.1, %v1398_v54  ;;  %1558 = vmatmul.mubr.f32.vlgmr.msra.gmra.mrb[40].mxu0 %v1473_v53  ;;  %v1796_v53 = vld [vmem:[%s6309_s5 + $0x148] sm:$0xff]  ;;  %v4028_v57 = vpack.c.bf16 %v1782_v56, %v1781_v55  ;;  %v1813_v42 = vld [vmem:[%s6309_s5 + $0x1d0] sm:$0xff] }
 0x496   :  { %1562 = vmatprep.mubr.f32.mxu0 %v1406_v19  ;;  %4011 = vmatpush3.bf16.msra.mxu0 %v4010_v47  ;;  %v1810_v19 = vld [vmem:[%s6309_s5 + $0x1b8] sm:$0xff]  ;;  %v1812_v47 = vld [vmem:[%s6309_s5 + $0x1c8] sm:$0xff]  ;;  %v5626_v20 = vld [vmem:[%s6309_s5 + $0x290] sm:$0xff] }
 0x497   :  { %v1408_v6 = vadd.f32 %v1404_v0, %v5105_v58  ;;  %v1481_v8 = vsel %vm180_vm0, %v1478_v44, %v1480_v61  ;;  %v1465_v9 = vsel %vm163_vm2, %v1462_v45, %v1464_v60  ;;  %4013 = vmatprep.subr.bf16.mxu0 %v4012_v48  ;;  %v1764_v44 = vld [vmem:[%s6309_s5 + $0x48] sm:$0xff]  ;;  %v1811_v45 = vld [vmem:[%s6309_s5 + $0x1c0] sm:$0xff]  ;;  %v1797_v0 = vld [vmem:[%s6309_s5 + $0x150] sm:$0xff] }
 0x498   :  { %v1490_v58 = vmul.f32 %v4536_v34, %v1481_v8  ;;  %v1778_v34 = vld [vmem:[%s6309_s5 + $0xb8] sm:$0xff]  ;;  %v1475_v24 = vmul.f32 %v4588_v63, %v1465_v9  ;;  %v1792_v63 = vld [vmem:[%s6309_s5 + $0x128] sm:$0xff]  ;;  %v4026_v46 = vpack.c.bf16 %v1764_v44, %v1763_v25  ;;  %v1795_v48 = vld [vmem:[%s6309_s5 + $0x140] sm:$0xff] }
 0x499   :  { %1563 = vmatmul.mubr.f32.gmra.mrb[42].mxu0 %v1463_v59  ;;  %v1482_v16 = vrot.slane %v1408_v6, 1  ;;  %v1466_v10 = vrot.slane %v1408_v6, 7  ;;  %v4020_v29 = vpack.c.bf16 %v1778_v34, %v1777_v18  ;;  %v4050_v33 = vpack.c.bf16 %v1792_v63, %v1791_v27  ;;  %v1765_v59 = vld [vmem:[%s6309_s5 + $0x50] sm:$0xff]  ;;  %v1768_v8 = vld [vmem:[%s6309_s5 + $0x68] sm:$0xff]  ;;  %v1815_v9 = vld [vmem:[%s6309_s5 + $0x1e0] sm:$0xff] }
 0x49a   :  { %1567 = vmatprep.mubr.f32.mxu0 %v1407_v35  ;;  %3619 = vmatmul.mubr.f32.vlgmr.msra.gmra.mrb[20].mxu1 %v1490_v58  ;;  %v4056_v35 = vpack.c.bf16 %v1812_v47, %v1811_v45  ;;  %v4058_v54 = vpack.c.bf16 %v1796_v53, %v1795_v48  ;;  %v4064_v58 = vpack.c.bf16 %v1816_v12, %v1815_v9  ;;  %v1817_v18 = vld [vmem:[%s6309_s5 + $0x1f0] sm:$0xff]  ;;  %v1836_v27 = vld [vmem:[%s6309_s5 + $0x288] sm:$0xff]  ;;  %v5641_v25 = vld [vmem:[%s6309_s5 + $0x218] sm:$0xff] }
 0x49b   :  { %v1483_v23 = vsel %vm180_vm0, %v1480_v61, %v1482_v16  ;;  %v1488_v52 = vsel %vm180_vm0, %v1482_v16, 0.0  ;;  %v1467_v26 = vsel %vm163_vm2, %v1464_v60, %v1466_v10  ;;  %4043 = vmatpush3.bf16.msra.mxu1 %v4042_v49  ;;  %4015 = vmatpush3.bf16.msra.mxu0 %v4014_v11  ;;  %v4030_v60 = vpack.c.bf16 %v1766_v31, %v1765_v59  ;;  %v1814_v61 = vld [vmem:[%s6309_s5 + $0x1d8] sm:$0xff]  ;;  %v1868_v63 = vld [vmem:[%s6309_s5 + $0x388] sm:$0xff]  ;;  %v5636_v40 = vld [vmem:[%s6309_s5 + $0x210] sm:$0xff] }
 0x49c   :  { %3621 = vmatprep.mubr.f32.mxu1 %v1483_v23  ;;  %v1492_v7 = vmul.f32 %v4566_v50, %v1488_v52  ;;  %4045 = vmatprep.subr.bf16.mxu1 %v4044_v15  ;;  %v1809_v50 = vld [vmem:[%s6309_s5 + $0x1b0] sm:$0xff]  ;;  %v4060_v2 = vpack.c.bf16 %v1814_v61, %v1813_v42  ;;  %v4062_v49 = vpack.c.bf16 %v1798_v1, %v1797_v0  ;;  %v1786_v16 = vld [vmem:[%s6309_s5 + $0xf8] sm:$0xff]  ;;  %v5621_v38 = vld [vmem:[%s6309_s5 + $0x308] sm:$0xff] }
 0x49d   :  { %1568 = vmatmul.mubr.f32.gmra.mrb[44].mxu0 %v1475_v24  ;;  %4017 = vmatprep.subr.bf16.mxu0 %v4016_v3  ;;  %v4052_v37 = vpack.c.bf16 %v1810_v19, %v1809_v50  ;;  %v4066_v15 = vpack.c.bf16 %v1800_v14, %v1799_v13  ;;  %v4036_v10 = vpack.c.bf16 %v1786_v16, %v1785_v62  ;;  %v1769_v3 = vld [vmem:[%s6309_s5 + $0x70] sm:$0xff]  ;;  %v1802_v24 = vld [vmem:[%s6309_s5 + $0x178] sm:$0xff]  ;;  %v5606_v19 = vld [vmem:[%s6309_s5 + $0x200] sm:$0xff] }
 0x49e   :  { %1572 = vmatprep.mubr.f32.mxu0 %v1408_v6  ;;  %3622 = vmatmul.mubr.f32.gmra.mrb[22].mxu1 %v1492_v7  ;;  %v1767_v6 = vld [vmem:[%s6309_s5 + $0x60] sm:$0xff]  ;;  %v4038_v34 = vpack.c.bf16 %v1770_v17, %v1769_v3  ;;  %v5646_v44 = vld [vmem:[%s6309_s5 + $0x390] sm:$0xff]  ;;  %v5651_v45 = vld [vmem:[%s6309_s5 + $0x398] sm:$0xff] }
 0x49f   :  { %4047 = vmatpush3.bf16.msra.mxu1 %v4046_v21  ;;  %4019 = vmatpush3.bf16.msra.mxu0 %v4018_v22  ;;  %v4034_v11 = vpack.c.bf16 %v1768_v8, %v1767_v6  ;;  %v1818_v21 = vld [vmem:[%s6309_s5 + $0x1f8] sm:$0xff]  ;;  %v1801_v22 = vld [vmem:[%s6309_s5 + $0x170] sm:$0xff]  ;;  %v5671_v55 = vld [vmem:[%s6309_s5 + $0x2a8] sm:$0xff] }
 0x4a0   :  { %4049 = vmatprep.subr.bf16.mxu1 %v4048_v28  ;;  %4021 = vmatprep.subr.bf16.mxu0 %v4020_v29  ;;  %v4068_v23 = vpack.c.bf16 %v1818_v21, %v1817_v18  ;;  %v4070_v52 = vpack.c.bf16 %v1802_v24, %v1801_v22  ;;  %v1867_v28 = vld [vmem:[%s6309_s5 + $0x380] sm:$0xff]  ;;  %v5656_v48 = vld [vmem:[%s6309_s5 + $0x310] sm:$0xff]  ;;  %v5661_v53 = vld [vmem:[%s6309_s5 + $0x318] sm:$0xff] }
 0x4a1   :  { %1573 = vmatmul.mubr.f32.gmra.mrb[46].mxu0 %v1467_v26  ;;  %v1835_v26 = vld [vmem:[%s6309_s5 + $0x280] sm:$0xff]  ;;  %v4104_v29 = vpack.c.bf16 %v1868_v63, %v1867_v28 }
 0x4a2   :  { %v4072_v7 = vpack.c.bf16 %v1836_v27, %v1835_v26  ;;  %v5676_v56 = vld [vmem:[%s6309_s5 + $0x3a0] sm:$0xff] }
 0x4a3   :  { %4051 = vmatpush3.bf16.msra.mxu1 %v4050_v33  ;;  %4023 = vmatpush3.bf16.msra.mxu0 %v4022_v36  ;;  %v5611_v33 = vld [vmem:[%s6309_s5 + $0x208] sm:$0xff] }
 0x4a4   :  { %4053 = vmatprep.subr.bf16.mxu1 %v4052_v37  ;;  %4025 = vmatprep.subr.bf16.mxu0 %v4024_v43  ;;  %v5616_v37 = vld [vmem:[%s6309_s5 + $0x300] sm:$0xff]  ;;  %v4074_v42 = vpack.c.bf16 %v5611_v33, %v5606_v19 }
 0x4a5   :  { %v4106_v0 = vpack.c.bf16 %v5621_v38, %v5616_v37  ;;  %v1823_v37 = vld [vmem:[%s6309_s5 + $0x220] sm:$0xff] }
 0x4a7   :  { %4055 = vmatpush3.bf16.msra.mxu1 %v4054_v39  ;;  %4027 = vmatpush3.bf16.msra.mxu0 %v4026_v46  ;;  %v5631_v39 = vld [vmem:[%s6309_s5 + $0x298] sm:$0xff] }
 0x4a8   :  { %4057 = vmatprep.subr.bf16.mxu1 %v4056_v35  ;;  %4029 = vmatprep.subr.bf16.mxu0 %v4028_v57  ;;  %v5666_v35 = vld [vmem:[%s6309_s5 + $0x2a0] sm:$0xff]  ;;  %v5681_v57 = vld [vmem:[%s6309_s5 + $0x3a8] sm:$0xff]  ;;  %v4076_v1 = vpack.c.bf16 %v5631_v39, %v5626_v20 }
 0x4a9   :  { %v4080_v6 = vpack.c.bf16 %v5671_v55, %v5666_v35  ;;  %v4112_v8 = vpack.c.bf16 %v5681_v57, %v5676_v56  ;;  %v1858_v35 = vld [vmem:[%s6309_s5 + $0x338] sm:$0xff]  ;;  %v1843_v55 = vld [vmem:[%s6309_s5 + $0x2c0] sm:$0xff]  ;;  %v1876_v56 = vld [vmem:[%s6309_s5 + $0x3c8] sm:$0xff] }
 0x4ab   :  { %4059 = vmatpush3.bf16.msra.mxu1 %v4058_v54  ;;  %4031 = vmatpush3.bf16.msra.mxu0 %v4030_v60 }
 0x4ac   :  { %4061 = vmatprep.subr.bf16.mxu1 %v4060_v2  ;;  %4033 = vmatprep.subr.bf16.mxu0 %v4032_v5  ;;  %v4078_v2 = vpack.c.bf16 %v5641_v25, %v5636_v40  ;;  %v4110_v5 = vpack.c.bf16 %v5661_v53, %v5656_v48  ;;  %v1825_v40 = vld [vmem:[%s6309_s5 + $0x230] sm:$0xff]  ;;  %v1826_v25 = vld [vmem:[%s6309_s5 + $0x238] sm:$0xff] }
 0x4ad   :  { %v4086_v57 = vpack.c.bf16 %v1826_v25, %v1825_v40  ;;  %v1900_v40 = vld [vmem:[%s6309_s5 + $0x488] sm:$0xff]  ;;  %v1931_v25 = vld [vmem:[%s6309_s5 + $0x580] sm:$0xff] }
 0x4af   :  { %4063 = vmatpush3.bf16.msra.mxu1 %v4062_v49  ;;  %4035 = vmatpush3.bf16.msra.mxu0 %v4034_v11  ;;  %v4108_v49 = vpack.c.bf16 %v5651_v45, %v5646_v44 }
 0x4b0   :  { %4065 = vmatprep.subr.bf16.mxu1 %v4064_v58  ;;  %4037 = vmatprep.subr.bf16.mxu0 %v4036_v10 }
 0x4b3   :  { %4067 = vmatpush3.bf16.msra.mxu1 %v4066_v15  ;;  %4039 = vmatpush3.bf16.msra.mxu0 %v4038_v34 }
 0x4b4   :  { %4069 = vmatprep.subr.bf16.mxu1 %v4068_v23  ;;  %4073 = vmatprep.subr.bf16.mxu0 %v4072_v7 }
 0x4b7   :  { %4071 = vmatpush3.bf16.msra.mxu1 %v4070_v52 }
 0x4b8   :  { %4105 = vmatprep.subr.bf16.mxu1 %v4104_v29 }
 0x568   :  { %v3084_v30 = vpop.f32.mrb[40].mxu0 }
 0x569   :  { %v3085_v32 = vpop.f32.mrb[41].mxu0 }
 0x56a   :  { %v3086_v50 = vadd.f32 %v3085_v32, %v3084_v30 }
 0x56c   :  { %v3087_v36 = vpop.f32.mrb[42].mxu0 }
 0x56d   :  { %v3088_v41 = vpop.f32.mrb[43].mxu0  ;;  %v3620_v43 = vpop.f32.mrb[20].mxu1 }
 0x56e   :  { %v3089_v46 = vadd.f32 %v3088_v41, %v3087_v36  ;;  %v1644_v47 = vpop.f32.mrb[21].mxu1  ;;  %v1824_v41 = vld [vmem:[%s6309_s5 + $0x228] sm:$0xff] }
 0x56f   :  { %v1645_v54 = vadd.f32 %v3086_v50, %v1644_v47 }
 0x570   :  { %v5683_v59 = vadd.f32 %v3620_v43, %v3089_v46  ;;  %v3090_v31 = vpop.f32.mrb[44].mxu0  ;;  %v1855_v43 = vld [vmem:[%s6309_s5 + $0x320] sm:$0xff] }
 0x571   :  { %v3091_v60 = vpop.f32.mrb[45].mxu0  ;;  %v3623_v61 = vpop.f32.mrb[22].mxu1  ;;  %v1664_v9 = vrot.slane %v1645_v54, 1  ;;  %v1668_v11 = vrot.slane %v1645_v54, 3  ;;  %v1666_v12 = vrot.slane %v1645_v54, 2  ;;  %v1672_v13 = vrot.slane %v1645_v54, 5 }
 0x572   :  { %v3092_v51 = vadd.f32 %v3091_v60, %v3090_v31  ;;  %v1654_v4 = vpop.f32.mrb[23].mxu1  ;;  %v1676_v15 = vrot.slane %v1645_v54, 7  ;;  %v1670_v62 = vrot.slane %v1645_v54, 4  ;;  %v1674_v16 = vrot.slane %v1645_v54, 6  ;;  %v1841_v31 = vld [vmem:[%s6309_s5 + $0x2b0] sm:$0xff] }
 0x573   :  { %v1679_v3 = vrot.slane %v5683_v59, 1  ;;  %v1683_v17 = vrot.slane %v5683_v59, 3  ;;  %v1681_v18 = vrot.slane %v5683_v59, 2  ;;  %v1687_v34 = vrot.slane %v5683_v59, 5 }
 0x574   :  { %v1655_v14 = vadd.f32 %v3092_v51, %v1654_v4  ;;  %v3093_v58 = vpop.f32.mrb[46].mxu0  ;;  %v1691_v33 = vrot.slane %v5683_v59, 7  ;;  %v1873_v51 = vld [vmem:[%s6309_s5 + $0x3b0] sm:$0xff]  ;;  %v1874_v4 = vld [vmem:[%s6309_s5 + $0x3b8] sm:$0xff] }
 0x575   :  { %v3094_v10 = vpop.f32.mrb[47].mxu0  ;;  %v4116_v53 = vpack.c.bf16 %v1874_v4, %v1873_v51  ;;  %v1833_v51 = vld [vmem:[%s6309_s5 + $0x270] sm:$0xff]  ;;  %v1834_v4 = vld [vmem:[%s6309_s5 + $0x278] sm:$0xff] }
 0x576   :  { %v3095_v21 = vadd.f32 %v3094_v10, %v3093_v58  ;;  %v1740_v22 = vsel %vm163_vm2, %v1664_v9, %v1655_v14  ;;  %v1700_v24 = vrot.slane %v1655_v14, 7  ;;  %v2721_v23 = vrot.slane %v1655_v14, 10  ;;  %v1828_v10 = vld [vmem:[%s6309_s5 + $0x248] sm:$0xff] }
 0x577   :  { %2082 = vmatprep.mubr.f32.mxu0 %v1740_v22  ;;  %v2720_v52 = vrot.slane %v1655_v14, 9  ;;  %v2723_v26 = vrot.slane %v1655_v14, 12  ;;  %v2722_v27 = vrot.slane %v1655_v14, 11  ;;  %v2724_v7 = vrot.slane %v1655_v14, 13  ;;  %v1877_v22 = vld [vmem:[%s6309_s5 + $0x3d0] sm:$0xff] }
 0x578   :  { %v1660_v28 = vadd.f32 %v3623_v61, %v3095_v21  ;;  %v1739_v63 = vsel %vm163_vm2, %v1645_v54, %v1700_v24  ;;  %v1742_v29 = vsel %vm163_vm2, %v1668_v11, %v2721_v23  ;;  %v1715_v30 = vrot.slane %v1700_v24, 7  ;;  %v1856_v54 = vld [vmem:[%s6309_s5 + $0x328] sm:$0xff]  ;;  %v1846_v21 = vld [vmem:[%s6309_s5 + $0x2d8] sm:$0xff] }
 0x579   :  { %2083 = vmatmul.mubr.f32.vlgmr.msra.gmra.mrb[48].mxu0 %v1739_v63  ;;  %2152 = vmatprep.mubr.f32.mxu1 %v1742_v29  ;;  %v1741_v32 = vsel %vm163_vm2, %v1666_v12, %v2720_v52  ;;  %v1744_v50 = vsel %vm163_vm2, %v1672_v13, %v2723_v26  ;;  %v5711_v19 = vsel %vm163_vm2, %v1670_v62, %v2722_v27  ;;  %v1685_v61 = vrot.slane %v5683_v59, 4  ;;  %v1878_v24 = vld [vmem:[%s6309_s5 + $0x3d8] sm:$0xff]  ;;  %v1829_v27 = vld [vmem:[%s6309_s5 + $0x250] sm:$0xff] }
 0x57a   :  { %4075 = vmatpush3.bf16.msra.mxu0 %v4074_v42  ;;  %2153 = vmatmul.mubr.f32.vlgmr.msra.gmra.mrb[24].mxu1 %v1741_v32  ;;  %v1746_v36 = vsel %vm163_vm2, %v1676_v15, %v1715_v30  ;;  %v5719_v38 = vsel %vm163_vm2, %v1674_v16, %v2724_v7  ;;  %v5722_v20 = vsel %vm163_vm2, %v1679_v3, %v1660_v28  ;;  %v2727_v39 = vrot.slane %v1660_v28, 10  ;;  %v1842_v42 = vld [vmem:[%s6309_s5 + $0x2b8] sm:$0xff]  ;;  %v1827_v16 = vld [vmem:[%s6309_s5 + $0x240] sm:$0xff]  ;;  %v1848_v32 = vld [vmem:[%s6309_s5 + $0x2e8] sm:$0xff] }
 0x57b   :  { %2222 = vmatprep.mubr.f32.mxu0 %v1744_v50  ;;  %4107 = vmatpush3.bf16.msra.mxu1 %v4106_v0  ;;  %v1708_v44 = vrot.slane %v1660_v28, 7  ;;  %v2726_v45 = vrot.slane %v1660_v28, 9  ;;  %v2729_v46 = vrot.slane %v1660_v28, 12  ;;  %v2728_v47 = vrot.slane %v1660_v28, 11  ;;  %v1859_v3 = vld [vmem:[%s6309_s5 + $0x340] sm:$0xff]  ;;  %v1830_v7 = vld [vmem:[%s6309_s5 + $0x258] sm:$0xff] }
 0x57c   :  { %2292 = vmatprep.mubr.f32.mxu1 %v1746_v36  ;;  %4077 = vmatprep.subr.bf16.mxu0 %v4076_v1  ;;  %v5740_v60 = vsel %vm163_vm2, %v1683_v17, %v2727_v39  ;;  %v1689_v0 = vrot.slane %v5683_v59, 6  ;;  %v2730_v1 = vrot.slane %v1660_v28, 13  ;;  %v4084_v15 = vpack.c.bf16 %v1842_v42, %v1841_v31  ;;  %v1861_v28 = vld [vmem:[%s6309_s5 + $0x350] sm:$0xff]  ;;  %v1862_v29 = vld [vmem:[%s6309_s5 + $0x358] sm:$0xff]  ;;  %v1847_v30 = vld [vmem:[%s6309_s5 + $0x2e0] sm:$0xff] }
 0x57d   :  { %4109 = vmatprep.subr.bf16.mxu1 %v4108_v49  ;;  %v5752_v9 = vsel %vm163_vm2, %v5683_v59, %v1708_v44  ;;  %v5755_v11 = vsel %vm163_vm2, %v1681_v18, %v2726_v45  ;;  %v5758_v12 = vsel %vm163_vm2, %v1687_v34, %v2729_v46  ;;  %v1722_v13 = vrot.slane %v1708_v44, 7  ;;  %v1860_v18 = vld [vmem:[%s6309_s5 + $0x348] sm:$0xff]  ;;  %v1845_v34 = vld [vmem:[%s6309_s5 + $0x2d0] sm:$0xff]  ;;  %v1879_v50 = vld [vmem:[%s6309_s5 + $0x3e0] sm:$0xff] }
 0x57e   :  { %4079 = vmatpush3.bf16.msra.mxu0 %v4078_v2  ;;  %v4082_v49 = vpack.c.bf16 %v1824_v41, %v1823_v37  ;;  %v5764_v14 = vsel %vm163_vm2, %v1685_v61, %v2728_v47  ;;  %v5767_v58 = vsel %vm163_vm2, %v1689_v0, %v2730_v1  ;;  %v4114_v59 = vpack.c.bf16 %v1856_v54, %v1855_v43  ;;  %v1857_v2 = vld [vmem:[%s6309_s5 + $0x330] sm:$0xff]  ;;  %v1831_v41 = vld [vmem:[%s6309_s5 + $0x260] sm:$0xff]  ;;  %v1832_v43 = vld [vmem:[%s6309_s5 + $0x268] sm:$0xff] }
 0x57f   :  { %4111 = vmatpush3.bf16.msra.mxu1 %v4110_v5  ;;  %4081 = vmatprep.subr.bf16.mxu0 %v4080_v6  ;;  %v5785_v48 = vsel %vm163_vm2, %v1691_v33, %v1722_v13  ;;  %v1844_v5 = vld [vmem:[%s6309_s5 + $0x2c8] sm:$0xff]  ;;  %v1875_v6 = vld [vmem:[%s6309_s5 + $0x3c0] sm:$0xff]  ;;  %v4090_v23 = vpack.c.bf16 %v1828_v10, %v1827_v16  ;;  %v4122_v52 = vpack.c.bf16 %v1860_v18, %v1859_v3  ;;  %v1849_v47 = vld [vmem:[%s6309_s5 + $0x2f0] sm:$0xff] }
 0x580   :  { %4113 = vmatprep.subr.bf16.mxu1 %v4112_v8  ;;  %v4118_v8 = vpack.c.bf16 %v1858_v35, %v1857_v2  ;;  %v4088_v62 = vpack.c.bf16 %v1844_v5, %v1843_v55  ;;  %v4120_v17 = vpack.c.bf16 %v1876_v56, %v1875_v6  ;;  %v4092_v26 = vpack.c.bf16 %v1846_v21, %v1845_v34  ;;  %v1880_v33 = vld [vmem:[%s6309_s5 + $0x3e8] sm:$0xff]  ;;  %v1863_v44 = vld [vmem:[%s6309_s5 + $0x360] sm:$0xff]  ;;  %v1850_v54 = vld [vmem:[%s6309_s5 + $0x2f8] sm:$0xff] }
 0x581   :  { %v4124_v63 = vpack.c.bf16 %v1878_v24, %v1877_v22  ;;  %v4094_v36 = vpack.c.bf16 %v1830_v7, %v1829_v27  ;;  %v4126_v37 = vpack.c.bf16 %v1862_v29, %v1861_v28  ;;  %v4096_v39 = vpack.c.bf16 %v1848_v32, %v1847_v30  ;;  %v1864_v46 = vld [vmem:[%s6309_s5 + $0x368] sm:$0xff]  ;;  %v1881_v31 = vld [vmem:[%s6309_s5 + $0x3f0] sm:$0xff]  ;;  %v1882_v42 = vld [vmem:[%s6309_s5 + $0x3f8] sm:$0xff] }
 0x582   :  { %4083 = vmatpush3.bf16.msra.mxu0 %v4082_v49  ;;  %v4128_v45 = vpack.c.bf16 %v1880_v33, %v1879_v50  ;;  %v4098_v61 = vpack.c.bf16 %v1832_v43, %v1831_v41  ;;  %v4130_v0 = vpack.c.bf16 %v1864_v46, %v1863_v44  ;;  %v4100_v1 = vpack.c.bf16 %v1850_v54, %v1849_v47  ;;  %v1865_v13 = vld [vmem:[%s6309_s5 + $0x370] sm:$0xff]  ;;  %v1932_v2 = vld [vmem:[%s6309_s5 + $0x588] sm:$0xff]  ;;  %v1883_v5 = vld [vmem:[%s6309_s5 + $0x400] sm:$0xff] }
 0x583   :  { %4115 = vmatpush3.bf16.msra.mxu1 %v4114_v59  ;;  %4085 = vmatprep.subr.bf16.mxu0 %v4084_v15  ;;  %v4132_v49 = vpack.c.bf16 %v1882_v42, %v1881_v31  ;;  %v1866_v59 = vld [vmem:[%s6309_s5 + $0x378] sm:$0xff]  ;;  %v1899_v15 = vld [vmem:[%s6309_s5 + $0x480] sm:$0xff]  ;;  %v1884_v6 = vld [vmem:[%s6309_s5 + $0x408] sm:$0xff]  ;;  %v4168_v56 = vpack.c.bf16 %v1932_v2, %v1931_v25 }
 0x584   :  { %4117 = vmatprep.subr.bf16.mxu1 %v4116_v53  ;;  %v4102_v53 = vpack.c.bf16 %v1834_v4, %v1833_v51  ;;  %v4134_v35 = vpack.c.bf16 %v1866_v59, %v1865_v13  ;;  %v4136_v55 = vpack.c.bf16 %v1900_v40, %v1899_v15  ;;  %v1902_v16 = vld [vmem:[%s6309_s5 + $0x498] sm:$0xff]  ;;  %v4138_v10 = vpack.c.bf16 %v1884_v6, %v1883_v5  ;;  %v1933_v3 = vld [vmem:[%s6309_s5 + $0x590] sm:$0xff]  ;;  %v1935_v7 = vld [vmem:[%s6309_s5 + $0x5a0] sm:$0xff] }
 0x585   :  { %v1885_v34 = vld [vmem:[%s6309_s5 + $0x410] sm:$0xff]  ;;  %v1886_v21 = vld [vmem:[%s6309_s5 + $0x418] sm:$0xff]  ;;  %v1936_v28 = vld [vmem:[%s6309_s5 + $0x5a8] sm:$0xff] }
 0x586   :  { %4087 = vmatpush3.bf16.msra.mxu0 %v4086_v57  ;;  %v1915_v57 = vld [vmem:[%s6309_s5 + $0x500] sm:$0xff]  ;;  %v1917_v22 = vld [vmem:[%s6309_s5 + $0x510] sm:$0xff]  ;;  %v1888_v32 = vld [vmem:[%s6309_s5 + $0x428] sm:$0xff] }
 0x587   :  { %4119 = vmatpush3.bf16.msra.mxu1 %v4118_v8  ;;  %4089 = vmatprep.subr.bf16.mxu0 %v4088_v62  ;;  %v1916_v8 = vld [vmem:[%s6309_s5 + $0x508] sm:$0xff]  ;;  %v1901_v62 = vld [vmem:[%s6309_s5 + $0x490] sm:$0xff]  ;;  %v1919_v50 = vld [vmem:[%s6309_s5 + $0x520] sm:$0xff] }
 0x588   :  { %4121 = vmatprep.subr.bf16.mxu1 %v4120_v17  ;;  %v1934_v17 = vld [vmem:[%s6309_s5 + $0x598] sm:$0xff]  ;;  %v4170_v18 = vpack.c.bf16 %v1916_v8, %v1915_v57  ;;  %v4140_v24 = vpack.c.bf16 %v1902_v16, %v1901_v62  ;;  %v1905_v33 = vld [vmem:[%s6309_s5 + $0x4b0] sm:$0xff]  ;;  %v1907_v31 = vld [vmem:[%s6309_s5 + $0x4c0] sm:$0xff] }
 0x589   :  { %v4172_v27 = vpack.c.bf16 %v1934_v17, %v1933_v3  ;;  %v1889_v44 = vld [vmem:[%s6309_s5 + $0x430] sm:$0xff]  ;;  %v1922_v54 = vld [vmem:[%s6309_s5 + $0x538] sm:$0xff]  ;;  %v1908_v42 = vld [vmem:[%s6309_s5 + $0x4c8] sm:$0xff] }
 0x58a   :  { %4091 = vmatpush3.bf16.msra.mxu0 %v4090_v23  ;;  %v1918_v23 = vld [vmem:[%s6309_s5 + $0x518] sm:$0xff]  ;;  %v1921_v46 = vld [vmem:[%s6309_s5 + $0x530] sm:$0xff]  ;;  %v4152_v4 = vpack.c.bf16 %v1908_v42, %v1907_v31  ;;  %v1891_v13 = vld [vmem:[%s6309_s5 + $0x440] sm:$0xff] }
 0x58b   :  { %4123 = vmatpush3.bf16.msra.mxu1 %v4122_v52  ;;  %4093 = vmatprep.subr.bf16.mxu0 %v4092_v26  ;;  %v1903_v52 = vld [vmem:[%s6309_s5 + $0x4a0] sm:$0xff]  ;;  %v1904_v26 = vld [vmem:[%s6309_s5 + $0x4a8] sm:$0xff]  ;;  %v4174_v29 = vpack.c.bf16 %v1918_v23, %v1917_v22  ;;  %v4182_v51 = vpack.c.bf16 %v1922_v54, %v1921_v46  ;;  %v1909_v25 = vld [vmem:[%s6309_s5 + $0x4d0] sm:$0xff] }
 0x58c   :  { %4125 = vmatprep.subr.bf16.mxu1 %v4124_v63  ;;  %v4142_v63 = vpack.c.bf16 %v1886_v21, %v1885_v34  ;;  %v4144_v30 = vpack.c.bf16 %v1904_v26, %v1903_v52  ;;  %v1923_v59 = vld [vmem:[%s6309_s5 + $0x540] sm:$0xff]  ;;  %v1924_v40 = vld [vmem:[%s6309_s5 + $0x548] sm:$0xff]  ;;  %v1910_v2 = vld [vmem:[%s6309_s5 + $0x4d8] sm:$0xff] }
 0x58d   :  { %v4186_v5 = vpack.c.bf16 %v1924_v40, %v1923_v59  ;;  %v4156_v6 = vpack.c.bf16 %v1910_v2, %v1909_v25  ;;  %v1894_v57 = vld [vmem:[%s6309_s5 + $0x458] sm:$0xff]  ;;  %v1925_v8 = vld [vmem:[%s6309_s5 + $0x550] sm:$0xff]  ;;  %v1912_v3 = vld [vmem:[%s6309_s5 + $0x4e8] sm:$0xff] }
 0x58e   :  { %4095 = vmatpush3.bf16.msra.mxu0 %v4094_v36  ;;  %v1906_v36 = vld [vmem:[%s6309_s5 + $0x4b8] sm:$0xff]  ;;  %v1943_v17 = vld [vmem:[%s6309_s5 + $0x5e0] sm:$0xff]  ;;  %v1896_v23 = vld [vmem:[%s6309_s5 + $0x468] sm:$0xff] }
 0x58f   :  { %4127 = vmatpush3.bf16.msra.mxu1 %v4126_v37  ;;  %4097 = vmatprep.subr.bf16.mxu0 %v4096_v39  ;;  %v1937_v37 = vld [vmem:[%s6309_s5 + $0x5b0] sm:$0xff]  ;;  %v4148_v43 = vpack.c.bf16 %v1906_v36, %v1905_v33  ;;  %v1926_v16 = vld [vmem:[%s6309_s5 + $0x558] sm:$0xff]  ;;  %v1927_v52 = vld [vmem:[%s6309_s5 + $0x560] sm:$0xff] }
 0x590   :  { %4129 = vmatprep.subr.bf16.mxu1 %v4128_v45  ;;  %v1890_v45 = vld [vmem:[%s6309_s5 + $0x438] sm:$0xff]  ;;  %v4190_v21 = vpack.c.bf16 %v1926_v16, %v1925_v8  ;;  %v1947_v46 = vld [vmem:[%s6309_s5 + $0x600] sm:$0xff]  ;;  %v1980_v42 = vld [vmem:[%s6309_s5 + $0x708] sm:$0xff] }
 0x591   :  { %v1930_v36 = vld [vmem:[%s6309_s5 + $0x578] sm:$0xff]  ;;  %v1979_v31 = vld [vmem:[%s6309_s5 + $0x700] sm:$0xff]  ;;  %v1952_v8 = vld [vmem:[%s6309_s5 + $0x628] sm:$0xff] }
 0x592   :  { %4099 = vmatpush3.bf16.msra.mxu0 %v4098_v61  ;;  %v1939_v61 = vld [vmem:[%s6309_s5 + $0x5c0] sm:$0xff]  ;;  %v1950_v59 = vld [vmem:[%s6309_s5 + $0x618] sm:$0xff]  ;;  %v1969_v16 = vld [vmem:[%s6309_s5 + $0x6b0] sm:$0xff] }
 0x593   :  { %4131 = vmatpush3.bf16.msra.mxu1 %v4130_v0  ;;  %4101 = vmatprep.subr.bf16.mxu0 %v4100_v1  ;;  %v1940_v0 = vld [vmem:[%s6309_s5 + $0x5c8] sm:$0xff]  ;;  %v4150_v1 = vpack.c.bf16 %v1890_v45, %v1889_v44  ;;  %v1982_v25 = vld [vmem:[%s6309_s5 + $0x718] sm:$0xff]  ;;  %v1967_v2 = vld [vmem:[%s6309_s5 + $0x6a0] sm:$0xff] }
 0x594   :  { %4133 = vmatprep.subr.bf16.mxu1 %v4132_v49  ;;  %v1892_v49 = vld [vmem:[%s6309_s5 + $0x448] sm:$0xff]  ;;  %v4184_v15 = vpack.c.bf16 %v1940_v0, %v1939_v61  ;;  %v1965_v61 = vld [vmem:[%s6309_s5 + $0x690] sm:$0xff]  ;;  %v1966_v0 = vld [vmem:[%s6309_s5 + $0x698] sm:$0xff] }
 0x595   :  { %v4204_v40 = vpack.c.bf16 %v1966_v0, %v1965_v61  ;;  %v2007_v61 = vld [vmem:[%s6309_s5 + $0x7e0] sm:$0xff]  ;;  %v2008_v0 = vld [vmem:[%s6309_s5 + $0x7e8] sm:$0xff] }
 0x596   :  { %4103 = vmatpush3.bf16.msra.mxu0 %v4102_v53  ;;  %v1941_v53 = vld [vmem:[%s6309_s5 + $0x5d0] sm:$0xff] }
 0x597   :  { %4135 = vmatpush3.bf16.msra.mxu1 %v4134_v35  ;;  %4137 = vmatprep.subr.bf16.mxu0 %v4136_v55  ;;  %v1942_v35 = vld [vmem:[%s6309_s5 + $0x5d8] sm:$0xff]  ;;  %v4154_v55 = vpack.c.bf16 %v1892_v49, %v1891_v13  ;;  %v4234_v13 = vpack.c.bf16 %v1980_v42, %v1979_v31  ;;  %v1949_v49 = vld [vmem:[%s6309_s5 + $0x610] sm:$0xff]  ;;  %v1975_v31 = vld [vmem:[%s6309_s5 + $0x6e0] sm:$0xff] }
 0x598   :  { %4169 = vmatprep.subr.bf16.mxu1 %v4168_v56  ;;  %v1893_v56 = vld [vmem:[%s6309_s5 + $0x450] sm:$0xff]  ;;  %v4188_v62 = vpack.c.bf16 %v1942_v35, %v1941_v53  ;;  %v1968_v53 = vld [vmem:[%s6309_s5 + $0x6a8] sm:$0xff] }
 0x599   :  { %2223 = vmatmul.mubr.f32.vlgmr.msra.gmra.mrb[50].mxu0 %v5711_v19  ;;  %v1887_v19 = vld [vmem:[%s6309_s5 + $0x420] sm:$0xff]  ;;  %v4158_v34 = vpack.c.bf16 %v1894_v57, %v1893_v56  ;;  %v4208_v57 = vpack.c.bf16 %v1968_v53, %v1967_v2  ;;  %v1976_v42 = vld [vmem:[%s6309_s5 + $0x6e8] sm:$0xff]  ;;  %v1978_v2 = vld [vmem:[%s6309_s5 + $0x6f8] sm:$0xff] }
 0x59a   :  { %2293 = vmatmul.mubr.f32.vlgmr.msra.gmra.mrb[26].mxu1 %v5719_v38  ;;  %4139 = vmatpush3.bf16.msra.mxu0 %v4138_v10  ;;  %v4176_v38 = vpack.c.bf16 %v1936_v28, %v1935_v7  ;;  %v4146_v39 = vpack.c.bf16 %v1888_v32, %v1887_v19  ;;  %v1911_v10 = vld [vmem:[%s6309_s5 + $0x4e0] sm:$0xff]  ;;  %v1913_v7 = vld [vmem:[%s6309_s5 + $0x4f0] sm:$0xff]  ;;  %v1914_v28 = vld [vmem:[%s6309_s5 + $0x4f8] sm:$0xff] }
 0x59b   :  { %2362 = vmatprep.mubr.f32.mxu0 %v5722_v20  ;;  %4171 = vmatpush3.bf16.msra.mxu1 %v4170_v18  ;;  %v1920_v20 = vld [vmem:[%s6309_s5 + $0x528] sm:$0xff]  ;;  %v4160_v22 = vpack.c.bf16 %v1912_v3, %v1911_v10  ;;  %v4164_v32 = vpack.c.bf16 %v1914_v28, %v1913_v7  ;;  %v1970_v10 = vld [vmem:[%s6309_s5 + $0x6b8] sm:$0xff]  ;;  %v2001_v3 = vld [vmem:[%s6309_s5 + $0x7b0] sm:$0xff] }
 0x59c   :  { %2432 = vmatprep.mubr.f32.mxu1 %v5740_v60  ;;  %4141 = vmatprep.subr.bf16.mxu0 %v4140_v24  ;;  %v1938_v60 = vld [vmem:[%s6309_s5 + $0x5b8] sm:$0xff]  ;;  %v4178_v41 = vpack.c.bf16 %v1920_v20, %v1919_v50  ;;  %v1944_v18 = vld [vmem:[%s6309_s5 + $0x5e8] sm:$0xff]  ;;  %v1895_v24 = vld [vmem:[%s6309_s5 + $0x460] sm:$0xff] }
 0x59d   :  { %4173 = vmatprep.subr.bf16.mxu1 %v4172_v27  ;;  %v4180_v47 = vpack.c.bf16 %v1938_v60, %v1937_v37  ;;  %v4192_v26 = vpack.c.bf16 %v1944_v18, %v1943_v17  ;;  %v1928_v27 = vld [vmem:[%s6309_s5 + $0x568] sm:$0xff]  ;;  %v1897_v50 = vld [vmem:[%s6309_s5 + $0x470] sm:$0xff]  ;;  %v1963_v37 = vld [vmem:[%s6309_s5 + $0x680] sm:$0xff] }
 0x59e   :  { %4143 = vmatpush3.bf16.msra.mxu0 %v4142_v63  ;;  %v1945_v63 = vld [vmem:[%s6309_s5 + $0x5f0] sm:$0xff]  ;;  %v4194_v19 = vpack.c.bf16 %v1928_v27, %v1927_v52  ;;  %v1964_v60 = vld [vmem:[%s6309_s5 + $0x688] sm:$0xff]  ;;  %v1986_v52 = vld [vmem:[%s6309_s5 + $0x738] sm:$0xff] }
 0x59f   :  { %4175 = vmatpush3.bf16.msra.mxu1 %v4174_v29  ;;  %4145 = vmatprep.subr.bf16.mxu0 %v4144_v30  ;;  %v1946_v29 = vld [vmem:[%s6309_s5 + $0x5f8] sm:$0xff]  ;;  %v4162_v30 = vpack.c.bf16 %v1896_v23, %v1895_v24  ;;  %v1929_v20 = vld [vmem:[%s6309_s5 + $0x570] sm:$0xff]  ;;  %v4200_v45 = vpack.c.bf16 %v1964_v60, %v1963_v37  ;;  %v1972_v27 = vld [vmem:[%s6309_s5 + $0x6c8] sm:$0xff] }
 0x5a0   :  { %4177 = vmatprep.subr.bf16.mxu1 %v4176_v38  ;;  %v1898_v38 = vld [vmem:[%s6309_s5 + $0x478] sm:$0xff]  ;;  %v4196_v33 = vpack.c.bf16 %v1946_v29, %v1945_v63  ;;  %v4198_v44 = vpack.c.bf16 %v1930_v36, %v1929_v20  ;;  %v1985_v24 = vld [vmem:[%s6309_s5 + $0x730] sm:$0xff]  ;;  %v2003_v7 = vld [vmem:[%s6309_s5 + $0x7c0] sm:$0xff] }
 0x5a1   :  { %v2004_v28 = vld [vmem:[%s6309_s5 + $0x7c8] sm:$0xff]  ;;  %v4246_v29 = vpack.c.bf16 %v1986_v52, %v1985_v24  ;;  %v1974_v36 = vld [vmem:[%s6309_s5 + $0x6d8] sm:$0xff]  ;;  %v2005_v37 = vld [vmem:[%s6309_s5 + $0x7d0] sm:$0xff] }
 0x5a2   :  { %4147 = vmatpush3.bf16.msra.mxu0 %v4146_v39  ;;  %v1995_v39 = vld [vmem:[%s6309_s5 + $0x780] sm:$0xff]  ;;  %v1988_v20 = vld [vmem:[%s6309_s5 + $0x748] sm:$0xff]  ;;  %v2006_v60 = vld [vmem:[%s6309_s5 + $0x7d8] sm:$0xff] }
 0x5a3   :  { %4179 = vmatpush3.bf16.msra.mxu1 %v4178_v41  ;;  %4149 = vmatprep.subr.bf16.mxu0 %v4148_v43  ;;  %v1996_v41 = vld [vmem:[%s6309_s5 + $0x788] sm:$0xff]  ;;  %v4166_v43 = vpack.c.bf16 %v1898_v38, %v1897_v50  ;;  %v1987_v50 = vld [vmem:[%s6309_s5 + $0x740] sm:$0xff]  ;;  %v4248_v38 = vpack.c.bf16 %v2004_v28, %v2003_v7 }
 0x5a4   :  { %4181 = vmatprep.subr.bf16.mxu1 %v4180_v47  ;;  %v1948_v47 = vld [vmem:[%s6309_s5 + $0x608] sm:$0xff]  ;;  %v4232_v54 = vpack.c.bf16 %v1996_v41, %v1995_v39  ;;  %v4250_v41 = vpack.c.bf16 %v1988_v20, %v1987_v50  ;;  %v2580_v53 = vld [vmem:[%s6311_s7] sm:$0x3] }
 0x5a5   :  { %2582 = vrot.lane.b32.xlu0 %v2580_v53, %s4295_s26 }
 0x5a6   :  { %4151 = vmatpush3.bf16.msra.mxu0 %v4150_v1  ;;  %v4202_v1 = vpack.c.bf16 %v1948_v47, %v1947_v46  ;;  %v1989_v46 = vld [vmem:[%s6309_s5 + $0x750] sm:$0xff]  ;;  %v4252_v47 = vpack.c.bf16 %v2006_v60, %v2005_v37 }
 0x5a7   :  { %4183 = vmatpush3.bf16.msra.mxu1 %v4182_v51  ;;  %4153 = vmatprep.subr.bf16.mxu0 %v4152_v4  ;;  %v1997_v51 = vld [vmem:[%s6309_s5 + $0x790] sm:$0xff]  ;;  %v1998_v4 = vld [vmem:[%s6309_s5 + $0x798] sm:$0xff] }
 0x5a8   :  { %4185 = vmatprep.subr.bf16.mxu1 %v4184_v15  ;;  %v1981_v15 = vld [vmem:[%s6309_s5 + $0x710] sm:$0xff]  ;;  %v4236_v35 = vpack.c.bf16 %v1998_v4, %v1997_v51  ;;  %v1959_v51 = vld [vmem:[%s6309_s5 + $0x660] sm:$0xff] }
 0x5a9   :  { %v4238_v56 = vpack.c.bf16 %v1982_v25, %v1981_v15  ;;  %v1992_v15 = vld [vmem:[%s6309_s5 + $0x768] sm:$0xff]  ;;  %v1977_v25 = vld [vmem:[%s6309_s5 + $0x6f0] sm:$0xff] }
 0x5aa   :  { %4155 = vmatpush3.bf16.msra.mxu0 %v4154_v55  ;;  %v1999_v55 = vld [vmem:[%s6309_s5 + $0x7a0] sm:$0xff] }
 0x5ab   :  { %4187 = vmatpush3.bf16.msra.mxu1 %v4186_v5  ;;  %4157 = vmatprep.subr.bf16.mxu0 %v4156_v6  ;;  %v2000_v5 = vld [vmem:[%s6309_s5 + $0x7a8] sm:$0xff]  ;;  %v4206_v6 = vpack.c.bf16 %v1950_v59, %v1949_v49  ;;  %v1991_v59 = vld [vmem:[%s6309_s5 + $0x760] sm:$0xff] }
 0x5ac   :  { %4189 = vmatprep.subr.bf16.mxu1 %v4188_v62  ;;  %v1983_v62 = vld [vmem:[%s6309_s5 + $0x720] sm:$0xff]  ;;  %v1960_v49 = vld [vmem:[%s6309_s5 + $0x668] sm:$0xff] }
 0x5ae   :  { %4159 = vmatpush3.bf16.msra.mxu0 %v4158_v34  ;;  %v4212_v34 = vpack.c.bf16 %v1970_v10, %v1969_v16 }
 0x5af   :  { %4191 = vmatpush3.bf16.msra.mxu1 %v4190_v21  ;;  %4161 = vmatprep.subr.bf16.mxu0 %v4160_v22  ;;  %v1953_v21 = vld [vmem:[%s6309_s5 + $0x630] sm:$0xff]  ;;  %v1954_v22 = vld [vmem:[%s6309_s5 + $0x638] sm:$0xff] }
 0x5b0   :  { %4193 = vmatprep.subr.bf16.mxu1 %v4192_v26  ;;  %v1971_v26 = vld [vmem:[%s6309_s5 + $0x6c0] sm:$0xff]  ;;  %v4214_v63 = vpack.c.bf16 %v1954_v22, %v1953_v21 }
 0x5b2   :  { %4163 = vmatpush3.bf16.msra.mxu0 %v4162_v30  ;;  %v4216_v30 = vpack.c.bf16 %v1972_v27, %v1971_v26 }
 0x5b3   :  { %4195 = vmatpush3.bf16.msra.mxu1 %v4194_v19  ;;  %4165 = vmatprep.subr.bf16.mxu0 %v4164_v32  ;;  %v1955_v19 = vld [vmem:[%s6309_s5 + $0x640] sm:$0xff]  ;;  %v1956_v32 = vld [vmem:[%s6309_s5 + $0x648] sm:$0xff] }
 0x5b4   :  { %4197 = vmatprep.subr.bf16.mxu1 %v4196_v33  ;;  %v1973_v33 = vld [vmem:[%s6309_s5 + $0x6d0] sm:$0xff]  ;;  %v4218_v39 = vpack.c.bf16 %v1956_v32, %v1955_v19 }
 0x5b6   :  { %4167 = vmatpush3.bf16.msra.mxu0 %v4166_v43  ;;  %v4220_v43 = vpack.c.bf16 %v1974_v36, %v1973_v33 }
 0x5b7   :  { %4199 = vmatpush3.bf16.msra.mxu1 %v4198_v44  ;;  %4201 = vmatprep.subr.bf16.mxu0 %v4200_v45  ;;  %v1957_v44 = vld [vmem:[%s6309_s5 + $0x650] sm:$0xff]  ;;  %v1958_v45 = vld [vmem:[%s6309_s5 + $0x658] sm:$0xff] }
 0x5b8   :  { %4233 = vmatprep.subr.bf16.mxu1 %v4232_v54  ;;  %v1990_v54 = vld [vmem:[%s6309_s5 + $0x758] sm:$0xff] }
 0x5b9   :  { %2363 = vmatmul.mubr.f32.vlgmr.msra.gmra.mrb[52].mxu0 %v5752_v9  ;;  %v1951_v9 = vld [vmem:[%s6309_s5 + $0x620] sm:$0xff]  ;;  %v4254_v4 = vpack.c.bf16 %v1990_v54, %v1989_v46 }
 0x5ba   :  { %2433 = vmatmul.mubr.f32.vlgmr.msra.gmra.mrb[28].mxu1 %v5755_v11  ;;  %4203 = vmatpush3.bf16.msra.mxu0 %v4202_v1  ;;  %v4240_v11 = vpack.c.bf16 %v2000_v5, %v1999_v55  ;;  %v4210_v17 = vpack.c.bf16 %v1952_v8, %v1951_v9  ;;  %v4222_v1 = vpack.c.bf16 %v1958_v45, %v1957_v44  ;;  %v2010_v55 = vld [vmem:[%s6309_s5 + $0x7f8] sm:$0xff] }
 0x5bb   :  { %2502 = vmatprep.mubr.f32.mxu0 %v5758_v12  ;;  %4235 = vmatpush3.bf16.msra.mxu1 %v4234_v13  ;;  %v1984_v12 = vld [vmem:[%s6309_s5 + $0x728] sm:$0xff]  ;;  %v4224_v13 = vpack.c.bf16 %v1976_v42, %v1975_v31  ;;  %v4226_v5 = vpack.c.bf16 %v1960_v49, %v1959_v51  ;;  %v1962_v9 = vld [vmem:[%s6309_s5 + $0x678] sm:$0xff] }
 0x5bc   :  { %2572 = vmatprep.mubr.f32.mxu1 %v5785_v48  ;;  %4205 = vmatprep.subr.bf16.mxu0 %v4204_v40  ;;  %v2002_v48 = vld [vmem:[%s6309_s5 + $0x7b8] sm:$0xff]  ;;  %v4242_v18 = vpack.c.bf16 %v1984_v12, %v1983_v62  ;;  %v4256_v40 = vpack.c.bf16 %v2008_v0, %v2007_v61  ;;  %v1993_v62 = vld [vmem:[%s6309_s5 + $0x770] sm:$0xff] }
 0x5bd   :  { %4237 = vmatprep.subr.bf16.mxu1 %v4236_v35  ;;  %v4244_v23 = vpack.c.bf16 %v2002_v48, %v2001_v3  ;;  %v2009_v35 = vld [vmem:[%s6309_s5 + $0x7f0] sm:$0xff]  ;;  %v2731_v3 = vld [vmem:[%s6310_s6] ss:$0 sm:$0xff]  ;;  %s4297_s6 = smov [#allocation2]  }
 0x5be   :  { %4207 = vmatpush3.bf16.msra.mxu0 %v4206_v6  ;;  %v4258_v6 = vpack.c.bf16 %v1992_v15, %v1991_v59  ;;  %v4260_v8 = vpack.c.bf16 %v2010_v55, %v2009_v35  ;;  %s2611_s12 = sshll.u32 %s4297_s6, 4  ;;  %s2612_s12 = int_to_ptr.vmem [resolvable:$true] %s2611_s12 }
 0x5bf   :  { %4239 = vmatpush3.bf16.msra.mxu1 %v4238_v56  ;;  %4209 = vmatprep.subr.bf16.mxu0 %v4208_v57  ;;  %v4228_v56 = vpack.c.bf16 %v1978_v2, %v1977_v25  ;;  %v1961_v57 = vld [vmem:[%s6309_s5 + $0x670] sm:$0xff]  ;;  %s4270_s13 = scalar_lea.vmem %s2612_s12, 32  ;;  %p4275_p1 = scmp.lt.s32.totalorder %s2612_s12, %s2612_s12 }
 0x5c0   :  { %4241 = vmatprep.subr.bf16.mxu1 %v4240_v11  ;;  %v1994_v11 = vld [vmem:[%s6309_s5 + $0x778] sm:$0xff]  ;;  %v4230_v12 = vpack.c.bf16 %v1962_v9, %v1961_v57  ;;  %s4296_s5 = smov 112   ;;  %p4271_p0 = scmp.ne.s32.totalorder %s2612_s12, %s4270_s13 }
 0x5c1   :  { %v4262_v16 = vpack.c.bf16 %v1994_v11, %v1993_v62  ;;  %p4276_p2 = scmp.lt.s32.totalorder %s4270_s13, %s4270_s13 }
 0x5c2   :  { %4211 = vmatpush3.bf16.msra.mxu0 %v4210_v17 }
 0x5c3   :  { %4243 = vmatpush3.bf16.msra.mxu1 %v4242_v18  ;;  %4213 = vmatprep.subr.bf16.mxu0 %v4212_v34  ;;  %p4277_p3 = por %p4276_p2, %p4275_p1 }
 0x5c4   :  { %4245 = vmatprep.subr.bf16.mxu1 %v4244_v23 }
 0x5c5   :  { %p4278_p4 = pnand %p4277_p3, %p4271_p0 }
 0x5c6   :  { %4215 = vmatpush3.bf16.msra.mxu0 %v4214_v63 }
 0x5c7   :  { %4247 = vmatpush3.bf16.msra.mxu1 %v4246_v29  ;;  %4217 = vmatprep.subr.bf16.mxu0 %v4216_v30 }
 0x5c8   :  { %4249 = vmatprep.subr.bf16.mxu1 %v4248_v38 }
 0x5ca   :  { %4219 = vmatpush3.bf16.msra.mxu0 %v4218_v39 }
 0x5cb   :  { %4251 = vmatpush3.bf16.msra.mxu1 %v4250_v41  ;;  %4221 = vmatprep.subr.bf16.mxu0 %v4220_v43 }
 0x5cc   :  { %4253 = vmatprep.subr.bf16.mxu1 %v4252_v47 }
 0x5ce   :  { %4223 = vmatpush3.bf16.msra.mxu0 %v4222_v1 }
 0x5cf   :  { %4255 = vmatpush3.bf16.msra.mxu1 %v4254_v4  ;;  %4225 = vmatprep.subr.bf16.mxu0 %v4224_v13 }
 0x5d0   :  { %4257 = vmatprep.subr.bf16.mxu1 %v4256_v40 }
 0x5d2   :  { %4227 = vmatpush3.bf16.msra.mxu0 %v4226_v5 }
 0x5d3   :  { %4259 = vmatpush3.bf16.msra.mxu1 %v4258_v6  ;;  %4229 = vmatprep.subr.bf16.mxu0 %v4228_v56 }
 0x5d4   :  { %4261 = vmatprep.subr.bf16.mxu1 %v4260_v8 }
 0x5d6   :  { %4231 = vmatpush3.bf16.msra.mxu0 %v4230_v12 }
 0x5d7   :  { %4263 = vmatpush3.bf16.msra.mxu1 %v4262_v16 }
 0x5d9   :  { %2503 = vmatmul.mubr.f32.vlgmr.msra.gmra.mrb[54].mxu0 %v5764_v14 }
 0x5da   :  { %2573 = vmatmul.mubr.f32.vlgmr.msra.gmra.mrb[30].mxu1 %v5767_v58 }
 0x617   :  { %v2583_v46 = vpop.permute.xlu0 %2582 }
 0x64c   :  { %v3148_v10 = vpop.f32.mrb[48].mxu0 }
 0x64d   :  { %v3149_v48 = vpop.f32.mrb[49].mxu0  ;;  %v3183_v17 = vpop.f32.mrb[24].mxu1 }
 0x64e   :  { %v3150_v18 = vadd.f32 %v3149_v48, %v3148_v10  ;;  %v3184_v34 = vpop.f32.mrb[25].mxu1 }
 0x64f   :  { %v3185_v21 = vadd.f32 %v3184_v34, %v3183_v17 }
 0x650   :  { %v2085_v22 = vadd.f32 %v3150_v18, %v2731_v3 }
 0x652   :  { %v2155_v24 = vadd.f32 %v3185_v21, %v2085_v22 }
 0x66c   :  { %v3218_v23 = vpop.f32.mrb[50].mxu0 }
 0x66d   :  { %v3219_v52 = vpop.f32.mrb[51].mxu0  ;;  %v3253_v26 = vpop.f32.mrb[26].mxu1 }
 0x66e   :  { %v3220_v27 = vadd.f32 %v3219_v52, %v3218_v23  ;;  %v3254_v7 = vpop.f32.mrb[27].mxu1 }
 0x66f   :  { %v3255_v14 = vadd.f32 %v3254_v7, %v3253_v26 }
 0x670   :  { %v2225_v28 = vadd.f32 %v3220_v27, %v2155_v24 }
 0x672   :  { %v2295_v58 = vadd.f32 %v3255_v14, %v2225_v28 }
 0x68c   :  { %v3288_v63 = vpop.f32.mrb[52].mxu0 }
 0x68d   :  { %v3289_v29 = vpop.f32.mrb[53].mxu0  ;;  %v3323_v30 = vpop.f32.mrb[28].mxu1 }
 0x68e   :  { %v3290_v19 = vadd.f32 %v3289_v29, %v3288_v63  ;;  %v3324_v32 = vpop.f32.mrb[29].mxu1 }
 0x68f   :  { %v3325_v50 = vadd.f32 %v3324_v32, %v3323_v30 }
 0x690   :  { %v2365_v38 = vadd.f32 %v3290_v19, %v2295_v58 }
 0x692   :  { %v2435_v20 = vadd.f32 %v3325_v50, %v2365_v38 }
 0x6ac   :  { %v3358_v33 = vpop.f32.mrb[54].mxu0 }
 0x6ad   :  { %v3359_v36 = vpop.f32.mrb[55].mxu0  ;;  %v3393_v37 = vpop.f32.mrb[30].mxu1 }
 0x6ae   :  { %v3360_v60 = vadd.f32 %v3359_v36, %v3358_v33  ;;  %v3394_v39 = vpop.f32.mrb[31].mxu1 }
 0x6af   :  { %v3395_v41 = vadd.f32 %v3394_v39, %v3393_v37 }
 0x6b0   :  { %v2505_v43 = vadd.f32 %v3360_v60, %v2435_v20 }
 0x6b2   :  { %v2575_v44 = vadd.f32 %v3395_v41, %v2505_v43 }
 0x6b4   :  { %v2578_v45 = vmul.f32 1.442695, %v2575_v44  ;;  %2592 = vrot.lane.b32.xlu1 %v2575_v44, %s4295_s26 }
 0x6b6   :  { %4268 = vpow2.f32 %v2578_v45 }
 0x6c0   :  { %v4269_v47 = vpop.eup %4268 }
 0x6c1   :  { %v2585_v54 = vmul.f32 %v4269_v47, %v2583_v46  ;;  %2596 = vrot.lane.b32.xlu1 %v4269_v47, %s4295_s26 }
 0x6c3   :  { %2587 = vrot.lane.b32.xlu0 %v2585_v54, %s4296_s5 }
 0x726   :  { %v2593_v31 = vpop.permute.xlu1 %2592 }
 0x733   :  { %v2597_v0 = vpop.permute.xlu1 %2596 }
 0x735   :  { %v2588_v42 = vpop.permute.xlu0 %2587 }
 0x736   :  { %v2590_v61 = vadd.f32 %v2588_v42, %v2575_v44 }
 0x738   :  { %v2600_v1 = vsel %vm2599_vm6, %v2590_v61, %v2593_v31 }
 0x739   :  { %v2602_v51 = vsel %vm2601_vm7, %v2600_v1, %v2597_v0 }
 0x73a   :  { %2604 = vst.msk [vmem:[#allocation2] sm:$0x3] %vm2603_vm8, %v2602_v51 }
 0x73b   :  { %4281 = shalt.err (!%p4278_p4)
}
 0x73c   :  { %s4282_s16 = scalar_lea.hbm %s6312_s8, 32 }
 0x73d   :  { %p4283_p5 = scmp.ne.s32.totalorder %s6312_s8, %s4282_s16  ;;  %p4286_p6 = scmp.lt.u32.totalorder %s4282_s16, %s6312_s8 }
 0x73f   :  { %p4288_p7 = pnand %p4286_p6, %p4283_p5 }
 0x741   :  { %4291 = shalt.err (!%p4288_p7)
}
 0x742   :  { %2614 = dma.vmem_to_hbm [thread:$0]  %s2612_s12, 32, %s6312_s8, [#allocation3]  }
 0x743   :  { %4292 = dma.done.wait [#allocation3], 32  }
 0x744   :  { %4293 = vsyncadd [#allocation3], 4294967264 }
 0x745   :  { %2618 = vsyncpa [#allocation3], 1 }

</bundles_post_ra>
